<compile_context>
chip_gen: v7x
topology: tpu7x:2x2x1
jax: 0.10.0
libtpu: 0.0.40
codegen_flags: <defaults>
</compile_context>

<pallas_src>
import jax
import jax.numpy as jnp
from jax import lax
from jax.experimental import pallas as pl
from jax.experimental.pallas import tpu as pltpu


# ------------------------------ fused kernel --------------------------------

def _pad_into(pad_ref, val):
    """Zero-pad `val` (H, W, C) by 1 pixel into `pad_ref` (H+2, W+2, C)."""
    hp, wp, _ = pad_ref.shape
    pad_ref[...] = jnp.zeros_like(pad_ref)
    pad_ref[1:hp - 1, 1:wp - 1, :] = val


def _conv_relu_pool(pad_ref, im_ref, w_ref, b_ref):
    """conv3x3(pad=1) + bias + ReLU + maxpool2x2 for one image.

    pad_ref: (H+2, W+2, Cin)  zero-padded input (VMEM scratch)
    im_ref:  (H*W, 9*Cin)     im2col scratch (VMEM)
    w_ref:   (9*Cin, Cout)    taps flattened as (dy*3 + dx)*Cin + cin
    b_ref:   (1, Cout)
    returns: (H//2, W//2, Cout) pooled activation (value)
    """
    hp, wp, cin = pad_ref.shape
    h, w = hp - 2, wp - 2
    cout = w_ref.shape[1]

    # im2col: one (H*W, Cin) patch per 3x3 tap, laid side by side along lanes.
    for k in range(9):                                      # static, unrolled
        dy, dx = divmod(k, 3)
        patch = pad_ref[dy:dy + h, dx:dx + w, :]            # (h, w, cin)
        im_ref[:, k * cin:(k + 1) * cin] = patch.reshape(h * w, cin)

    # Single wide-K MXU matmul (K = 9*Cin) instead of nine K=Cin matmuls.
    acc = jnp.dot(im_ref[...], w_ref[...], preferred_element_type=jnp.float32)
    acc = jnp.maximum(acc + b_ref[...], 0.0)                # bias + ReLU

    # Fused 2x2 stride-2 max pool (channels stay on the lane axis throughout).
    acc = acc.reshape(h, w, cout)
    acc = jnp.max(acc.reshape(h // 2, 2, w, cout), axis=1)
    acc = jnp.max(acc.reshape(h // 2, w // 2, 2, cout), axis=2)
    return acc                                              # (h//2, w//2, cout)


def _vgg_fused_kernel(x_ref, w1_ref, b1_ref, w2_ref, b2_ref, w3_ref, b3_ref,
                      fcw_ref, fcb_ref, o_ref,
                      pad1, im1, pad2, im2, pad3, im3, feat):
    # layer 1: pad input in VMEM, conv+relu+pool
    _pad_into(pad1, x_ref[0])
    a1 = _conv_relu_pool(pad1, im1, w1_ref, b1_ref)
    # layer 2
    _pad_into(pad2, a1)
    a2 = _conv_relu_pool(pad2, im2, w2_ref, b2_ref)
    # layer 3
    _pad_into(pad3, a3 := None) if False else _pad_into(pad3, a2)
    a3 = _conv_relu_pool(pad3, im3, w3_ref, b3_ref)

    # flatten in (h, w, c) order; FC weight columns were pre-permuted to match
    # (static 4-iteration loop at these shapes — negligible).
    hf, wf, cf = a3.shape
    for p in range(hf * wf):
        hh, ww = divmod(p, wf)
        feat[:, p * cf:(p + 1) * cf] = a3[hh, ww:ww + 1, :]

    # classifier fused into the same kernel: (1, F) @ (F, n_cls) on the MXU
    o_ref[0] = (jnp.dot(feat[...], fcw_ref[...],
                        preferred_element_type=jnp.float32) + fcb_ref[...])


# -------------------------------- wrapper ------------------------------------

def vgg_forward(params, x_nchw):
    """Pallas-backed VGG forward.  Input is PyTorch-style NCHW float32."""
    x_nchw = x_nchw.astype(jnp.float32)
    B, Cin, H, W = x_nchw.shape
    (cwt1, cb1), (cwt2, cb2), (cwt3, cb3) = params["convs"]

    def prep_conv(w):                       # (Cout, Cin, 3, 3) -> (9*Cin, Cout)
        cout, cin = w.shape[0], w.shape[1]
        return jnp.transpose(w, (2, 3, 1, 0)).reshape(9 * cin, cout)

    wk1, wk2, wk3 = prep_conv(cwt1), prep_conv(cwt2), prep_conv(cwt3)
    bb1, bb2, bb3 = cb1.reshape(1, -1), cb2.reshape(1, -1), cb3.reshape(1, -1)
    c1, c2, c3 = cwt1.shape[0], cwt2.shape[0], cwt3.shape[0]

    h1, w1s = H, W
    h2, w2s = H // 2, W // 2
    h3, w3s = H // 4, W // 4
    hf, wf = H // 8, W // 8
    n_cls = params["fc_w"].shape[0]

    # fc_w columns are in torch flatten (c, h, w) order; permute once to the
    # kernel's (h, w, c) feature order.  (Tiny constant, folded by XLA.)
    fcw = (params["fc_w"].reshape(n_cls, c3, hf, wf)
           .transpose(0, 2, 3, 1).reshape(n_cls, hf * wf * c3).T)  # (F, n_cls)
    fcb = params["fc_b"].reshape(1, n_cls)

    # One tiny layout change for the whole net (NCHW -> NHWC, ~4 KB/image);
    # all per-layer padding / transposes happen inside the kernel in VMEM.
    x_nhwc = jnp.transpose(x_nchw, (0, 2, 3, 1))

    rep2 = lambda i: (0, 0)
    out = pl.pallas_call(
        _vgg_fused_kernel,
        # (B, 1, n_cls): last two block dims equal the full array dims, so the
        # tiny logits output needs no lane/sublane padding tricks.
        out_shape=jax.ShapeDtypeStruct((B, 1, n_cls), jnp.float32),
        grid=(B,),
        in_specs=[
            pl.BlockSpec((1, H, W, Cin), lambda i: (i, 0, 0, 0)),
            pl.BlockSpec(wk1.shape, rep2), pl.BlockSpec(bb1.shape, rep2),
            pl.BlockSpec(wk2.shape, rep2), pl.BlockSpec(bb2.shape, rep2),
            pl.BlockSpec(wk3.shape, rep2), pl.BlockSpec(bb3.shape, rep2),
            pl.BlockSpec(fcw.shape, rep2), pl.BlockSpec(fcb.shape, rep2),
        ],
        out_specs=pl.BlockSpec((1, 1, n_cls), lambda i: (i, 0, 0)),
        scratch_shapes=[
            pltpu.VMEM((h1 + 2, w1s + 2, Cin), jnp.float32),   # pad1
            pltpu.VMEM((h1 * w1s, 9 * Cin), jnp.float32),      # im2col 1
            pltpu.VMEM((h2 + 2, w2s + 2, c1), jnp.float32),    # pad2
            pltpu.VMEM((h2 * w2s, 9 * c1), jnp.float32),       # im2col 2
            pltpu.VMEM((h3 + 2, w3s + 2, c2), jnp.float32),    # pad3
            pltpu.VMEM((h3 * w3s, 9 * c2), jnp.float32),       # im2col 3
            pltpu.VMEM((1, hf * wf * c3), jnp.float32),        # flat features
        ],
        compiler_params=pltpu.CompilerParams(
            dimension_semantics=("parallel",)),
    )(x_nhwc, wk1, bb1, wk2, bb2, wk3, bb3, fcw, fcb)
    return out.reshape(B, n_cls)


class VGG:
    """Mirror of the PyTorch wrapper: forward(x) = self.model(x)."""

    def __init__(self, model):
        self.model = model

    def __call__(self, x):
        return self.model(x)


# ----------------------------- pure-JAX reference ----------------------------

def vgg_reference(params, x_nchw):
    x = jnp.transpose(x_nchw, (0, 2, 3, 1)).astype(jnp.float32)
    for w, b in params["convs"]:
        w_hwio = jnp.transpose(w, (2, 3, 1, 0))
        x = lax.conv_general_dilated(
            x, w_hwio, window_strides=(1, 1), padding=((1, 1), (1, 1)),
            dimension_numbers=("NHWC", "HWIO", "NHWC"))
        x = jax.nn.relu(x + b.reshape(1, 1, 1, -1))
        x = lax.reduce_window(x, -jnp.inf, lax.max,
                              (1, 2, 2, 1), (1, 2, 2, 1), "VALID")
    x = jnp.transpose(x, (0, 3, 1, 2)).reshape(x.shape[0], -1)
    return x @ params["fc_w"].T + params["fc_b"]


# ---------------------------------- main -------------------------------------

def init_params(key):
    # Small VGG config (channels: 4 -> 16 -> 32 -> 32), 3x3 convs, 10 classes.
    cfg = [(4, 16), (16, 32), (32, 32)]
    keys = jax.random.split(key, 2 * len(cfg) + 2)
    convs = []
    for i, (cin, cout) in enumerate(cfg):
        w = 0.1 * jax.random.normal(keys[2 * i], (cout, cin, 3, 3), jnp.float32)
        b = 0.1 * jax.random.normal(keys[2 * i + 1], (cout,), jnp.float32)
        convs.append((w, b))
    feat = 32 * 2 * 2   # 16x16 input pooled 3x -> 2x2 spatial, 32 channels
    fc_w = 0.1 * jax.random.normal(keys[-2], (10, feat), jnp.float32)
    fc_b = 0.1 * jax.random.normal(keys[-1], (10,), jnp.float32)
    return {"convs": convs, "fc_w": fc_w, "fc_b": fc_b}


if __name__ == "__main__":
    key = jax.random.PRNGKey(0)
    pkey, xkey = jax.random.split(key)
    params = init_params(pkey)

    x = jax.random.normal(xkey, (2, 4, 16, 16), jnp.float32)   # NCHW like torch

    forward = jax.jit(lambda inp: vgg_forward(params, inp))
    net = VGG(forward)
    out = jax.block_until_ready(net(x))

    ref = jax.block_until_ready(vgg_reference(params, x))
    assert out.shape == (2, 10), out.shape
    assert jnp.allclose(out, ref, rtol=2e-3, atol=2e-3), \
        f"max abs err {jnp.max(jnp.abs(out - ref))}"

    print("KERNEL_OK")
</pallas_src>

<mosaic_0001>
module attributes {stable_mosaic.version = 11 : i64} {
  func.func @_vgg_fused_kernel(%arg0: i32, %arg1: memref<1x16x16x4xf32, #tpu.memory_space<vmem>>, %arg2: memref<36x16xf32, #tpu.memory_space<vmem>>, %arg3: memref<1x16xf32, #tpu.memory_space<vmem>>, %arg4: memref<144x32xf32, #tpu.memory_space<vmem>>, %arg5: memref<1x32xf32, #tpu.memory_space<vmem>>, %arg6: memref<288x32xf32, #tpu.memory_space<vmem>>, %arg7: memref<1x32xf32, #tpu.memory_space<vmem>>, %arg8: memref<128x10xf32, #tpu.memory_space<vmem>>, %arg9: memref<1x10xf32, #tpu.memory_space<vmem>>, %arg10: memref<1x1x10xf32, #tpu.memory_space<vmem>>, %arg11: memref<18x18x4xf32, #tpu.memory_space<vmem>>, %arg12: memref<256x36xf32, #tpu.memory_space<vmem>>, %arg13: memref<10x10x16xf32, #tpu.memory_space<vmem>>, %arg14: memref<64x144xf32, #tpu.memory_space<vmem>>, %arg15: memref<6x6x32xf32, #tpu.memory_space<vmem>>, %arg16: memref<16x288xf32, #tpu.memory_space<vmem>>, %arg17: memref<1x128xf32, #tpu.memory_space<vmem>>) attributes {dimension_semantics = [#tpu.dimension_semantics<parallel>], iteration_bounds = array<i64: 2>, scalar_prefetch = 0 : i64, scratch_operands = 7 : i64, tpu.core_type = #tpu.core_type<tc>, window_params = [{transform_indices = @transform_0, window_bounds = array<i64: 1, 16, 16, 4>}, {pipeline_mode = #tpu.pipeline_mode<synchronous>, transform_indices = @transform_1, window_bounds = array<i64: 36, 16>}, {pipeline_mode = #tpu.pipeline_mode<synchronous>, transform_indices = @transform_2, window_bounds = array<i64: 1, 16>}, {pipeline_mode = #tpu.pipeline_mode<synchronous>, transform_indices = @transform_3, window_bounds = array<i64: 144, 32>}, {pipeline_mode = #tpu.pipeline_mode<synchronous>, transform_indices = @transform_4, window_bounds = array<i64: 1, 32>}, {pipeline_mode = #tpu.pipeline_mode<synchronous>, transform_indices = @transform_5, window_bounds = array<i64: 288, 32>}, {pipeline_mode = #tpu.pipeline_mode<synchronous>, transform_indices = @transform_6, window_bounds = array<i64: 1, 32>}, {pipeline_mode = #tpu.pipeline_mode<synchronous>, transform_indices = @transform_7, window_bounds = array<i64: 128, 10>}, {pipeline_mode = #tpu.pipeline_mode<synchronous>, transform_indices = @transform_8, window_bounds = array<i64: 1, 10>}, {transform_indices = @transform_9, window_bounds = array<i64: 1, 1, 10>}]} {
    %c0 = arith.constant 0 : index
    %c0_0 = arith.constant 0 : index
    %c0_1 = arith.constant 0 : index
    %c0_2 = arith.constant 0 : index
    %0 = vector.load %arg1[%c0, %c0_0, %c0_1, %c0_2] : memref<1x16x16x4xf32, #tpu.memory_space<vmem>>, vector<1x16x16x4xf32>
    %1 = vector.shape_cast %0 : vector<1x16x16x4xf32> to vector<16x16x4xf32>
    %cst = arith.constant 0.000000e+00 : f32
    %2 = vector.broadcast %cst : f32 to vector<18x18x4xf32>
    %c0_3 = arith.constant 0 : index
    %c0_4 = arith.constant 0 : index
    %c0_5 = arith.constant 0 : index
    %3 = vector.load %arg11[%c0_3, %c0_4, %c0_5] : memref<18x18x4xf32, #tpu.memory_space<vmem>>, vector<18x18x4xf32>
    tpu.vector_store %arg11[%c0_3, %c0_4, %c0_5], %2 {strides = array<i32>} : memref<18x18x4xf32, #tpu.memory_space<vmem>>, vector<18x18x4xf32>,
    %c1 = arith.constant 1 : index
    %c1_6 = arith.constant 1 : index
    %c0_7 = arith.constant 0 : index
    %4 = vector.load %arg11[%c1, %c1_6, %c0_7] : memref<18x18x4xf32, #tpu.memory_space<vmem>>, vector<16x16x4xf32>
    tpu.vector_store %arg11[%c1, %c1_6, %c0_7], %1 {strides = array<i32>} : memref<18x18x4xf32, #tpu.memory_space<vmem>>, vector<16x16x4xf32>,
    %c0_8 = arith.constant 0 : index
    %c0_9 = arith.constant 0 : index
    %c0_10 = arith.constant 0 : index
    %5 = vector.load %arg11[%c0_8, %c0_9, %c0_10] : memref<18x18x4xf32, #tpu.memory_space<vmem>>, vector<16x16x4xf32>
    %6 = vector.shape_cast %5 : vector<16x16x4xf32> to vector<256x4xf32>
    %c0_11 = arith.constant 0 : index
    %c0_12 = arith.constant 0 : index
    %7 = vector.load %arg12[%c0_11, %c0_12] : memref<256x36xf32, #tpu.memory_space<vmem>>, vector<256x4xf32>
    tpu.vector_store %arg12[%c0_11, %c0_12], %6 {strides = array<i32>} : memref<256x36xf32, #tpu.memory_space<vmem>>, vector<256x4xf32>,
    %c0_13 = arith.constant 0 : index
    %c1_14 = arith.constant 1 : index
    %c0_15 = arith.constant 0 : index
    %8 = vector.load %arg11[%c0_13, %c1_14, %c0_15] : memref<18x18x4xf32, #tpu.memory_space<vmem>>, vector<16x16x4xf32>
    %9 = vector.shape_cast %8 : vector<16x16x4xf32> to vector<256x4xf32>
    %c0_16 = arith.constant 0 : index
    %c4 = arith.constant 4 : index
    %10 = vector.load %arg12[%c0_16, %c4] : memref<256x36xf32, #tpu.memory_space<vmem>>, vector<256x4xf32>
    tpu.vector_store %arg12[%c0_16, %c4], %9 {strides = array<i32>} : memref<256x36xf32, #tpu.memory_space<vmem>>, vector<256x4xf32>,
    %c0_17 = arith.constant 0 : index
    %c2 = arith.constant 2 : index
    %c0_18 = arith.constant 0 : index
    %11 = vector.load %arg11[%c0_17, %c2, %c0_18] : memref<18x18x4xf32, #tpu.memory_space<vmem>>, vector<16x16x4xf32>
    %12 = vector.shape_cast %11 : vector<16x16x4xf32> to vector<256x4xf32>
    %c0_19 = arith.constant 0 : index
    %c8 = arith.constant 8 : index
    %13 = vector.load %arg12[%c0_19, %c8] : memref<256x36xf32, #tpu.memory_space<vmem>>, vector<256x4xf32>
    tpu.vector_store %arg12[%c0_19, %c8], %12 {strides = array<i32>} : memref<256x36xf32, #tpu.memory_space<vmem>>, vector<256x4xf32>,
    %c1_20 = arith.constant 1 : index
    %c0_21 = arith.constant 0 : index
    %c0_22 = arith.constant 0 : index
    %14 = vector.load %arg11[%c1_20, %c0_21, %c0_22] : memref<18x18x4xf32, #tpu.memory_space<vmem>>, vector<16x16x4xf32>
    %15 = vector.shape_cast %14 : vector<16x16x4xf32> to vector<256x4xf32>
    %c0_23 = arith.constant 0 : index
    %c12 = arith.constant 12 : index
    %16 = vector.load %arg12[%c0_23, %c12] : memref<256x36xf32, #tpu.memory_space<vmem>>, vector<256x4xf32>
    tpu.vector_store %arg12[%c0_23, %c12], %15 {strides = array<i32>} : memref<256x36xf32, #tpu.memory_space<vmem>>, vector<256x4xf32>,
    %c1_24 = arith.constant 1 : index
    %c1_25 = arith.constant 1 : index
    %c0_26 = arith.constant 0 : index
    %17 = vector.load %arg11[%c1_24, %c1_25, %c0_26] : memref<18x18x4xf32, #tpu.memory_space<vmem>>, vector<16x16x4xf32>
    %18 = vector.shape_cast %17 : vector<16x16x4xf32> to vector<256x4xf32>
    %c0_27 = arith.constant 0 : index
    %c16 = arith.constant 16 : index
    %19 = vector.load %arg12[%c0_27, %c16] : memref<256x36xf32, #tpu.memory_space<vmem>>, vector<256x4xf32>
    tpu.vector_store %arg12[%c0_27, %c16], %18 {strides = array<i32>} : memref<256x36xf32, #tpu.memory_space<vmem>>, vector<256x4xf32>,
    %c1_28 = arith.constant 1 : index
    %c2_29 = arith.constant 2 : index
    %c0_30 = arith.constant 0 : index
    %20 = vector.load %arg11[%c1_28, %c2_29, %c0_30] : memref<18x18x4xf32, #tpu.memory_space<vmem>>, vector<16x16x4xf32>
    %21 = vector.shape_cast %20 : vector<16x16x4xf32> to vector<256x4xf32>
    %c0_31 = arith.constant 0 : index
    %c20 = arith.constant 20 : index
    %22 = vector.load %arg12[%c0_31, %c20] : memref<256x36xf32, #tpu.memory_space<vmem>>, vector<256x4xf32>
    tpu.vector_store %arg12[%c0_31, %c20], %21 {strides = array<i32>} : memref<256x36xf32, #tpu.memory_space<vmem>>, vector<256x4xf32>,
    %c2_32 = arith.constant 2 : index
    %c0_33 = arith.constant 0 : index
    %c0_34 = arith.constant 0 : index
    %23 = vector.load %arg11[%c2_32, %c0_33, %c0_34] : memref<18x18x4xf32, #tpu.memory_space<vmem>>, vector<16x16x4xf32>
    %24 = vector.shape_cast %23 : vector<16x16x4xf32> to vector<256x4xf32>
    %c0_35 = arith.constant 0 : index
    %c24 = arith.constant 24 : index
    %25 = vector.load %arg12[%c0_35, %c24] : memref<256x36xf32, #tpu.memory_space<vmem>>, vector<256x4xf32>
    tpu.vector_store %arg12[%c0_35, %c24], %24 {strides = array<i32>} : memref<256x36xf32, #tpu.memory_space<vmem>>, vector<256x4xf32>,
    %c2_36 = arith.constant 2 : index
    %c1_37 = arith.constant 1 : index
    %c0_38 = arith.constant 0 : index
    %26 = vector.load %arg11[%c2_36, %c1_37, %c0_38] : memref<18x18x4xf32, #tpu.memory_space<vmem>>, vector<16x16x4xf32>
    %27 = vector.shape_cast %26 : vector<16x16x4xf32> to vector<256x4xf32>
    %c0_39 = arith.constant 0 : index
    %c28 = arith.constant 28 : index
    %28 = vector.load %arg12[%c0_39, %c28] : memref<256x36xf32, #tpu.memory_space<vmem>>, vector<256x4xf32>
    tpu.vector_store %arg12[%c0_39, %c28], %27 {strides = array<i32>} : memref<256x36xf32, #tpu.memory_space<vmem>>, vector<256x4xf32>,
    %c2_40 = arith.constant 2 : index
    %c2_41 = arith.constant 2 : index
    %c0_42 = arith.constant 0 : index
    %29 = vector.load %arg11[%c2_40, %c2_41, %c0_42] : memref<18x18x4xf32, #tpu.memory_space<vmem>>, vector<16x16x4xf32>
    %30 = vector.shape_cast %29 : vector<16x16x4xf32> to vector<256x4xf32>
    %c0_43 = arith.constant 0 : index
    %c32 = arith.constant 32 : index
    %31 = vector.load %arg12[%c0_43, %c32] : memref<256x36xf32, #tpu.memory_space<vmem>>, vector<256x4xf32>
    tpu.vector_store %arg12[%c0_43, %c32], %30 {strides = array<i32>} : memref<256x36xf32, #tpu.memory_space<vmem>>, vector<256x4xf32>,
    %c0_44 = arith.constant 0 : index
    %c0_45 = arith.constant 0 : index
    %32 = vector.load %arg12[%c0_44, %c0_45] : memref<256x36xf32, #tpu.memory_space<vmem>>, vector<256x36xf32>
    %c0_46 = arith.constant 0 : index
    %c0_47 = arith.constant 0 : index
    %33 = vector.load %arg2[%c0_46, %c0_47] : memref<36x16xf32, #tpu.memory_space<vmem>>, vector<36x16xf32>
    %cst_48 = arith.constant dense<0.000000e+00> : vector<256x16xf32>
    %34 = tpu.matmul %32, %33, %cst_48 {dimension_numbers = #tpu.dot_dimension_numbers<[1], [0], [0], [1], [0, 0, 1, 1], [], []>} : vector<256x36xf32>, vector<36x16xf32>, vector<256x16xf32> -> vector<256x16xf32>
    %c0_49 = arith.constant 0 : index
    %c0_50 = arith.constant 0 : index
    %35 = vector.load %arg3[%c0_49, %c0_50] : memref<1x16xf32, #tpu.memory_space<vmem>>, vector<1x16xf32>
    %36 = vector.broadcast %35 : vector<1x16xf32> to vector<256x16xf32>
    %37 = arith.addf %34, %36 : vector<256x16xf32>
    %cst_51 = arith.constant 0.000000e+00 : f32
    %38 = vector.broadcast %cst_51 : f32 to vector<256x16xf32>
    %39 = arith.maximumf %37, %38 : vector<256x16xf32>
    %40 = vector.shape_cast %39 : vector<256x16xf32> to vector<16x16x16xf32>
    %41 = vector.shape_cast %40 : vector<16x16x16xf32> to vector<8x2x16x16xf32>
    %cst_52 = arith.constant dense<0xFF800000> : vector<8x16x16xf32>
    %42 = vector.multi_reduction <maximumf>, %41, %cst_52 [1] : vector<8x2x16x16xf32> to vector<8x16x16xf32>
    %43 = vector.shape_cast %42 : vector<8x16x16xf32> to vector<8x8x2x16xf32>
    %cst_53 = arith.constant dense<0xFF800000> : vector<8x8x16xf32>
    %44 = vector.multi_reduction <maximumf>, %43, %cst_53 [2] : vector<8x8x2x16xf32> to vector<8x8x16xf32>
    %cst_54 = arith.constant 0.000000e+00 : f32
    %45 = vector.broadcast %cst_54 : f32 to vector<10x10x16xf32>
    %c0_55 = arith.constant 0 : index
    %c0_56 = arith.constant 0 : index
    %c0_57 = arith.constant 0 : index
    %46 = vector.load %arg13[%c0_55, %c0_56, %c0_57] : memref<10x10x16xf32, #tpu.memory_space<vmem>>, vector<10x10x16xf32>
    tpu.vector_store %arg13[%c0_55, %c0_56, %c0_57], %45 {strides = array<i32>} : memref<10x10x16xf32, #tpu.memory_space<vmem>>, vector<10x10x16xf32>,
    %c1_58 = arith.constant 1 : index
    %c1_59 = arith.constant 1 : index
    %c0_60 = arith.constant 0 : index
    %47 = vector.load %arg13[%c1_58, %c1_59, %c0_60] : memref<10x10x16xf32, #tpu.memory_space<vmem>>, vector<8x8x16xf32>
    tpu.vector_store %arg13[%c1_58, %c1_59, %c0_60], %44 {strides = array<i32>} : memref<10x10x16xf32, #tpu.memory_space<vmem>>, vector<8x8x16xf32>,
    %c0_61 = arith.constant 0 : index
    %c0_62 = arith.constant 0 : index
    %c0_63 = arith.constant 0 : index
    %48 = vector.load %arg13[%c0_61, %c0_62, %c0_63] : memref<10x10x16xf32, #tpu.memory_space<vmem>>, vector<8x8x16xf32>
    %49 = vector.shape_cast %48 : vector<8x8x16xf32> to vector<64x16xf32>
    %c0_64 = arith.constant 0 : index
    %c0_65 = arith.constant 0 : index
    %50 = vector.load %arg14[%c0_64, %c0_65] : memref<64x144xf32, #tpu.memory_space<vmem>>, vector<64x16xf32>
    tpu.vector_store %arg14[%c0_64, %c0_65], %49 {strides = array<i32>} : memref<64x144xf32, #tpu.memory_space<vmem>>, vector<64x16xf32>,
    %c0_66 = arith.constant 0 : index
    %c1_67 = arith.constant 1 : index
    %c0_68 = arith.constant 0 : index
    %51 = vector.load %arg13[%c0_66, %c1_67, %c0_68] : memref<10x10x16xf32, #tpu.memory_space<vmem>>, vector<8x8x16xf32>
    %52 = vector.shape_cast %51 : vector<8x8x16xf32> to vector<64x16xf32>
    %c0_69 = arith.constant 0 : index
    %c16_70 = arith.constant 16 : index
    %53 = vector.load %arg14[%c0_69, %c16_70] : memref<64x144xf32, #tpu.memory_space<vmem>>, vector<64x16xf32>
    tpu.vector_store %arg14[%c0_69, %c16_70], %52 {strides = array<i32>} : memref<64x144xf32, #tpu.memory_space<vmem>>, vector<64x16xf32>,
    %c0_71 = arith.constant 0 : index
    %c2_72 = arith.constant 2 : index
    %c0_73 = arith.constant 0 : index
    %54 = vector.load %arg13[%c0_71, %c2_72, %c0_73] : memref<10x10x16xf32, #tpu.memory_space<vmem>>, vector<8x8x16xf32>
    %55 = vector.shape_cast %54 : vector<8x8x16xf32> to vector<64x16xf32>
    %c0_74 = arith.constant 0 : index
    %c32_75 = arith.constant 32 : index
    %56 = vector.load %arg14[%c0_74, %c32_75] : memref<64x144xf32, #tpu.memory_space<vmem>>, vector<64x16xf32>
    tpu.vector_store %arg14[%c0_74, %c32_75], %55 {strides = array<i32>} : memref<64x144xf32, #tpu.memory_space<vmem>>, vector<64x16xf32>,
    %c1_76 = arith.constant 1 : index
    %c0_77 = arith.constant 0 : index
    %c0_78 = arith.constant 0 : index
    %57 = vector.load %arg13[%c1_76, %c0_77, %c0_78] : memref<10x10x16xf32, #tpu.memory_space<vmem>>, vector<8x8x16xf32>
    %58 = vector.shape_cast %57 : vector<8x8x16xf32> to vector<64x16xf32>
    %c0_79 = arith.constant 0 : index
    %c48 = arith.constant 48 : index
    %59 = vector.load %arg14[%c0_79, %c48] : memref<64x144xf32, #tpu.memory_space<vmem>>, vector<64x16xf32>
    tpu.vector_store %arg14[%c0_79, %c48], %58 {strides = array<i32>} : memref<64x144xf32, #tpu.memory_space<vmem>>, vector<64x16xf32>,
    %c1_80 = arith.constant 1 : index
    %c1_81 = arith.constant 1 : index
    %c0_82 = arith.constant 0 : index
    %60 = vector.load %arg13[%c1_80, %c1_81, %c0_82] : memref<10x10x16xf32, #tpu.memory_space<vmem>>, vector<8x8x16xf32>
    %61 = vector.shape_cast %60 : vector<8x8x16xf32> to vector<64x16xf32>
    %c0_83 = arith.constant 0 : index
    %c64 = arith.constant 64 : index
    %62 = vector.load %arg14[%c0_83, %c64] : memref<64x144xf32, #tpu.memory_space<vmem>>, vector<64x16xf32>
    tpu.vector_store %arg14[%c0_83, %c64], %61 {strides = array<i32>} : memref<64x144xf32, #tpu.memory_space<vmem>>, vector<64x16xf32>,
    %c1_84 = arith.constant 1 : index
    %c2_85 = arith.constant 2 : index
    %c0_86 = arith.constant 0 : index
    %63 = vector.load %arg13[%c1_84, %c2_85, %c0_86] : memref<10x10x16xf32, #tpu.memory_space<vmem>>, vector<8x8x16xf32>
    %64 = vector.shape_cast %63 : vector<8x8x16xf32> to vector<64x16xf32>
    %c0_87 = arith.constant 0 : index
    %c80 = arith.constant 80 : index
    %65 = vector.load %arg14[%c0_87, %c80] : memref<64x144xf32, #tpu.memory_space<vmem>>, vector<64x16xf32>
    tpu.vector_store %arg14[%c0_87, %c80], %64 {strides = array<i32>} : memref<64x144xf32, #tpu.memory_space<vmem>>, vector<64x16xf32>,
    %c2_88 = arith.constant 2 : index
    %c0_89 = arith.constant 0 : index
    %c0_90 = arith.constant 0 : index
    %66 = vector.load %arg13[%c2_88, %c0_89, %c0_90] : memref<10x10x16xf32, #tpu.memory_space<vmem>>, vector<8x8x16xf32>
    %67 = vector.shape_cast %66 : vector<8x8x16xf32> to vector<64x16xf32>
    %c0_91 = arith.constant 0 : index
    %c96 = arith.constant 96 : index
    %68 = vector.load %arg14[%c0_91, %c96] : memref<64x144xf32, #tpu.memory_space<vmem>>, vector<64x16xf32>
    tpu.vector_store %arg14[%c0_91, %c96], %67 {strides = array<i32>} : memref<64x144xf32, #tpu.memory_space<vmem>>, vector<64x16xf32>,
    %c2_92 = arith.constant 2 : index
    %c1_93 = arith.constant 1 : index
    %c0_94 = arith.constant 0 : index
    %69 = vector.load %arg13[%c2_92, %c1_93, %c0_94] : memref<10x10x16xf32, #tpu.memory_space<vmem>>, vector<8x8x16xf32>
    %70 = vector.shape_cast %69 : vector<8x8x16xf32> to vector<64x16xf32>
    %c0_95 = arith.constant 0 : index
    %c112 = arith.constant 112 : index
    %71 = vector.load %arg14[%c0_95, %c112] : memref<64x144xf32, #tpu.memory_space<vmem>>, vector<64x16xf32>
    tpu.vector_store %arg14[%c0_95, %c112], %70 {strides = array<i32>} : memref<64x144xf32, #tpu.memory_space<vmem>>, vector<64x16xf32>,
    %c2_96 = arith.constant 2 : index
    %c2_97 = arith.constant 2 : index
    %c0_98 = arith.constant 0 : index
    %72 = vector.load %arg13[%c2_96, %c2_97, %c0_98] : memref<10x10x16xf32, #tpu.memory_space<vmem>>, vector<8x8x16xf32>
    %73 = vector.shape_cast %72 : vector<8x8x16xf32> to vector<64x16xf32>
    %c0_99 = arith.constant 0 : index
    %c128 = arith.constant 128 : index
    %74 = vector.load %arg14[%c0_99, %c128] : memref<64x144xf32, #tpu.memory_space<vmem>>, vector<64x16xf32>
    tpu.vector_store %arg14[%c0_99, %c128], %73 {strides = array<i32>} : memref<64x144xf32, #tpu.memory_space<vmem>>, vector<64x16xf32>,
    %c0_100 = arith.constant 0 : index
    %c0_101 = arith.constant 0 : index
    %75 = vector.load %arg14[%c0_100, %c0_101] : memref<64x144xf32, #tpu.memory_space<vmem>>, vector<64x144xf32>
    %c0_102 = arith.constant 0 : index
    %c0_103 = arith.constant 0 : index
    %76 = vector.load %arg4[%c0_102, %c0_103] : memref<144x32xf32, #tpu.memory_space<vmem>>, vector<144x32xf32>
    %cst_104 = arith.constant dense<0.000000e+00> : vector<64x32xf32>
    %77 = tpu.matmul %75, %76, %cst_104 {dimension_numbers = #tpu.dot_dimension_numbers<[1], [0], [0], [1], [0, 0, 1, 1], [], []>} : vector<64x144xf32>, vector<144x32xf32>, vector<64x32xf32> -> vector<64x32xf32>
    %c0_105 = arith.constant 0 : index
    %c0_106 = arith.constant 0 : index
    %78 = vector.load %arg5[%c0_105, %c0_106] : memref<1x32xf32, #tpu.memory_space<vmem>>, vector<1x32xf32>
    %79 = vector.broadcast %78 : vector<1x32xf32> to vector<64x32xf32>
    %80 = arith.addf %77, %79 : vector<64x32xf32>
    %cst_107 = arith.constant 0.000000e+00 : f32
    %81 = vector.broadcast %cst_107 : f32 to vector<64x32xf32>
    %82 = arith.maximumf %80, %81 : vector<64x32xf32>
    %83 = vector.shape_cast %82 : vector<64x32xf32> to vector<8x8x32xf32>
    %84 = vector.shape_cast %83 : vector<8x8x32xf32> to vector<4x2x8x32xf32>
    %cst_108 = arith.constant dense<0xFF800000> : vector<4x8x32xf32>
    %85 = vector.multi_reduction <maximumf>, %84, %cst_108 [1] : vector<4x2x8x32xf32> to vector<4x8x32xf32>
    %86 = vector.shape_cast %85 : vector<4x8x32xf32> to vector<4x4x2x32xf32>
    %cst_109 = arith.constant dense<0xFF800000> : vector<4x4x32xf32>
    %87 = vector.multi_reduction <maximumf>, %86, %cst_109 [2] : vector<4x4x2x32xf32> to vector<4x4x32xf32>
    %cst_110 = arith.constant 0.000000e+00 : f32
    %88 = vector.broadcast %cst_110 : f32 to vector<6x6x32xf32>
    %c0_111 = arith.constant 0 : index
    %c0_112 = arith.constant 0 : index
    %c0_113 = arith.constant 0 : index
    %89 = vector.load %arg15[%c0_111, %c0_112, %c0_113] : memref<6x6x32xf32, #tpu.memory_space<vmem>>, vector<6x6x32xf32>
    tpu.vector_store %arg15[%c0_111, %c0_112, %c0_113], %88 {strides = array<i32>} : memref<6x6x32xf32, #tpu.memory_space<vmem>>, vector<6x6x32xf32>,
    %c1_114 = arith.constant 1 : index
    %c1_115 = arith.constant 1 : index
    %c0_116 = arith.constant 0 : index
    %90 = vector.load %arg15[%c1_114, %c1_115, %c0_116] : memref<6x6x32xf32, #tpu.memory_space<vmem>>, vector<4x4x32xf32>
    tpu.vector_store %arg15[%c1_114, %c1_115, %c0_116], %87 {strides = array<i32>} : memref<6x6x32xf32, #tpu.memory_space<vmem>>, vector<4x4x32xf32>,
    %c0_117 = arith.constant 0 : index
    %c0_118 = arith.constant 0 : index
    %c0_119 = arith.constant 0 : index
    %91 = vector.load %arg15[%c0_117, %c0_118, %c0_119] : memref<6x6x32xf32, #tpu.memory_space<vmem>>, vector<4x4x32xf32>
    %92 = vector.shape_cast %91 : vector<4x4x32xf32> to vector<16x32xf32>
    %c0_120 = arith.constant 0 : index
    %c0_121 = arith.constant 0 : index
    %93 = vector.load %arg16[%c0_120, %c0_121] : memref<16x288xf32, #tpu.memory_space<vmem>>, vector<16x32xf32>
    tpu.vector_store %arg16[%c0_120, %c0_121], %92 {strides = array<i32>} : memref<16x288xf32, #tpu.memory_space<vmem>>, vector<16x32xf32>,
    %c0_122 = arith.constant 0 : index
    %c1_123 = arith.constant 1 : index
    %c0_124 = arith.constant 0 : index
    %94 = vector.load %arg15[%c0_122, %c1_123, %c0_124] : memref<6x6x32xf32, #tpu.memory_space<vmem>>, vector<4x4x32xf32>
    %95 = vector.shape_cast %94 : vector<4x4x32xf32> to vector<16x32xf32>
    %c0_125 = arith.constant 0 : index
    %c32_126 = arith.constant 32 : index
    %96 = vector.load %arg16[%c0_125, %c32_126] : memref<16x288xf32, #tpu.memory_space<vmem>>, vector<16x32xf32>
    tpu.vector_store %arg16[%c0_125, %c32_126], %95 {strides = array<i32>} : memref<16x288xf32, #tpu.memory_space<vmem>>, vector<16x32xf32>,
    %c0_127 = arith.constant 0 : index
    %c2_128 = arith.constant 2 : index
    %c0_129 = arith.constant 0 : index
    %97 = vector.load %arg15[%c0_127, %c2_128, %c0_129] : memref<6x6x32xf32, #tpu.memory_space<vmem>>, vector<4x4x32xf32>
    %98 = vector.shape_cast %97 : vector<4x4x32xf32> to vector<16x32xf32>
    %c0_130 = arith.constant 0 : index
    %c64_131 = arith.constant 64 : index
    %99 = vector.load %arg16[%c0_130, %c64_131] : memref<16x288xf32, #tpu.memory_space<vmem>>, vector<16x32xf32>
    tpu.vector_store %arg16[%c0_130, %c64_131], %98 {strides = array<i32>} : memref<16x288xf32, #tpu.memory_space<vmem>>, vector<16x32xf32>,
    %c1_132 = arith.constant 1 : index
    %c0_133 = arith.constant 0 : index
    %c0_134 = arith.constant 0 : index
    %100 = vector.load %arg15[%c1_132, %c0_133, %c0_134] : memref<6x6x32xf32, #tpu.memory_space<vmem>>, vector<4x4x32xf32>
    %101 = vector.shape_cast %100 : vector<4x4x32xf32> to vector<16x32xf32>
    %c0_135 = arith.constant 0 : index
    %c96_136 = arith.constant 96 : index
    %102 = vector.load %arg16[%c0_135, %c96_136] : memref<16x288xf32, #tpu.memory_space<vmem>>, vector<16x32xf32>
    tpu.vector_store %arg16[%c0_135, %c96_136], %101 {strides = array<i32>} : memref<16x288xf32, #tpu.memory_space<vmem>>, vector<16x32xf32>,
    %c1_137 = arith.constant 1 : index
    %c1_138 = arith.constant 1 : index
    %c0_139 = arith.constant 0 : index
    %103 = vector.load %arg15[%c1_137, %c1_138, %c0_139] : memref<6x6x32xf32, #tpu.memory_space<vmem>>, vector<4x4x32xf32>
    %104 = vector.shape_cast %103 : vector<4x4x32xf32> to vector<16x32xf32>
    %c0_140 = arith.constant 0 : index
    %c128_141 = arith.constant 128 : index
    %105 = vector.load %arg16[%c0_140, %c128_141] : memref<16x288xf32, #tpu.memory_space<vmem>>, vector<16x32xf32>
    tpu.vector_store %arg16[%c0_140, %c128_141], %104 {strides = array<i32>} : memref<16x288xf32, #tpu.memory_space<vmem>>, vector<16x32xf32>,
    %c1_142 = arith.constant 1 : index
    %c2_143 = arith.constant 2 : index
    %c0_144 = arith.constant 0 : index
    %106 = vector.load %arg15[%c1_142, %c2_143, %c0_144] : memref<6x6x32xf32, #tpu.memory_space<vmem>>, vector<4x4x32xf32>
    %107 = vector.shape_cast %106 : vector<4x4x32xf32> to vector<16x32xf32>
    %c0_145 = arith.constant 0 : index
    %c160 = arith.constant 160 : index
    %108 = vector.load %arg16[%c0_145, %c160] : memref<16x288xf32, #tpu.memory_space<vmem>>, vector<16x32xf32>
    tpu.vector_store %arg16[%c0_145, %c160], %107 {strides = array<i32>} : memref<16x288xf32, #tpu.memory_space<vmem>>, vector<16x32xf32>,
    %c2_146 = arith.constant 2 : index
    %c0_147 = arith.constant 0 : index
    %c0_148 = arith.constant 0 : index
    %109 = vector.load %arg15[%c2_146, %c0_147, %c0_148] : memref<6x6x32xf32, #tpu.memory_space<vmem>>, vector<4x4x32xf32>
    %110 = vector.shape_cast %109 : vector<4x4x32xf32> to vector<16x32xf32>
    %c0_149 = arith.constant 0 : index
    %c192 = arith.constant 192 : index
    %111 = vector.load %arg16[%c0_149, %c192] : memref<16x288xf32, #tpu.memory_space<vmem>>, vector<16x32xf32>
    tpu.vector_store %arg16[%c0_149, %c192], %110 {strides = array<i32>} : memref<16x288xf32, #tpu.memory_space<vmem>>, vector<16x32xf32>,
    %c2_150 = arith.constant 2 : index
    %c1_151 = arith.constant 1 : index
    %c0_152 = arith.constant 0 : index
    %112 = vector.load %arg15[%c2_150, %c1_151, %c0_152] : memref<6x6x32xf32, #tpu.memory_space<vmem>>, vector<4x4x32xf32>
    %113 = vector.shape_cast %112 : vector<4x4x32xf32> to vector<16x32xf32>
    %c0_153 = arith.constant 0 : index
    %c224 = arith.constant 224 : index
    %114 = vector.load %arg16[%c0_153, %c224] : memref<16x288xf32, #tpu.memory_space<vmem>>, vector<16x32xf32>
    tpu.vector_store %arg16[%c0_153, %c224], %113 {strides = array<i32>} : memref<16x288xf32, #tpu.memory_space<vmem>>, vector<16x32xf32>,
    %c2_154 = arith.constant 2 : index
    %c2_155 = arith.constant 2 : index
    %c0_156 = arith.constant 0 : index
    %115 = vector.load %arg15[%c2_154, %c2_155, %c0_156] : memref<6x6x32xf32, #tpu.memory_space<vmem>>, vector<4x4x32xf32>
    %116 = vector.shape_cast %115 : vector<4x4x32xf32> to vector<16x32xf32>
    %c0_157 = arith.constant 0 : index
    %c256 = arith.constant 256 : index
    %117 = vector.load %arg16[%c0_157, %c256] : memref<16x288xf32, #tpu.memory_space<vmem>>, vector<16x32xf32>
    tpu.vector_store %arg16[%c0_157, %c256], %116 {strides = array<i32>} : memref<16x288xf32, #tpu.memory_space<vmem>>, vector<16x32xf32>,
    %c0_158 = arith.constant 0 : index
    %c0_159 = arith.constant 0 : index
    %118 = vector.load %arg16[%c0_158, %c0_159] : memref<16x288xf32, #tpu.memory_space<vmem>>, vector<16x288xf32>
    %c0_160 = arith.constant 0 : index
    %c0_161 = arith.constant 0 : index
    %119 = vector.load %arg6[%c0_160, %c0_161] : memref<288x32xf32, #tpu.memory_space<vmem>>, vector<288x32xf32>
    %cst_162 = arith.constant dense<0.000000e+00> : vector<16x32xf32>
    %120 = tpu.matmul %118, %119, %cst_162 {dimension_numbers = #tpu.dot_dimension_numbers<[1], [0], [0], [1], [0, 0, 1, 1], [], []>} : vector<16x288xf32>, vector<288x32xf32>, vector<16x32xf32> -> vector<16x32xf32>
    %c0_163 = arith.constant 0 : index
    %c0_164 = arith.constant 0 : index
    %121 = vector.load %arg7[%c0_163, %c0_164] : memref<1x32xf32, #tpu.memory_space<vmem>>, vector<1x32xf32>
    %122 = vector.broadcast %121 : vector<1x32xf32> to vector<16x32xf32>
    %123 = arith.addf %120, %122 : vector<16x32xf32>
    %cst_165 = arith.constant 0.000000e+00 : f32
    %124 = vector.broadcast %cst_165 : f32 to vector<16x32xf32>
    %125 = arith.maximumf %123, %124 : vector<16x32xf32>
    %126 = vector.shape_cast %125 : vector<16x32xf32> to vector<4x4x32xf32>
    %127 = vector.shape_cast %126 : vector<4x4x32xf32> to vector<2x2x4x32xf32>
    %cst_166 = arith.constant dense<0xFF800000> : vector<2x4x32xf32>
    %128 = vector.multi_reduction <maximumf>, %127, %cst_166 [1] : vector<2x2x4x32xf32> to vector<2x4x32xf32>
    %129 = vector.shape_cast %128 : vector<2x4x32xf32> to vector<2x2x2x32xf32>
    %cst_167 = arith.constant dense<0xFF800000> : vector<2x2x32xf32>
    %130 = vector.multi_reduction <maximumf>, %129, %cst_167 [2] : vector<2x2x2x32xf32> to vector<2x2x32xf32>
    %131 = vector.extract_strided_slice %130 {offsets = [0, 0, 0], sizes = [1, 1, 32], strides = [1, 1, 1]} : vector<2x2x32xf32> to vector<1x1x32xf32>
    %132 = vector.shape_cast %131 : vector<1x1x32xf32> to vector<1x32xf32>
    %c0_168 = arith.constant 0 : index
    %c0_169 = arith.constant 0 : index
    %133 = vector.load %arg17[%c0_168, %c0_169] : memref<1x128xf32, #tpu.memory_space<vmem>>, vector<1x32xf32>
    tpu.vector_store %arg17[%c0_168, %c0_169], %132 {strides = array<i32>} : memref<1x128xf32, #tpu.memory_space<vmem>>, vector<1x32xf32>,
    %134 = vector.extract_strided_slice %130 {offsets = [0, 1, 0], sizes = [1, 1, 32], strides = [1, 1, 1]} : vector<2x2x32xf32> to vector<1x1x32xf32>
    %135 = vector.shape_cast %134 : vector<1x1x32xf32> to vector<1x32xf32>
    %c0_170 = arith.constant 0 : index
    %c32_171 = arith.constant 32 : index
    %136 = vector.load %arg17[%c0_170, %c32_171] : memref<1x128xf32, #tpu.memory_space<vmem>>, vector<1x32xf32>
    tpu.vector_store %arg17[%c0_170, %c32_171], %135 {strides = array<i32>} : memref<1x128xf32, #tpu.memory_space<vmem>>, vector<1x32xf32>,
    %137 = vector.extract_strided_slice %130 {offsets = [1, 0, 0], sizes = [1, 1, 32], strides = [1, 1, 1]} : vector<2x2x32xf32> to vector<1x1x32xf32>
    %138 = vector.shape_cast %137 : vector<1x1x32xf32> to vector<1x32xf32>
    %c0_172 = arith.constant 0 : index
    %c64_173 = arith.constant 64 : index
    %139 = vector.load %arg17[%c0_172, %c64_173] : memref<1x128xf32, #tpu.memory_space<vmem>>, vector<1x32xf32>
    tpu.vector_store %arg17[%c0_172, %c64_173], %138 {strides = array<i32>} : memref<1x128xf32, #tpu.memory_space<vmem>>, vector<1x32xf32>,
    %140 = vector.extract_strided_slice %130 {offsets = [1, 1, 0], sizes = [1, 1, 32], strides = [1, 1, 1]} : vector<2x2x32xf32> to vector<1x1x32xf32>
    %141 = vector.shape_cast %140 : vector<1x1x32xf32> to vector<1x32xf32>
    %c0_174 = arith.constant 0 : index
    %c96_175 = arith.constant 96 : index
    %142 = vector.load %arg17[%c0_174, %c96_175] : memref<1x128xf32, #tpu.memory_space<vmem>>, vector<1x32xf32>
    tpu.vector_store %arg17[%c0_174, %c96_175], %141 {strides = array<i32>} : memref<1x128xf32, #tpu.memory_space<vmem>>, vector<1x32xf32>,
    %c0_176 = arith.constant 0 : index
    %c0_177 = arith.constant 0 : index
    %143 = vector.load %arg17[%c0_176, %c0_177] : memref<1x128xf32, #tpu.memory_space<vmem>>, vector<1x128xf32>
    %c0_178 = arith.constant 0 : index
    %c0_179 = arith.constant 0 : index
    %144 = vector.load %arg8[%c0_178, %c0_179] : memref<128x10xf32, #tpu.memory_space<vmem>>, vector<128x10xf32>
    %cst_180 = arith.constant dense<0.000000e+00> : vector<1x10xf32>
    %145 = tpu.matmul %143, %144, %cst_180 {dimension_numbers = #tpu.dot_dimension_numbers<[1], [0], [0], [1], [0, 0, 1, 1], [], []>} : vector<1x128xf32>, vector<128x10xf32>, vector<1x10xf32> -> vector<1x10xf32>
    %c0_181 = arith.constant 0 : index
    %c0_182 = arith.constant 0 : index
    %146 = vector.load %arg9[%c0_181, %c0_182] : memref<1x10xf32, #tpu.memory_space<vmem>>, vector<1x10xf32>
    %147 = arith.addf %145, %146 : vector<1x10xf32>
    %c0_183 = arith.constant 0 : index
    %c0_184 = arith.constant 0 : index
    %c0_185 = arith.constant 0 : index
    %148 = vector.load %arg10[%c0_183, %c0_184, %c0_185] : memref<1x1x10xf32, #tpu.memory_space<vmem>>, vector<1x1x10xf32>
    %149 = vector.shape_cast %148 : vector<1x1x10xf32> to vector<1x10xf32>
    %150 = vector.shape_cast %147 : vector<1x10xf32> to vector<1x1x10xf32>
    tpu.vector_store %arg10[%c0_183, %c0_184, %c0_185], %150 {strides = array<i32>} : memref<1x1x10xf32, #tpu.memory_space<vmem>>, vector<1x1x10xf32>,
    return
  }
  func.func @transform_0(%arg0: i32) -> (i32, i32, i32, i32) {
    %c0_i32 = arith.constant 0 : i32
    %c0_i32_0 = arith.constant 0 : i32
    %c0_i32_1 = arith.constant 0 : i32
    %c0_i32_2 = arith.constant 0 : i32
    return %arg0, %c0_i32, %c0_i32_0, %c0_i32_1 : i32, i32, i32, i32
  }
  func.func @transform_1(%arg0: i32) -> (i32, i32) {
    %c0_i32 = arith.constant 0 : i32
    %c0_i32_0 = arith.constant 0 : i32
    %c0_i32_1 = arith.constant 0 : i32
    return %c0_i32, %c0_i32_0 : i32, i32
  }
  func.func @transform_2(%arg0: i32) -> (i32, i32) {
    %c0_i32 = arith.constant 0 : i32
    %c0_i32_0 = arith.constant 0 : i32
    %c0_i32_1 = arith.constant 0 : i32
    return %c0_i32, %c0_i32_0 : i32, i32
  }
  func.func @transform_3(%arg0: i32) -> (i32, i32) {
    %c0_i32 = arith.constant 0 : i32
    %c0_i32_0 = arith.constant 0 : i32
    %c0_i32_1 = arith.constant 0 : i32
    return %c0_i32, %c0_i32_0 : i32, i32
  }
  func.func @transform_4(%arg0: i32) -> (i32, i32) {
    %c0_i32 = arith.constant 0 : i32
    %c0_i32_0 = arith.constant 0 : i32
    %c0_i32_1 = arith.constant 0 : i32
    return %c0_i32, %c0_i32_0 : i32, i32
  }
  func.func @transform_5(%arg0: i32) -> (i32, i32) {
    %c0_i32 = arith.constant 0 : i32
    %c0_i32_0 = arith.constant 0 : i32
    %c0_i32_1 = arith.constant 0 : i32
    return %c0_i32, %c0_i32_0 : i32, i32
  }
  func.func @transform_6(%arg0: i32) -> (i32, i32) {
    %c0_i32 = arith.constant 0 : i32
    %c0_i32_0 = arith.constant 0 : i32
    %c0_i32_1 = arith.constant 0 : i32
    return %c0_i32, %c0_i32_0 : i32, i32
  }
  func.func @transform_7(%arg0: i32) -> (i32, i32) {
    %c0_i32 = arith.constant 0 : i32
    %c0_i32_0 = arith.constant 0 : i32
    %c0_i32_1 = arith.constant 0 : i32
    return %c0_i32, %c0_i32_0 : i32, i32
  }
  func.func @transform_8(%arg0: i32) -> (i32, i32) {
    %c0_i32 = arith.constant 0 : i32
    %c0_i32_0 = arith.constant 0 : i32
    %c0_i32_1 = arith.constant 0 : i32
    return %c0_i32, %c0_i32_0 : i32, i32
  }
  func.func @transform_9(%arg0: i32) -> (i32, i32, i32) {
    %c0_i32 = arith.constant 0 : i32
    %c0_i32_0 = arith.constant 0 : i32
    %c0_i32_1 = arith.constant 0 : i32
    return %arg0, %c0_i32, %c0_i32_0 : i32, i32, i32
  }
}

</mosaic_0001>

<bundles_post_ra>
// kernel: _lambda_.1
= control target key start
LH: loop header
LB: loop body
LE: loop exit
PB: predicated region body
PF: predicated region fallthrough
CT: control target
= control target key end

     0   :  { %14 = vsyncpa [#allocation10], 0  ;;  %s7367_s0 = inlined_call_operand.vmem [shape: f32[2,16,16,4], index: 0, kind: input, shape index: {}]   ;;  %s7368_s1 = inlined_call_operand.vmem [shape: f32[36,16], index: 1, kind: input, shape index: {}]   ;;  %s7369_s2 = inlined_call_operand.vmem [shape: f32[1,16], index: 2, kind: input, shape index: {}]   ;;  %s7370_s3 = inlined_call_operand.vmem [shape: f32[144,32], index: 3, kind: input, shape index: {}]   ;;  %s7371_s4 = inlined_call_operand.vmem [shape: f32[1,32], index: 4, kind: input, shape index: {}]   ;;  %s7372_s5 = inlined_call_operand.vmem [shape: f32[288,32], index: 5, kind: input, shape index: {}]   ;;  %s7373_s6 = inlined_call_operand.vmem [shape: f32[1,32], index: 6, kind: input, shape index: {}]   ;;  %s7374_s7 = inlined_call_operand.vmem [shape: f32[128,10], index: 7, kind: input, shape index: {}]   ;;  %s7375_s8 = inlined_call_operand.vmem [shape: f32[1,10], index: 8, kind: input, shape index: {}]   ;;  %s7376_s9 = inlined_call_operand.hbm [shape: f32[2,1,10], index: 9, kind: output, shape index: {}]  }
   0x1   :  { %16 = vsyncpa [#allocation10 + $0x1], 0  ;;  %s5461_s30 = smov 0   ;;  %s5463_s10 = smov 0  }
   0x2   :  { %s5465_s11 = smov 0   ;;  %s5467_s12 = smov 0  }
   0x3 LB: > { %s5482_s13 = sadd.s32 4294967295, %s5391_s12   ;;  %s4890_s14 = sadd.s32 4294967294, %s5391_s12   ;;  %s5391_s12 = sphi %s5467_s12, %s7559_s12   ;;  %s5387_s11 = sphi %s5465_s11, %s7558_s11   ;;  %s5383_s10 = sphi %s5463_s10, %s7557_s10   ;;  %s5379_s30 = sphi %s5461_s30, %s7556_s30  }
   0x4   : > { %s5486_s15 = sadd.s32 1, %s5391_s12   ;;  %s223_s16 = sadd.s32 1, %s5387_s11 }
   0x5   : > { %s220_s17 = ssub.s32 %s5391_s12, %s5486_s15  ;;  %p233_p0 = scmp.ne.s32.totalorder %s5387_s11, %s5383_s10 }
   0x6   : > { %p221_p1 = scmp.eq.s32.totalorder %s220_s17, 0  ;;  %p234_p2 = scmp.eq.s32.totalorder %s5482_s13, 1 }
   0x7   : > { %p239_p3 = scmp.ne.s32.totalorder %s5383_s10, %s5379_s30  ;;  %p240_p4 = scmp.eq.s32.totalorder %s4890_s14, 1 }
   0x8   : > { %s5497_s18 = scalar_select %p221_p1, %s5387_s11, %s223_s16  }
   0x9   : > { %p5499_p5 = por %p234_p2, %p233_p0  ;;  %p5503_p6 = por %p240_p4, %p239_p3 }
   0xa   : > { %p4893_p7 = scmp.ge.s32.totalorder %s5391_s12, 1  ;;  %p290_p8 = scmp.lt.s32.totalorder %s5391_s12, 3 }
   0xc   : > { %p291_p9 = pnand %p4893_p7, %p290_p8 }
   0xd   : > { %vm362_vm0 = vcmask (!%p291_p9), 31744   ;;  %vm365_vm1 = vcmask (!%p291_p9), 25600   ;;  %v5393_v0 = vmov (!%p291_p9), 0.0   ;;  %p325_p10 = scmp.lt.s32.totalorder (!%p291_p9), %s5482_s13, 1  ;;  %s7377_s26 = smov (!%p291_p9), 8   ;;  %v2092_v38 = vld [vmem:[%s7368_s1] sm:$0xff] (!%p291_p9) }
   0xe   : > { %294 = sbr.rel (%p291_p9) target bundleno = 2038 (0x7f6), region = 56  ;;  %363 = vst.msk [vmem:[#allocation2] sm:$0xff] (!%p291_p9), %vm362_vm0, %v5393_v0  ;;  %364 = vst.msk [vmem:[#allocation2 + $0x8] sm:$0xff] (!%p291_p9), %vm362_vm0, %v5393_v0  ;;  %s7381_s27 = smov (!%p291_p9), 4   ;;  %v2093_v39 = vld [vmem:[%s7368_s1 + $0x8] sm:$0xff] (!%p291_p9)  ;;  %v2094_v41 = vld [vmem:[%s7368_s1 + $0x10] sm:$0xff] (!%p291_p9) }
   0xf   : > { %367 = vst.msk [vmem:[#allocation2 + $0x18] sm:$0xff] (!%p291_p9), %vm362_vm0, %v5393_v0  ;;  %368 = vst.msk [vmem:[#allocation2 + $0x20] sm:$0xff] (!%p291_p9), %vm362_vm0, %v5393_v0  ;;  %s5396_s28 = smov (!%p291_p9), 12   ;;  %s5397_s29 = smov (!%p291_p9), 16   ;;  %v5148_v40 = vpack.c.bf16 (!%p291_p9), %v2093_v39, %v2092_v38  ;;  %v2095_v42 = vld [vmem:[%s7368_s1 + $0x18] sm:$0xff] (!%p291_p9)  ;;  %vm2201_vm2 = vcmask (!%p291_p9), 1043456  }
  0x10   : > { %370 = vst.msk [vmem:[#allocation2 + $0x30] sm:$0xff] (!%p291_p9), %vm362_vm0, %v5393_v0  ;;  %371 = vst.msk [vmem:[#allocation2 + $0x38] sm:$0xff] (!%p291_p9), %vm362_vm0, %v5393_v0  ;;  %s7379_s14 = smov (!%p291_p9), 20   ;;  %s5399_s16 = smov (!%p291_p9), 24   ;;  %v5152_v43 = vpack.c.bf16 (!%p291_p9), %v2095_v42, %v2094_v41  ;;  %v2096_v46 = vld [vmem:[%s7368_s1 + $0x20] sm:$0xf] (!%p291_p9) }
  0x11   : > { %373 = vst.msk [vmem:[#allocation2 + $0x48] sm:$0xff] (!%p291_p9), %vm362_vm0, %v5393_v0  ;;  %374 = vst.msk [vmem:[#allocation2 + $0x50] sm:$0xff] (!%p291_p9), %vm362_vm0, %v5393_v0  ;;  %s5400_s24 = smov (!%p291_p9), 28   ;;  %5149 = vmatprep.subr.bf16.mxu0 (!%p291_p9), %v5148_v40  ;;  %5247 = vmatprep.subr.bf16.mxu1 (!%p291_p9), %v5148_v40  ;;  %s7402_s23 = smov (!%p291_p9), 8   ;;  %vm675_vm3 = vcmask (!%p291_p9), 64544   ;;  %vm868_vm4 = vcmask (!%p291_p9), 97344  }
  0x12   : > { %376 = vst.msk [vmem:[#allocation2 + $0x60] sm:$0xff] (!%p291_p9), %vm362_vm0, %v5393_v0  ;;  %377 = vst.msk [vmem:[#allocation2 + $0x68] sm:$0xff] (!%p291_p9), %vm362_vm0, %v5393_v0  ;;  %5151 = vmatpush3.bf16.msra.mxu0 (!%p291_p9), %v5148_v40  ;;  %5250 = vmatpush3.bf16.msra.mxu1 (!%p291_p9), %v5148_v40  ;;  %vm1061_vm5 = vcmask (!%p291_p9), 130144   ;;  %vm1254_vm6 = vcmask (!%p291_p9), 162944   ;;  %vm1447_vm7 = vcmask (!%p291_p9), 195744   ;;  %vm1641_vm8 = vcmask (!%p291_p9), 228544  }
  0x13   : > { %379 = vst.msk [vmem:[#allocation2 + $0x78] sm:$0xff] (!%p291_p9), %vm362_vm0, %v5393_v0  ;;  %380 = vst.msk [vmem:[#allocation2 + $0x80] sm:$0xff] (!%p291_p9), %vm362_vm0, %v5393_v0  ;;  %5153 = vmatprep.subr.bf16.mxu0 (!%p291_p9), %v5152_v43  ;;  %5248 = vmatprep.subr.bf16.mxu1 (!%p291_p9), %v5152_v43  ;;  %vm7386_vm9 = vcmask (!%p291_p9), 261344   ;;  %vm2027_vm10 = vcmask (!%p291_p9), 294144   ;;  %vm2104_vm11 = vcmask (!%p291_p9), 293888   ;;  %vm7385_vm12 = vcmask (!%p291_p9), 130048  }
  0x14   : > { %382 = vst.msk [vmem:[#allocation2 + $0x90] sm:$0xff] (!%p291_p9), %vm362_vm0, %v5393_v0  ;;  %383 = vst.msk [vmem:[#allocation2 + $0x98] sm:$0xff] (!%p291_p9), %vm362_vm0, %v5393_v0  ;;  %vm7383_vm13 = vcmask (!%p291_p9), 123904   ;;  %vm7384_vm14 = vcmask (!%p291_p9), 1041409   ;;  %vm3398_vm15 = vcmask (!%p291_p9), 1042434   ;;  %s7396_s17 = smov (!%p291_p9), 96  }
  0x15   : > { %385 = vst.msk [vmem:[#allocation2 + $0xa8] sm:$0xff] %vm362_vm0, %v5393_v0  ;;  %386 = vst.msk [vmem:[#allocation2 + $0xb0] sm:$0xff] %vm362_vm0, %v5393_v0  ;;  %s326_s21 = scalar_select %p325_p10, %s5482_s13, 1  ;;  %v708_v4 = vld [vmem:[#allocation2 + $0x2] sm:$0xff] }
  0x16   : > { %388 = vst.msk [vmem:[#allocation2 + $0xc0] sm:$0xff] %vm362_vm0, %v5393_v0  ;;  %389 = vst.msk [vmem:[#allocation2 + $0xc8] sm:$0xff] %vm362_vm0, %v5393_v0  ;;  %v515_v5 = vld [vmem:[#allocation2 + $0x1] sm:$0xff]  ;;  %772 = vrot.lane.b32.xlu1 %v708_v4, %s7377_s26  ;;  %5155 = vmatpush3.bf16.msra.mxu0 %v5152_v43 }
  0x17   : > { %391 = vst.msk [vmem:[#allocation2 + $0xd8] sm:$0xff] %vm362_vm0, %v5393_v0  ;;  %392 = vst.msk [vmem:[#allocation2 + $0xe0] sm:$0xff] %vm362_vm0, %v5393_v0  ;;  %s4945_s22 = sshll.u32 %s326_s21, 8  ;;  %579 = vrot.lane.b32.xlu0 %v515_v5, %s7381_s27  ;;  %v451_v14 = vld [vmem:[#allocation2] sm:$0xff]  ;;  %v452_v15 = vld [vmem:[#allocation2 + $0x8] sm:$0xff]  ;;  %5251 = vmatpush3.bf16.msra.mxu1 %v5152_v43  ;;  %s7400_s21 = smov 4  }
  0x18   : > { %394 = vst.msk [vmem:[#allocation2 + $0xf0] sm:$0xff] %vm362_vm0, %v5393_v0  ;;  %395 = vst.msk [vmem:[#allocation2 + $0xf8] sm:$0xff] %vm362_vm0, %v5393_v0  ;;  %s5622_s25 = scalar_lea.vmem %s7367_s0, %s4945_s22  ;;  %5052 = vmatprep.subr.msk.mxu0 %vm2201_vm2, %v2096_v46  ;;  %5249 = vmatprep.subr.msk.mxu1 %vm2201_vm2, %v2096_v46  ;;  %s7401_s22 = smov 20  }
  0x19   : > { %397 = vst.msk [vmem:[#allocation2 + $0x108] sm:$0xff] %vm362_vm0, %v5393_v0  ;;  %398 = vst.msk [vmem:[#allocation2 + $0x110] sm:$0xff] %vm362_vm0, %v5393_v0  ;;  %v330_v1 = vld [vmem:[%s5622_s25] sm:$0xff]  ;;  %v331_v2 = vld [vmem:[%s5622_s25 + $0x8] sm:$0xff] }
  0x1a   : > { %400 = vst.msk [vmem:[#allocation2 + $0x120] sm:$0xff] %vm362_vm0, %v5393_v0  ;;  %401 = vst.msk [vmem:[#allocation2 + $0x128] sm:$0xff] %vm362_vm0, %v5393_v0  ;;  %v332_v3 = vld [vmem:[%s5622_s25 + $0x10] sm:$0xff]  ;;  %v333_v8 = vld [vmem:[%s5622_s25 + $0x18] sm:$0xff]  ;;  %5053 = vmatpush3.msk.msra.mxu0 %vm2201_vm2, %v2096_v46 }
  0x1b   : > { %403 = vst.msk [vmem:[#allocation2 + $0x138] sm:$0xff] %vm362_vm0, %v5393_v0  ;;  %404 = vst.msk [vmem:[#allocation2 + $0x140] sm:$0xff] %vm362_vm0, %v5393_v0  ;;  %v334_v9 = vld [vmem:[%s5622_s25 + $0x20] sm:$0xff]  ;;  %v335_v10 = vld [vmem:[%s5622_s25 + $0x28] sm:$0xff]  ;;  %5252 = vmatpush3.msk.msra.mxu1 %vm2201_vm2, %v2096_v46  ;;  %vm7389_vm2 = vcmask 1045509  }
  0x1c   : > { %406 = vst.msk [vmem:[#allocation2 + $0x150] sm:$0xff] %vm362_vm0, %v5393_v0  ;;  %407 = vst.msk [vmem:[#allocation2 + $0x158] sm:$0xff] %vm362_vm0, %v5393_v0  ;;  %v336_v11 = vld [vmem:[%s5622_s25 + $0x30] sm:$0xff]  ;;  %v337_v12 = vld [vmem:[%s5622_s25 + $0x38] sm:$0xff] }
  0x1d   : > { %409 = vst.msk [vmem:[#allocation2 + $0x168] sm:$0xff] %vm362_vm0, %v5393_v0  ;;  %410 = vst.msk [vmem:[#allocation2 + $0x170] sm:$0xff] %vm362_vm0, %v5393_v0  ;;  %v344_v13 = vld [vmem:[%s5622_s25 + $0x70] sm:$0xff]  ;;  %v345_v16 = vld [vmem:[%s5622_s25 + $0x78] sm:$0xff] }
  0x1e   : > { %412 = vst.msk [vmem:[#allocation2 + $0x180] sm:$0xff] %vm362_vm0, %v5393_v0  ;;  %413 = vst.msk [vmem:[#allocation2 + $0x188] sm:$0xff] %vm362_vm0, %v5393_v0  ;;  %v338_v17 = vld [vmem:[%s5622_s25 + $0x40] sm:$0xff]  ;;  %v339_v19 = vld [vmem:[%s5622_s25 + $0x48] sm:$0xff] }
  0x1f   : > { %415 = vst.msk [vmem:[#allocation2 + $0x198] sm:$0xff] %vm362_vm0, %v5393_v0  ;;  %416 = vst.msk [vmem:[#allocation2 + $0x1a0] sm:$0xff] %vm362_vm0, %v5393_v0  ;;  %v346_v18 = vld [vmem:[%s5622_s25 + $0x80] sm:$0xff]  ;;  %v347_v34 = vld [vmem:[%s5622_s25 + $0x88] sm:$0xff] }
  0x20   : > { %366 = vst.msk [vmem:[#allocation2 + $0x10] sm:$0x3] %vm365_vm1, %v5393_v0  ;;  %369 = vst.msk [vmem:[#allocation2 + $0x28] sm:$0x3] %vm365_vm1, %v5393_v0  ;;  %v340_v47 = vld [vmem:[%s5622_s25 + $0x50] sm:$0xff]  ;;  %v341_v52 = vld [vmem:[%s5622_s25 + $0x58] sm:$0xff] }
  0x21   : > { %372 = vst.msk [vmem:[#allocation2 + $0x40] sm:$0x3] %vm365_vm1, %v5393_v0  ;;  %375 = vst.msk [vmem:[#allocation2 + $0x58] sm:$0x3] %vm365_vm1, %v5393_v0  ;;  %v348_v48 = vld [vmem:[%s5622_s25 + $0x90] sm:$0xff]  ;;  %v349_v53 = vld [vmem:[%s5622_s25 + $0x98] sm:$0xff] }
  0x22   : > { %378 = vst.msk [vmem:[#allocation2 + $0x70] sm:$0x3] %vm365_vm1, %v5393_v0  ;;  %381 = vst.msk [vmem:[#allocation2 + $0x88] sm:$0x3] %vm365_vm1, %v5393_v0  ;;  %v350_v4 = vld [vmem:[%s5622_s25 + $0xa0] sm:$0xff] }
  0x23   : > { %384 = vst.msk [vmem:[#allocation2 + $0xa0] sm:$0x3] %vm365_vm1, %v5393_v0  ;;  %387 = vst.msk [vmem:[#allocation2 + $0xb8] sm:$0x3] %vm365_vm1, %v5393_v0 }
  0x24   : > { %390 = vst.msk [vmem:[#allocation2 + $0xd0] sm:$0x3] %vm365_vm1, %v5393_v0  ;;  %393 = vst.msk [vmem:[#allocation2 + $0xe8] sm:$0x3] %vm365_vm1, %v5393_v0 }
  0x25   : > { %396 = vst.msk [vmem:[#allocation2 + $0x100] sm:$0x3] %vm365_vm1, %v5393_v0  ;;  %399 = vst.msk [vmem:[#allocation2 + $0x118] sm:$0x3] %vm365_vm1, %v5393_v0 }
  0x26   : > { %402 = vst.msk [vmem:[#allocation2 + $0x130] sm:$0x3] %vm365_vm1, %v5393_v0  ;;  %405 = vst.msk [vmem:[#allocation2 + $0x148] sm:$0x3] %vm365_vm1, %v5393_v0 }
  0x27   : > { %408 = vst.msk [vmem:[#allocation2 + $0x160] sm:$0x3] %vm365_vm1, %v5393_v0  ;;  %411 = vst.msk [vmem:[#allocation2 + $0x178] sm:$0x3] %vm365_vm1, %v5393_v0  ;;  %v709_v6 = vld [vmem:[#allocation2 + $0xa] sm:$0xff] }
  0x28   : > { %414 = vst.msk [vmem:[#allocation2 + $0x190] sm:$0x3] %vm365_vm1, %v5393_v0  ;;  %417 = vst.msk [vmem:[#allocation2 + $0x1a8] sm:$0x3] %vm365_vm1, %v5393_v0  ;;  %v516_v7 = vld [vmem:[#allocation2 + $0x9] sm:$0xff]  ;;  %774 = vrot.lane.b32.xlu1 %v709_v6, %s7377_s26  ;;  %vm3402_vm1 = vcmask 1044484  }
  0x29   : > { %419 = vst.msk [vmem:[#allocation2 + $0x19] sm:$0xff] %vm362_vm0, %v330_v1  ;;  %420 = vst.msk [vmem:[#allocation2 + $0x21] sm:$0xff] %vm362_vm0, %v331_v2  ;;  %581 = vrot.lane.b32.xlu0 %v516_v7, %s7381_s27 }
  0x2a   : > { %421 = vst.msk [vmem:[#allocation2 + $0x31] sm:$0xff] %vm362_vm0, %v332_v3  ;;  %422 = vst.msk [vmem:[#allocation2 + $0x39] sm:$0xff] %vm362_vm0, %v333_v8  ;;  %v342_v3 = vld [vmem:[%s5622_s25 + $0x60] sm:$0xff] }
  0x2b   : > { %423 = vst.msk [vmem:[#allocation2 + $0x49] sm:$0xff] %vm362_vm0, %v334_v9  ;;  %424 = vst.msk [vmem:[#allocation2 + $0x51] sm:$0xff] %vm362_vm0, %v335_v10 }
  0x2c   : > { %425 = vst.msk [vmem:[#allocation2 + $0x61] sm:$0xff] %vm362_vm0, %v336_v11  ;;  %426 = vst.msk [vmem:[#allocation2 + $0x69] sm:$0xff] %vm362_vm0, %v337_v12 }
  0x2d   : > { %433 = vst.msk [vmem:[#allocation2 + $0xc1] sm:$0xff] %vm362_vm0, %v344_v13  ;;  %483 = vst.msk [vmem:[#allocation3] sm:$0xff] %vm362_vm0, %v451_v14  ;;  %v343_v13 = vld [vmem:[%s5622_s25 + $0x68] sm:$0xff] }
  0x2e   : > { %484 = vst.msk [vmem:[#allocation3 + $0x8] sm:$0xff] %vm362_vm0, %v452_v15  ;;  %434 = vst.msk [vmem:[#allocation2 + $0xc9] sm:$0xff] %vm362_vm0, %v345_v16  ;;  %v351_v14 = vld [vmem:[%s5622_s25 + $0xa8] sm:$0xff] }
  0x2f   : > { %427 = vst.msk [vmem:[#allocation2 + $0x79] sm:$0xff] %vm362_vm0, %v338_v17  ;;  %435 = vst.msk [vmem:[#allocation2 + $0xd9] sm:$0xff] %vm362_vm0, %v346_v18 }
  0x30   : > { %428 = vst.msk [vmem:[#allocation2 + $0x81] sm:$0xff] %vm362_vm0, %v339_v19  ;;  %v902_v20 = vld [vmem:[#allocation2 + $0x20] sm:$0xff]  ;;  %v901_v21 = vld [vmem:[#allocation2 + $0x18] sm:$0xff]  ;;  %436 = vst.msk [vmem:[#allocation2 + $0xe1] sm:$0xff] %vm362_vm0, %v347_v34 }
  0x31   : > { %485 = vst.msk [vmem:[#allocation3 + $0x10] sm:$0xff] %vm362_vm0, %v901_v21  ;;  %486 = vst.msk [vmem:[#allocation3 + $0x18] sm:$0xff] %vm362_vm0, %v902_v20  ;;  %967 = vrot.lane.b32.xlu1 %v902_v20, %s5396_s28  ;;  %965 = vrot.lane.b32.xlu0 %v901_v21, %s5396_s28  ;;  %v1481_v22 = vld [vmem:[#allocation2 + $0x30] sm:$0xff]  ;;  %v1482_v23 = vld [vmem:[#allocation2 + $0x38] sm:$0xff] }
  0x32   : > { %v1094_v24 = vld [vmem:[#allocation2 + $0x19] sm:$0xff]  ;;  %487 = vst.msk [vmem:[#allocation3 + $0x20] sm:$0xff] %vm362_vm0, %v1481_v22  ;;  %488 = vst.msk [vmem:[#allocation3 + $0x28] sm:$0xff] %vm362_vm0, %v1482_v23  ;;  %v5662_v25 = vld [vmem:[#allocation2 + $0x48] sm:$0xff] }
  0x33   : > { %v5664_v26 = vld [vmem:[#allocation2 + $0x50] sm:$0xff]  ;;  %489 = vst.msk [vmem:[#allocation3 + $0x30] sm:$0xff] %vm362_vm0, %v5662_v25  ;;  %v5672_v27 = vld [vmem:[#allocation2 + $0x60] sm:$0xff]  ;;  %v5674_v28 = vld [vmem:[#allocation2 + $0x68] sm:$0xff] }
  0x34   : > { %490 = vst.msk [vmem:[#allocation3 + $0x38] sm:$0xff] %vm362_vm0, %v5664_v26  ;;  %v1095_v29 = vld [vmem:[#allocation2 + $0x21] sm:$0xff]  ;;  %491 = vst.msk [vmem:[#allocation3 + $0x40] sm:$0xff] %vm362_vm0, %v5672_v27  ;;  %v1674_v37 = vld [vmem:[#allocation2 + $0x31] sm:$0xff] }
  0x35   : > { %1158 = vrot.lane.b32.xlu0 %v1094_v24, %s5397_s29  ;;  %583 = vrot.lane.b32.xlu1 %v1094_v24, %s7381_s27  ;;  %v1287_v30 = vld [vmem:[#allocation2 + $0x1a] sm:$0xff]  ;;  %492 = vst.msk [vmem:[#allocation3 + $0x48] sm:$0xff] %vm362_vm0, %v5674_v28  ;;  %v1288_v35 = vld [vmem:[#allocation2 + $0x22] sm:$0xff]  ;;  %v1867_v45 = vld [vmem:[#allocation2 + $0x32] sm:$0xff] }
  0x36   : > { %v5680_v31 = vld [vmem:[#allocation2 + $0x78] sm:$0xff]  ;;  %429 = vst.msk [vmem:[#allocation2 + $0x91] sm:$0xff] %vm362_vm0, %v340_v47  ;;  %437 = vst.msk [vmem:[#allocation2 + $0xf1] sm:$0xff] %vm362_vm0, %v348_v48  ;;  %v1676_v54 = vld [vmem:[#allocation2 + $0x49] sm:$0xff] }
  0x37   : > { %v5682_v32 = vld [vmem:[#allocation2 + $0xd8] sm:$0xff]  ;;  %v5686_v33 = vld [vmem:[#allocation2 + $0x80] sm:$0xff]  ;;  %493 = vst.msk [vmem:[#allocation3 + $0x50] sm:$0xff] %vm362_vm0, %v5680_v31  ;;  %430 = vst.msk [vmem:[#allocation2 + $0x99] sm:$0xff] %vm362_vm0, %v341_v52 }
  0x38   : > { %501 = vst.msk [vmem:[#allocation3 + $0x90] sm:$0xff] %vm362_vm0, %v5682_v32  ;;  %494 = vst.msk [vmem:[#allocation3 + $0x58] sm:$0xff] %vm362_vm0, %v5686_v33  ;;  %v5700_v36 = vld [vmem:[#allocation2 + $0xe0] sm:$0xff]  ;;  %v1677_v57 = vld [vmem:[#allocation2 + $0x51] sm:$0xff] }
  0x39   : > { %1160 = vrot.lane.b32.xlu0 %v1095_v29, %s5397_s29  ;;  %1351 = vrot.lane.b32.xlu1 %v1287_v30, %s7379_s14  ;;  %502 = vst.msk [vmem:[#allocation3 + $0x98] sm:$0xff] %vm362_vm0, %v5700_v36  ;;  %v1675_v44 = vld [vmem:[#allocation2 + $0x39] sm:$0xff]  ;;  %438 = vst.msk [vmem:[#allocation2 + $0xf9] sm:$0xff] %vm362_vm0, %v349_v53  ;;  %v1869_v58 = vld [vmem:[#allocation2 + $0x4a] sm:$0xff] }
  0x3a   : > { %v1868_v49 = vld [vmem:[#allocation2 + $0x3a] sm:$0xff]  ;;  %v1870_v59 = vld [vmem:[#allocation2 + $0x52] sm:$0xff]  ;;  %v1679_v62 = vld [vmem:[#allocation2 + $0x69] sm:$0xff]  ;;  %431 = vst.msk [vmem:[#allocation2 + $0xa9] sm:$0xff] %vm362_vm0, %v342_v3 }
  0x3b   : > { %v1678_v60 = vld [vmem:[#allocation2 + $0x61] sm:$0xff]  ;;  %439 = vst.msk [vmem:[#allocation2 + $0x109] sm:$0xff] %vm362_vm0, %v350_v4  ;;  %v1872_v5 = vld [vmem:[#allocation2 + $0x6a] sm:$0xff]  ;;  %432 = vst.msk [vmem:[#allocation2 + $0xb1] sm:$0xff] %vm362_vm0, %v343_v13 }
  0x3c   : > { %v5783_v61 = vld [vmem:[#allocation2 + $0xc0] sm:$0xff]  ;;  %v5795_v1 = vld [vmem:[#allocation2 + $0xc8] sm:$0xff]  ;;  %440 = vst.msk [vmem:[#allocation2 + $0x111] sm:$0xff] %vm362_vm0, %v351_v14 }
  0x3d   : > { %585 = vrot.lane.b32.xlu0 %v1095_v29, %s7381_s27  ;;  %776 = vrot.lane.b32.xlu1 %v1287_v30, %s7377_s26  ;;  %v5735_v50 = vld [vmem:[#allocation2 + $0x90] sm:$0xff]  ;;  %499 = vst.msk [vmem:[#allocation3 + $0x80] sm:$0xff] %vm362_vm0, %v5783_v61  ;;  %v1871_v63 = vld [vmem:[#allocation2 + $0x62] sm:$0xff]  ;;  %500 = vst.msk [vmem:[#allocation3 + $0x88] sm:$0xff] %vm362_vm0, %v5795_v1 }
  0x3e   : > { %v5737_v51 = vld [vmem:[#allocation2 + $0xf0] sm:$0xff]  ;;  %495 = vst.msk [vmem:[#allocation3 + $0x60] sm:$0xff] %vm362_vm0, %v5735_v50  ;;  %v5755_v55 = vld [vmem:[#allocation2 + $0x98] sm:$0xff]  ;;  %v531_v2 = vld [vmem:[#allocation2 + $0xc1] sm:$0xff] }
  0x3f   : > { %503 = vst.msk [vmem:[#allocation3 + $0xa0] sm:$0xff] %vm362_vm0, %v5737_v51  ;;  %496 = vst.msk [vmem:[#allocation3 + $0x68] sm:$0xff] %vm362_vm0, %v5755_v55  ;;  %v532_v10 = vld [vmem:[#allocation2 + $0xc9] sm:$0xff]  ;;  %v1681_v34 = vld [vmem:[#allocation2 + $0x81] sm:$0xff] }
  0x40   : > { %v5757_v56 = vld [vmem:[#allocation2 + $0xf8] sm:$0xff]  ;;  %v724_v15 = vld [vmem:[#allocation2 + $0xc2] sm:$0xff]  ;;  %3312 = vst.msk [vmem:[#allocation4] sm:$0xff] %vm7385_vm12, %v5393_v0  ;;  %3314 = vst.msk [vmem:[#allocation4 + $0x10] sm:$0xff] %vm7385_vm12, %v5393_v0 }
  0x41   : > { %1353 = vrot.lane.b32.xlu0 %v1288_v35, %s7379_s14  ;;  %1545 = vrot.lane.b32.xlu1 %v1481_v22, %s5399_s16  ;;  %504 = vst.msk [vmem:[#allocation3 + $0xa8] sm:$0xff] %vm362_vm0, %v5757_v56  ;;  %v5808_v8 = vld [vmem:[#allocation2 + $0xa8] sm:$0xff]  ;;  %v1690_v14 = vld [vmem:[#allocation2 + $0xf1] sm:$0xff]  ;;  %s7390_s14 = smov 112  }
  0x42   : > { %v5810_v9 = vld [vmem:[#allocation2 + $0x108] sm:$0xff]  ;;  %497 = vst.msk [vmem:[#allocation3 + $0x70] sm:$0xff] %vm362_vm0, %v5808_v8  ;;  %v5833_v20 = vld [vmem:[#allocation2 + $0xb0] sm:$0xff] }
  0x43   : > { %505 = vst.msk [vmem:[#allocation3 + $0xb0] sm:$0xff] %vm362_vm0, %v5810_v9  ;;  %v5835_v21 = vld [vmem:[#allocation2 + $0x110] sm:$0xff]  ;;  %498 = vst.msk [vmem:[#allocation3 + $0x78] sm:$0xff] %vm362_vm0, %v5833_v20  ;;  %v1111_v41 = vld [vmem:[#allocation2 + $0xe1] sm:$0xff] }
  0x44   : > { %506 = vst.msk [vmem:[#allocation3 + $0xb8] sm:$0xff] %vm362_vm0, %v5835_v21 }
  0x45   : > { %778 = vrot.lane.b32.xlu0 %v1288_v35, %s7377_s26  ;;  %969 = vrot.lane.b32.xlu1 %v1481_v22, %s5396_s28  ;;  %s5401_s26 = smov 32   ;;  %v725_v22 = vld [vmem:[#allocation2 + $0xca] sm:$0xff]  ;;  %3316 = vst.msk [vmem:[#allocation4 + $0x20] sm:$0xff] %vm7385_vm12, %v5393_v0  ;;  %3318 = vst.msk [vmem:[#allocation4 + $0x30] sm:$0xff] %vm7385_vm12, %v5393_v0 }
  0x46   : > { %3320 = vst.msk [vmem:[#allocation4 + $0x40] sm:$0xff] %vm7385_vm12, %v5393_v0  ;;  %3322 = vst.msk [vmem:[#allocation4 + $0x50] sm:$0xff] %vm7385_vm12, %v5393_v0 }
  0x47   : > { %3324 = vst.msk [vmem:[#allocation4 + $0x60] sm:$0xff] %vm7385_vm12, %v5393_v0  ;;  %3326 = vst.msk [vmem:[#allocation4 + $0x70] sm:$0xff] %vm7385_vm12, %v5393_v0 }
  0x48   : > { %3328 = vst.msk [vmem:[#allocation4 + $0x80] sm:$0xff] %vm7385_vm12, %v5393_v0  ;;  %3330 = vst.msk [vmem:[#allocation4 + $0x90] sm:$0xff] %vm7385_vm12, %v5393_v0 }
  0x49   : > { %1547 = vrot.lane.b32.xlu0 %v1482_v23, %s5399_s16  ;;  %1738 = vrot.lane.b32.xlu1 %v1674_v37, %s5400_s24  ;;  %3313 = vst.msk [vmem:[#allocation4 + $0x8] sm:$0x3] %vm7383_vm13, %v5393_v0  ;;  %3315 = vst.msk [vmem:[#allocation4 + $0x18] sm:$0x3] %vm7383_vm13, %v5393_v0 }
  0x4a   : > { %3317 = vst.msk [vmem:[#allocation4 + $0x28] sm:$0x3] %vm7383_vm13, %v5393_v0  ;;  %3319 = vst.msk [vmem:[#allocation4 + $0x38] sm:$0x3] %vm7383_vm13, %v5393_v0 }
  0x4b   : > { %3321 = vst.msk [vmem:[#allocation4 + $0x48] sm:$0x3] %vm7383_vm13, %v5393_v0  ;;  %3323 = vst.msk [vmem:[#allocation4 + $0x58] sm:$0x3] %vm7383_vm13, %v5393_v0 }
  0x4c   : > { %3325 = vst.msk [vmem:[#allocation4 + $0x68] sm:$0x3] %vm7383_vm13, %v5393_v0  ;;  %3327 = vst.msk [vmem:[#allocation4 + $0x78] sm:$0x3] %vm7383_vm13, %v5393_v0 }
  0x4d   : > { %971 = vrot.lane.b32.xlu0 %v1482_v23, %s5396_s28  ;;  %1162 = vrot.lane.b32.xlu1 %v1674_v37, %s5397_s29  ;;  %3329 = vst.msk [vmem:[#allocation4 + $0x88] sm:$0x3] %vm7383_vm13, %v5393_v0  ;;  %3331 = vst.msk [vmem:[#allocation4 + $0x98] sm:$0x3] %vm7383_vm13, %v5393_v0 }
  0x51   : > { %1740 = vrot.lane.b32.xlu0 %v1675_v44, %s5400_s24  ;;  %1931 = vrot.lane.b32.xlu1 %v1867_v45, %s5401_s26 }
  0x55   : > { %587 = vrot.lane.b32.xlu0 %v1674_v37, %s7400_s21  ;;  %1164 = vrot.lane.b32.xlu1 %v1675_v44, %s5397_s29 }
  0x59   : > { %1355 = vrot.lane.b32.xlu0 %v1867_v45, %s7401_s22  ;;  %1933 = vrot.lane.b32.xlu1 %v1868_v49, %s5401_s26 }
  0x5d   : > { %589 = vrot.lane.b32.xlu0 %v1675_v44, %s7400_s21  ;;  %780 = vrot.lane.b32.xlu1 %v1867_v45, %s7402_s23  ;;  %v1303_v44 = vld [vmem:[#allocation2 + $0xda] sm:$0xff]  ;;  %v1874_v45 = vld [vmem:[#allocation2 + $0x82] sm:$0xff] }
  0x61   : > { %1357 = vrot.lane.b32.xlu0 %v1868_v49, %s7401_s22  ;;  %1549 = vrot.lane.b32.xlu1 %v5662_v25, %s5399_s16 }
  0x65   : > { %782 = vrot.lane.b32.xlu0 %v1868_v49, %s7402_s23  ;;  %973 = vrot.lane.b32.xlu1 %v5662_v25, %s5396_s28 }
  0x69   : > { %1551 = vrot.lane.b32.xlu0 %v5664_v26, %s5399_s16  ;;  %1742 = vrot.lane.b32.xlu1 %v1676_v54, %s5400_s24 }
  0x6d   : > { %975 = vrot.lane.b32.xlu0 %v5664_v26, %s5396_s28  ;;  %1166 = vrot.lane.b32.xlu1 %v1676_v54, %s5397_s29 }
  0x71   : > { %1744 = vrot.lane.b32.xlu0 %v1677_v57, %s5400_s24  ;;  %1935 = vrot.lane.b32.xlu1 %v1869_v58, %s5401_s26 }
  0x75   : > { %591 = vrot.lane.b32.xlu0 %v1676_v54, %s7400_s21  ;;  %1168 = vrot.lane.b32.xlu1 %v1677_v57, %s5397_s29 }
  0x79   : > { %1359 = vrot.lane.b32.xlu0 %v1869_v58, %s7401_s22  ;;  %1937 = vrot.lane.b32.xlu1 %v1870_v59, %s5401_s26 }
  0x7d   : > { %593 = vrot.lane.b32.xlu0 %v1677_v57, %s7400_s21  ;;  %784 = vrot.lane.b32.xlu1 %v1869_v58, %s7402_s23  ;;  %v352_v58 = vld [vmem:[%s5622_s25 + $0xb0] sm:$0xff] }
  0x7e   : > { %441 = vst.msk [vmem:[#allocation2 + $0x121] sm:$0xff] %vm362_vm0, %v352_v58 }
  0x81   : > { %1361 = vrot.lane.b32.xlu0 %v1870_v59, %s7401_s22  ;;  %1553 = vrot.lane.b32.xlu1 %v5672_v27, %s5399_s16 }
  0x85   : > { %786 = vrot.lane.b32.xlu0 %v1870_v59, %s7402_s23  ;;  %977 = vrot.lane.b32.xlu1 %v5672_v27, %s5396_s28  ;;  %v1680_v27 = vld [vmem:[#allocation2 + $0x79] sm:$0xff]  ;;  %v1304_v59 = vld [vmem:[#allocation2 + $0xe2] sm:$0xff] }
  0x86   : > { %v5903_v3 = vld [vmem:[#allocation2 + $0x120] sm:$0xff] }
  0x87   : > { %507 = vst.msk [vmem:[#allocation3 + $0xc0] sm:$0xff] %vm362_vm0, %v5903_v3 }
  0x88   : > { %v773_v6 = vpop.permute.xlu1 %772 }
  0x89   : > { %1555 = vrot.lane.b32.xlu0 %v5674_v28, %s5399_s16  ;;  %1746 = vrot.lane.b32.xlu1 %v1678_v60, %s5400_s24  ;;  %v580_v7 = vpop.permute.xlu0 %579 }
  0x8a   : > { %676 = vst.msk [vmem:[#allocation3] sm:$0xff] %vm675_vm3, %v580_v7 }
  0x8b   : > { %869 = vst.msk [vmem:[#allocation3] sm:$0xff] %vm868_vm4, %v773_v6  ;;  %v353_v6 = vld [vmem:[%s5622_s25 + $0xb8] sm:$0xff] }
  0x8c   : > { %442 = vst.msk [vmem:[#allocation2 + $0x129] sm:$0xff] %vm362_vm0, %v353_v6 }
  0x8d   : > { %979 = vrot.lane.b32.xlu0 %v5674_v28, %s5396_s28  ;;  %1170 = vrot.lane.b32.xlu1 %v1678_v60, %s5397_s29 }
  0x91   : > { %1748 = vrot.lane.b32.xlu0 %v1679_v62, %s5400_s24  ;;  %1939 = vrot.lane.b32.xlu1 %v1871_v63, %s5401_s26 }
  0x93   : > { %v5925_v13 = vld [vmem:[#allocation2 + $0x128] sm:$0xff] }
  0x94   : > { %508 = vst.msk [vmem:[#allocation3 + $0xc8] sm:$0xff] %vm362_vm0, %v5925_v13 }
  0x95   : > { %595 = vrot.lane.b32.xlu0 %v1678_v60, %s7400_s21  ;;  %611 = vrot.lane.b32.xlu1 %v531_v2, %s7400_s21 }
  0x99   : > { %1172 = vrot.lane.b32.xlu0 %v1679_v62, %s5397_s29  ;;  %1363 = vrot.lane.b32.xlu1 %v1871_v63, %s7401_s22 }
  0x9a   : > { %v775_v11 = vpop.permute.xlu1 %774 }
  0x9b   : > { %v582_v12 = vpop.permute.xlu0 %581 }
  0x9c   : > { %677 = vst.msk [vmem:[#allocation3 + $0x8] sm:$0xff] %vm675_vm3, %v582_v12 }
  0x9d   : > { %1941 = vrot.lane.b32.xlu0 %v1872_v5, %s5401_s26  ;;  %597 = vrot.lane.b32.xlu1 %v1679_v62, %s7400_s21  ;;  %870 = vst.msk [vmem:[#allocation3 + $0x8] sm:$0xff] %vm868_vm4, %v775_v11 }
  0xa1   : > { %613 = vrot.lane.b32.xlu0 %v532_v10, %s7400_s21  ;;  %788 = vrot.lane.b32.xlu1 %v1871_v63, %s7402_s23 }
  0xa3   : > { %v968_v16 = vpop.permute.xlu1 %967  ;;  %v966_v17 = vpop.permute.xlu0 %965 }
  0xa4   : > { %1063 = vst.msk [vmem:[#allocation3 + $0x8] sm:$0xff] %vm1061_vm5, %v968_v16  ;;  %1062 = vst.msk [vmem:[#allocation3] sm:$0xff] %vm1061_vm5, %v966_v17 }
  0xa5   : > { %804 = vrot.lane.b32.xlu0 %v724_v15, %s7402_s23  ;;  %1365 = vrot.lane.b32.xlu1 %v1872_v5, %s7401_s22 }
  0xa7   : > { %v1159_v18 = vpop.permute.xlu0 %1158  ;;  %v584_v19 = vpop.permute.xlu1 %583 }
  0xa8   : > { %1255 = vst.msk [vmem:[#allocation3] sm:$0xff] %vm1254_vm6, %v1159_v18 }
  0xa9   : > { %678 = vst.msk [vmem:[#allocation3 + $0x10] sm:$0xff] %vm675_vm3, %v584_v19  ;;  %1557 = vrot.lane.b32.xlu0 %v5680_v31, %s5399_s16  ;;  %790 = vrot.lane.b32.xlu1 %v1872_v5, %s7402_s23 }
  0xab   : > { %v1161_v23 = vpop.permute.xlu0 %1160  ;;  %v1352_v24 = vpop.permute.xlu1 %1351 }
  0xac   : > { %1256 = vst.msk [vmem:[#allocation3 + $0x8] sm:$0xff] %vm1254_vm6, %v1161_v23 }
  0xad   : > { %1448 = vst.msk [vmem:[#allocation3] sm:$0xff] %vm1447_vm7, %v1352_v24  ;;  %806 = vrot.lane.b32.xlu0 %v725_v22, %s7402_s23  ;;  %981 = vrot.lane.b32.xlu1 %v5680_v31, %s5396_s28  ;;  %v1683_v24 = vld [vmem:[#allocation2 + $0x99] sm:$0xff] }
  0xaf   : > { %v586_v25 = vpop.permute.xlu0 %585  ;;  %v777_v26 = vpop.permute.xlu1 %776 }
  0xb0   : > { %679 = vst.msk [vmem:[#allocation3 + $0x18] sm:$0xff] %vm675_vm3, %v586_v25  ;;  %v1691_v25 = vld [vmem:[#allocation2 + $0xf9] sm:$0xff] }
  0xb1   : > { %871 = vst.msk [vmem:[#allocation3 + $0x10] sm:$0xff] %vm868_vm4, %v777_v26  ;;  %997 = vrot.lane.b32.xlu0 %v5682_v32, %s5396_s28  ;;  %1559 = vrot.lane.b32.xlu1 %v5686_v33, %s5399_s16  ;;  %v1110_v32 = vld [vmem:[#allocation2 + $0xd9] sm:$0xff] }
  0xb3   : > { %v1354_v28 = vpop.permute.xlu0 %1353  ;;  %v1546_v29 = vpop.permute.xlu1 %1545 }
  0xb4   : > { %1449 = vst.msk [vmem:[#allocation3 + $0x8] sm:$0xff] %vm1447_vm7, %v1354_v28 }
  0xb5   : > { %1642 = vst.msk [vmem:[#allocation3] sm:$0xff] %vm1641_vm8, %v1546_v29  ;;  %1750 = vrot.lane.b32.xlu0 %v1680_v27, %s5400_s24  ;;  %983 = vrot.lane.b32.xlu1 %v5686_v33, %s5396_s28  ;;  %v1873_v33 = vld [vmem:[#allocation2 + $0x7a] sm:$0xff] }
  0xb7   : > { %v779_v30 = vpop.permute.xlu0 %778  ;;  %v970_v31 = vpop.permute.xlu1 %969 }
  0xb8   : > { %872 = vst.msk [vmem:[#allocation3 + $0x18] sm:$0xff] %vm868_vm4, %v779_v30 }
  0xb9   : > { %1064 = vst.msk [vmem:[#allocation3 + $0x10] sm:$0xff] %vm1061_vm5, %v970_v31  ;;  %999 = vrot.lane.b32.xlu0 %v5700_v36, %s5396_s28  ;;  %1174 = vrot.lane.b32.xlu1 %v1680_v27, %s5397_s29 }
  0xbb   : > { %v1548_v35 = vpop.permute.xlu0 %1547  ;;  %v1739_v37 = vpop.permute.xlu1 %1738 }
  0xbc   : > { %1643 = vst.msk [vmem:[#allocation3 + $0x8] sm:$0xff] %vm1641_vm8, %v1548_v35 }
  0xbd   : > { %1835 = vst.msk [vmem:[#allocation3] sm:$0xff] %vm7386_vm9, %v1739_v37  ;;  %1190 = vrot.lane.b32.xlu0 %v1110_v32, %s5397_s29  ;;  %1752 = vrot.lane.b32.xlu1 %v1681_v34, %s5400_s24 }
  0xbf   : > { %v972_v38 = vpop.permute.xlu0 %971  ;;  %v1163_v39 = vpop.permute.xlu1 %1162 }
  0xc0   : > { %1065 = vst.msk [vmem:[#allocation3 + $0x18] sm:$0xff] %vm1061_vm5, %v972_v38  ;;  %v1884_v38 = vld [vmem:[#allocation2 + $0xfa] sm:$0xff] }
  0xc1   : > { %1257 = vst.msk [vmem:[#allocation3 + $0x10] sm:$0xff] %vm1254_vm6, %v1163_v39  ;;  %1943 = vrot.lane.b32.xlu0 %v1873_v33, %s5401_s26  ;;  %599 = vrot.lane.b32.xlu1 %v1680_v27, %s7400_s21  ;;  %v1883_v27 = vld [vmem:[#allocation2 + $0xf2] sm:$0xff] }
  0xc3   : > { %v1741_v36 = vpop.permute.xlu0 %1740  ;;  %v1932_v40 = vpop.permute.xlu1 %1931 }
  0xc4   : > { %1836 = vst.msk [vmem:[#allocation3 + $0x8] sm:$0xff] %vm7386_vm9, %v1741_v36 }
  0xc5   : > { %2028 = vst.msk [vmem:[#allocation3] sm:$0xff] %vm2027_vm10, %v1932_v40  ;;  %615 = vrot.lane.b32.xlu0 %v1110_v32, %s7400_s21  ;;  %1176 = vrot.lane.b32.xlu1 %v1681_v34, %s5397_s29 }
  0xc7   : > { %v588_v42 = vpop.permute.xlu0 %587  ;;  %v1165_v43 = vpop.permute.xlu1 %1164 }
  0xc8   : > { %680 = vst.msk [vmem:[#allocation3 + $0x20] sm:$0xff] %vm675_vm3, %v588_v42 }
  0xc9   : > { %1258 = vst.msk [vmem:[#allocation3 + $0x18] sm:$0xff] %vm1254_vm6, %v1165_v43  ;;  %1192 = vrot.lane.b32.xlu0 %v1111_v41, %s5397_s29  ;;  %1367 = vrot.lane.b32.xlu1 %v1873_v33, %s7401_s22  ;;  %v354_v43 = vld [vmem:[%s5622_s25 + $0xc0] sm:$0xff] }
  0xca   : > { %443 = vst.msk [vmem:[#allocation2 + $0x139] sm:$0xff] %vm362_vm0, %v354_v43  ;;  %v359_v43 = vld [vmem:[%s5622_s25 + $0xe8] sm:$0xff] }
  0xcb   : > { %v1356_v46 = vpop.permute.xlu0 %1355  ;;  %v1934_v47 = vpop.permute.xlu1 %1933  ;;  %448 = vst.msk [vmem:[#allocation2 + $0x171] sm:$0xff] %vm362_vm0, %v359_v43 }
  0xcc   : > { %v2060_v48 = vld [vmem:[#allocation3] sm:$0xff]  ;;  %1450 = vst.msk [vmem:[#allocation3 + $0x10] sm:$0xff] %vm1447_vm7, %v1356_v46 }
  0xcd   : > { %2029 = vst.msk [vmem:[#allocation3 + $0x8] sm:$0xff] %vm2027_vm10, %v1934_v47  ;;  %5054 = vmatprep.mubr.msk.f32.mxu0 %vm2104_vm11, %v2060_v48  ;;  %1383 = vrot.lane.b32.xlu0 %v1303_v44, %s7401_s22 }
  0xce   : > { %1945 = vrot.lane.b32.xlu1 %v1874_v45, %s5401_s26 }
  0xcf   : > { %v590_v49 = vpop.permute.xlu0 %589  ;;  %v781_v52 = vpop.permute.xlu1 %780 }
  0xd0   : > { %681 = vst.msk [vmem:[#allocation3 + $0x28] sm:$0xff] %vm675_vm3, %v590_v49  ;;  %v355_v49 = vld [vmem:[%s5622_s25 + $0xc8] sm:$0xff] }
  0xd1   : > { %873 = vst.msk [vmem:[#allocation3 + $0x20] sm:$0xff] %vm868_vm4, %v781_v52  ;;  %601 = vrot.lane.b32.xlu0 %v1681_v34, %s7400_s21 }
  0xd2   : > { %617 = vrot.lane.b32.xlu1 %v1111_v41, %s7400_s21  ;;  %444 = vst.msk [vmem:[#allocation2 + $0x141] sm:$0xff] %vm362_vm0, %v355_v49  ;;  %v1694_v49 = vld [vmem:[#allocation2 + $0x121] sm:$0xff] }
  0xd3   : > { %v1358_v53 = vpop.permute.xlu0 %1357  ;;  %v1550_v54 = vpop.permute.xlu1 %1549 }
  0xd4   : > { %v2061_v57 = vld [vmem:[#allocation3 + $0x8] sm:$0xff]  ;;  %1451 = vst.msk [vmem:[#allocation3 + $0x18] sm:$0xff] %vm1447_vm7, %v1358_v53 }
  0xd5   : > { %1644 = vst.msk [vmem:[#allocation3 + $0x10] sm:$0xff] %vm1641_vm8, %v1550_v54  ;;  %5055 = vmatmul.mubr.msk.f32.vlgmr.msra.gmra.mrb[0].mxu0 %vm2104_vm11, %v2061_v57  ;;  %792 = vrot.lane.b32.xlu0 %v1873_v33, %s7402_s23  ;;  %v1876_v33 = vld [vmem:[#allocation2 + $0x9a] sm:$0xff] }
  0xd6   : > { %808 = vrot.lane.b32.xlu1 %v1303_v44, %s7402_s23 }
  0xd7   : > { %v783_v60 = vpop.permute.xlu0 %782  ;;  %v974_v62 = vpop.permute.xlu1 %973 }
  0xd8   : > { %874 = vst.msk [vmem:[#allocation3 + $0x28] sm:$0xff] %vm868_vm4, %v783_v60 }
  0xd9   : > { %1066 = vst.msk [vmem:[#allocation3 + $0x20] sm:$0xff] %vm1061_vm5, %v974_v62  ;;  %1369 = vrot.lane.b32.xlu0 %v1874_v45, %s7401_s22 }
  0xda   : > { %1385 = vrot.lane.b32.xlu1 %v1304_v59, %s7401_s22 }
  0xdb   : > { %v1552_v63 = vpop.permute.xlu0 %1551  ;;  %v1743_v2 = vpop.permute.xlu1 %1742 }
  0xdc   : > { %1645 = vst.msk [vmem:[#allocation3 + $0x18] sm:$0xff] %vm1641_vm8, %v1552_v63  ;;  %v1684_v63 = vld [vmem:[#allocation2 + $0xa9] sm:$0xff] }
  0xdd   : > { %1837 = vst.msk [vmem:[#allocation3 + $0x10] sm:$0xff] %vm7386_vm9, %v1743_v2  ;;  %1561 = vrot.lane.b32.xlu0 %v5735_v50, %s5399_s16  ;;  %v1692_v2 = vld [vmem:[#allocation2 + $0x109] sm:$0xff] }
  0xde   : > { %1577 = vrot.lane.b32.xlu1 %v5737_v51, %s5399_s16 }
  0xdf   : > { %v976_v4 = vpop.permute.xlu0 %975  ;;  %v1167_v5 = vpop.permute.xlu1 %1166 }
  0xe0   : > { %1067 = vst.msk [vmem:[#allocation3 + $0x28] sm:$0xff] %vm1061_vm5, %v976_v4 }
  0xe1   : > { %1259 = vst.msk [vmem:[#allocation3 + $0x20] sm:$0xff] %vm1254_vm6, %v1167_v5  ;;  %794 = vrot.lane.b32.xlu0 %v1874_v45, %s7402_s23 }
  0xe2   : > { %810 = vrot.lane.b32.xlu1 %v1304_v59, %s7402_s23 }
  0xe3   : > { %v1745_v7 = vpop.permute.xlu0 %1744  ;;  %v1936_v10 = vpop.permute.xlu1 %1935 }
  0xe4   : > { %1838 = vst.msk [vmem:[#allocation3 + $0x18] sm:$0xff] %vm7386_vm9, %v1745_v7 }
  0xe5   : > { %2030 = vst.msk [vmem:[#allocation3 + $0x10] sm:$0xff] %vm2027_vm10, %v1936_v10  ;;  %985 = vrot.lane.b32.xlu0 %v5735_v50, %s5396_s28  ;;  %v1682_v50 = vld [vmem:[#allocation2 + $0x91] sm:$0xff] }
  0xe6   : > { %1001 = vrot.lane.b32.xlu1 %v5737_v51, %s5396_s28  ;;  %v1685_v10 = vld [vmem:[#allocation2 + $0xb1] sm:$0xff] }
  0xe7   : > { %v592_v11 = vpop.permute.xlu0 %591  ;;  %v1169_v12 = vpop.permute.xlu1 %1168 }
  0xe8   : > { %682 = vst.msk [vmem:[#allocation3 + $0x30] sm:$0xff] %vm675_vm3, %v592_v11  ;;  %v1693_v11 = vld [vmem:[#allocation2 + $0x111] sm:$0xff] }
  0xe9   : > { %1260 = vst.msk [vmem:[#allocation3 + $0x28] sm:$0xff] %vm1254_vm6, %v1169_v12  ;;  %1563 = vrot.lane.b32.xlu0 %v5755_v55, %s5399_s16 }
  0xea   : > { %1579 = vrot.lane.b32.xlu1 %v5757_v56, %s5399_s16 }
  0xeb   : > { %v1360_v51 = vpop.permute.xlu0 %1359  ;;  %v1938_v15 = vpop.permute.xlu1 %1937 }
  0xec   : > { %v2062_v16 = vld [vmem:[#allocation3 + $0x10] sm:$0xff]  ;;  %1452 = vst.msk [vmem:[#allocation3 + $0x20] sm:$0xff] %vm1447_vm7, %v1360_v51 }
  0xed   : > { %2031 = vst.msk [vmem:[#allocation3 + $0x18] sm:$0xff] %vm2027_vm10, %v1938_v15  ;;  %5057 = vmatprep.mubr.msk.f32.mxu0 %vm2104_vm11, %v2062_v16  ;;  %1754 = vrot.lane.b32.xlu0 %v1682_v50, %s5400_s24 }
  0xee   : > { %1770 = vrot.lane.b32.xlu1 %v1690_v14, %s5400_s24 }
  0xef   : > { %v594_v17 = vpop.permute.xlu0 %593  ;;  %v785_v18 = vpop.permute.xlu1 %784 }
  0xf0   : > { %683 = vst.msk [vmem:[#allocation3 + $0x38] sm:$0xff] %vm675_vm3, %v594_v17 }
  0xf1   : > { %875 = vst.msk [vmem:[#allocation3 + $0x30] sm:$0xff] %vm868_vm4, %v785_v18  ;;  %987 = vrot.lane.b32.xlu0 %v5755_v55, %s5396_s28 }
  0xf2   : > { %1003 = vrot.lane.b32.xlu1 %v5757_v56, %s5396_s28  ;;  %v1875_v56 = vld [vmem:[#allocation2 + $0x92] sm:$0xff] }
  0xf3   : > { %v1362_v19 = vpop.permute.xlu0 %1361  ;;  %v1554_v22 = vpop.permute.xlu1 %1553 }
  0xf4   : > { %v2063_v23 = vld [vmem:[#allocation3 + $0x18] sm:$0xff]  ;;  %1453 = vst.msk [vmem:[#allocation3 + $0x28] sm:$0xff] %vm1447_vm7, %v1362_v19 }
  0xf5   : > { %1646 = vst.msk [vmem:[#allocation3 + $0x20] sm:$0xff] %vm1641_vm8, %v1554_v22  ;;  %5058 = vmatmul.mubr.msk.f32.gmra.mrb[2].mxu0 %vm2104_vm11, %v2063_v23  ;;  %1178 = vrot.lane.b32.xlu0 %v1682_v50, %s5397_s29  ;;  %v357_v22 = vld [vmem:[%s5622_s25 + $0xd8] sm:$0xff] }
  0xf6   : > { %1194 = vrot.lane.b32.xlu1 %v1690_v14, %s5397_s29  ;;  %446 = vst.msk [vmem:[#allocation2 + $0x159] sm:$0xff] %vm362_vm0, %v357_v22 }
  0xf7   : > { %v787_v26 = vpop.permute.xlu0 %786  ;;  %v978_v55 = vpop.permute.xlu1 %977 }
  0xf8   : > { %876 = vst.msk [vmem:[#allocation3 + $0x38] sm:$0xff] %vm868_vm4, %v787_v26 }
  0xf9   : > { %1068 = vst.msk [vmem:[#allocation3 + $0x30] sm:$0xff] %vm1061_vm5, %v978_v55  ;;  %1756 = vrot.lane.b32.xlu0 %v1683_v24, %s5400_s24 }
  0xfa   : > { %1772 = vrot.lane.b32.xlu1 %v1691_v25, %s5400_s24 }
  0xfb   : > { %v1556_v28 = vpop.permute.xlu0 %1555  ;;  %v1747_v29 = vpop.permute.xlu1 %1746 }
  0xfc   : > { %1647 = vst.msk [vmem:[#allocation3 + $0x28] sm:$0xff] %vm1641_vm8, %v1556_v28 }
  0xfd   : > { %1839 = vst.msk [vmem:[#allocation3 + $0x20] sm:$0xff] %vm7386_vm9, %v1747_v29  ;;  %1947 = vrot.lane.b32.xlu0 %v1875_v56, %s5401_s26 }
  0xfe   : > { %1963 = vrot.lane.b32.xlu1 %v1883_v27, %s5401_s26 }
  0xff   : > { %v980_v30 = vpop.permute.xlu0 %979  ;;  %v1171_v31 = vpop.permute.xlu1 %1170 }
 0x100   : > { %1069 = vst.msk [vmem:[#allocation3 + $0x38] sm:$0xff] %vm1061_vm5, %v980_v30 }
 0x101   : > { %1261 = vst.msk [vmem:[#allocation3 + $0x30] sm:$0xff] %vm1254_vm6, %v1171_v31  ;;  %603 = vrot.lane.b32.xlu0 %v1682_v50, %s7400_s21 }
 0x102   : > { %619 = vrot.lane.b32.xlu1 %v1690_v14, %s7400_s21  ;;  %v6054_v14 = vld [vmem:[#allocation2 + $0x10a] sm:$0xff] }
 0x103   : > { %v1749_v32 = vpop.permute.xlu0 %1748  ;;  %v1940_v34 = vpop.permute.xlu1 %1939 }
 0x104   : > { %1840 = vst.msk [vmem:[#allocation3 + $0x28] sm:$0xff] %vm7386_vm9, %v1749_v32 }
 0x105   : > { %2032 = vst.msk [vmem:[#allocation3 + $0x20] sm:$0xff] %vm2027_vm10, %v1940_v34  ;;  %1180 = vrot.lane.b32.xlu0 %v1683_v24, %s5397_s29 }
 0x106   : > { %1196 = vrot.lane.b32.xlu1 %v1691_v25, %s5397_s29 }
 0x107   : > { %v596_v35 = vpop.permute.xlu0 %595  ;;  %v612_v37 = vpop.permute.xlu1 %611 }
 0x108   : > { %684 = vst.msk [vmem:[#allocation3 + $0x40] sm:$0xff] %vm675_vm3, %v596_v35  ;;  %692 = vst.msk [vmem:[#allocation3 + $0x80] sm:$0xff] %vm675_vm3, %v612_v37 }
 0x109   : > { %1371 = vrot.lane.b32.xlu0 %v1875_v56, %s7401_s22 }
 0x10a   : > { %1387 = vrot.lane.b32.xlu1 %v1883_v27, %s7401_s22 }
 0x10b   : > { %v1173_v39 = vpop.permute.xlu0 %1172  ;;  %v1364_v36 = vpop.permute.xlu1 %1363 }
 0x10c   : > { %v2064_v40 = vld [vmem:[#allocation3 + $0x20] sm:$0xff]  ;;  %1262 = vst.msk [vmem:[#allocation3 + $0x38] sm:$0xff] %vm1254_vm6, %v1173_v39 }
 0x10d   : > { %1454 = vst.msk [vmem:[#allocation3 + $0x30] sm:$0xff] %vm1447_vm7, %v1364_v36  ;;  %5060 = vmatprep.mubr.msk.f32.mxu0 %vm2104_vm11, %v2064_v40  ;;  %1949 = vrot.lane.b32.xlu0 %v1876_v33, %s5401_s26 }
 0x10e   : > { %1965 = vrot.lane.b32.xlu1 %v1884_v38, %s5401_s26 }
 0x10f   : > { %v1942_v41 = vpop.permute.xlu0 %1941  ;;  %v598_v42 = vpop.permute.xlu1 %597 }
 0x110   : > { %2033 = vst.msk [vmem:[#allocation3 + $0x28] sm:$0xff] %vm2027_vm10, %v1942_v41 }
 0x111   : > { %685 = vst.msk [vmem:[#allocation3 + $0x48] sm:$0xff] %vm675_vm3, %v598_v42  ;;  %605 = vrot.lane.b32.xlu0 %v1683_v24, %s7400_s21 }
 0x112   : > { %621 = vrot.lane.b32.xlu1 %v1691_v25, %s7400_s21 }
 0x113   : > { %v614_v44 = vpop.permute.xlu0 %613  ;;  %v789_v45 = vpop.permute.xlu1 %788 }
 0x114   : > { %693 = vst.msk [vmem:[#allocation3 + $0x88] sm:$0xff] %vm675_vm3, %v614_v44 }
 0x115   : > { %877 = vst.msk [vmem:[#allocation3 + $0x40] sm:$0xff] %vm868_vm4, %v789_v45  ;;  %796 = vrot.lane.b32.xlu0 %v1875_v56, %s7402_s23  ;;  %v1878_v56 = vld [vmem:[#allocation2 + $0xb2] sm:$0xff] }
 0x116   : > { %812 = vrot.lane.b32.xlu1 %v1883_v27, %s7402_s23  ;;  %v1886_v27 = vld [vmem:[#allocation2 + $0x112] sm:$0xff] }
 0x117   : > { %v805_v46 = vpop.permute.xlu0 %804  ;;  %v1366_v47 = vpop.permute.xlu1 %1365  ;;  %v2065_v48 = vld [vmem:[#allocation3 + $0x28] sm:$0xff] }
 0x118   : > { %885 = vst.msk [vmem:[#allocation3 + $0x80] sm:$0xff] %vm868_vm4, %v805_v46  ;;  %5061 = vmatmul.mubr.msk.f32.gmra.mrb[4].mxu0 %vm2104_vm11, %v2065_v48  ;;  %v1686_v48 = vld [vmem:[#allocation2 + $0xc1] sm:$0xff] }
 0x119   : > { %1455 = vst.msk [vmem:[#allocation3 + $0x38] sm:$0xff] %vm1447_vm7, %v1366_v47  ;;  %1373 = vrot.lane.b32.xlu0 %v1876_v33, %s7401_s22 }
 0x11a   : > { %1389 = vrot.lane.b32.xlu1 %v1884_v38, %s7401_s22 }
 0x11b   : > { %v1558_v52 = vpop.permute.xlu0 %1557  ;;  %v791_v53 = vpop.permute.xlu1 %790 }
 0x11c   : > { %1648 = vst.msk [vmem:[#allocation3 + $0x30] sm:$0xff] %vm1641_vm8, %v1558_v52 }
 0x11d   : > { %878 = vst.msk [vmem:[#allocation3 + $0x48] sm:$0xff] %vm868_vm4, %v791_v53  ;;  %1565 = vrot.lane.b32.xlu0 %v5808_v8, %s5399_s16 }
 0x11e   : > { %1581 = vrot.lane.b32.xlu1 %v5810_v9, %s5399_s16 }
 0x11f   : > { %v807_v54 = vpop.permute.xlu0 %806  ;;  %v982_v57 = vpop.permute.xlu1 %981 }
 0x120   : > { %886 = vst.msk [vmem:[#allocation3 + $0x88] sm:$0xff] %vm868_vm4, %v807_v54 }
 0x121   : > { %1070 = vst.msk [vmem:[#allocation3 + $0x40] sm:$0xff] %vm1061_vm5, %v982_v57  ;;  %798 = vrot.lane.b32.xlu0 %v1876_v33, %s7402_s23 }
 0x122   : > { %814 = vrot.lane.b32.xlu1 %v1884_v38, %s7402_s23  ;;  %v358_v38 = vld [vmem:[%s5622_s25 + $0xe0] sm:$0xff] }
 0x123   : > { %v998_v58 = vpop.permute.xlu0 %997  ;;  %v1560_v59 = vpop.permute.xlu1 %1559  ;;  %447 = vst.msk [vmem:[#allocation2 + $0x169] sm:$0xff] %vm362_vm0, %v358_v38 }
 0x124   : > { %1078 = vst.msk [vmem:[#allocation3 + $0x80] sm:$0xff] %vm1061_vm5, %v998_v58 }
 0x125   : > { %1649 = vst.msk [vmem:[#allocation3 + $0x38] sm:$0xff] %vm1641_vm8, %v1560_v59  ;;  %989 = vrot.lane.b32.xlu0 %v5808_v8, %s5396_s28  ;;  %v1687_v59 = vld [vmem:[#allocation2 + $0xc9] sm:$0xff] }
 0x126   : > { %1005 = vrot.lane.b32.xlu1 %v5810_v9, %s5396_s28 }
 0x127   : > { %v1751_v60 = vpop.permute.xlu0 %1750  ;;  %v984_v62 = vpop.permute.xlu1 %983 }
 0x128   : > { %1841 = vst.msk [vmem:[#allocation3 + $0x30] sm:$0xff] %vm7386_vm9, %v1751_v60  ;;  %v1695_v60 = vld [vmem:[#allocation2 + $0x129] sm:$0xff] }
 0x129   : > { %1071 = vst.msk [vmem:[#allocation3 + $0x48] sm:$0xff] %vm1061_vm5, %v984_v62  ;;  %1567 = vrot.lane.b32.xlu0 %v5833_v20, %s5399_s16 }
 0x12a   : > { %1583 = vrot.lane.b32.xlu1 %v5835_v21, %s5399_s16  ;;  %v6139_v42 = vld [vmem:[#allocation2 + $0x168] sm:$0xff]  ;;  %v6157_v52 = vld [vmem:[#allocation2 + $0x170] sm:$0xff] }
 0x12b   : > { %v1000_v4 = vpop.permute.xlu0 %999  ;;  %v1175_v8 = vpop.permute.xlu1 %1174  ;;  %513 = vst.msk [vmem:[#allocation3 + $0xf0] sm:$0xff] %vm362_vm0, %v6139_v42  ;;  %514 = vst.msk [vmem:[#allocation3 + $0xf8] sm:$0xff] %vm362_vm0, %v6157_v52 }
 0x12c   : > { %1079 = vst.msk [vmem:[#allocation3 + $0x88] sm:$0xff] %vm1061_vm5, %v1000_v4  ;;  %v1887_v4 = vld [vmem:[#allocation2 + $0x122] sm:$0xff] }
 0x12d   : > { %1263 = vst.msk [vmem:[#allocation3 + $0x40] sm:$0xff] %vm1254_vm6, %v1175_v8  ;;  %1758 = vrot.lane.b32.xlu0 %v1684_v63, %s5400_s24  ;;  %v360_v8 = vld [vmem:[%s5622_s25 + $0xf0] sm:$0xff] }
 0x12e   : > { %1774 = vrot.lane.b32.xlu1 %v1692_v2, %s5400_s24  ;;  %449 = vst.msk [vmem:[#allocation2 + $0x181] sm:$0xff] %vm362_vm0, %v360_v8 }
 0x12f   : > { %v1191_v9 = vpop.permute.xlu0 %1190  ;;  %v1753_v5 = vpop.permute.xlu1 %1752 }
 0x130   : > { %1271 = vst.msk [vmem:[#allocation3 + $0x80] sm:$0xff] %vm1254_vm6, %v1191_v9 }
 0x131   : > { %1842 = vst.msk [vmem:[#allocation3 + $0x38] sm:$0xff] %vm7386_vm9, %v1753_v5  ;;  %991 = vrot.lane.b32.xlu0 %v5833_v20, %s5396_s28  ;;  %v356_v20 = vld [vmem:[%s5622_s25 + $0xd0] sm:$0xff] }
 0x132   : > { %1007 = vrot.lane.b32.xlu1 %v5835_v21, %s5396_s28  ;;  %v6052_v21 = vld [vmem:[#allocation2 + $0xaa] sm:$0xff]  ;;  %445 = vst.msk [vmem:[#allocation2 + $0x151] sm:$0xff] %vm362_vm0, %v356_v20 }
 0x133   : > { %v1944_v6 = vpop.permute.xlu0 %1943  ;;  %v600_v7 = vpop.permute.xlu1 %599 }
 0x134   : > { %2034 = vst.msk [vmem:[#allocation3 + $0x30] sm:$0xff] %vm2027_vm10, %v1944_v6 }
 0x135   : > { %686 = vst.msk [vmem:[#allocation3 + $0x50] sm:$0xff] %vm675_vm3, %v600_v7  ;;  %1182 = vrot.lane.b32.xlu0 %v1684_v63, %s5397_s29 }
 0x136   : > { %1198 = vrot.lane.b32.xlu1 %v1692_v2, %s5397_s29 }
 0x137   : > { %v616_v12 = vpop.permute.xlu0 %615  ;;  %v1177_v50 = vpop.permute.xlu1 %1176 }
 0x138   : > { %694 = vst.msk [vmem:[#allocation3 + $0x90] sm:$0xff] %vm675_vm3, %v616_v12 }
 0x139   : > { %1264 = vst.msk [vmem:[#allocation3 + $0x48] sm:$0xff] %vm1254_vm6, %v1177_v50  ;;  %1760 = vrot.lane.b32.xlu0 %v1685_v10, %s5400_s24  ;;  %v6068_v19 = vld [vmem:[#allocation2 + $0x150] sm:$0xff]  ;;  %v6085_v28 = vld [vmem:[#allocation2 + $0x158] sm:$0xff] }
 0x13a   : > { %1776 = vrot.lane.b32.xlu1 %v1693_v11, %s5400_s24  ;;  %511 = vst.msk [vmem:[#allocation3 + $0xe0] sm:$0xff] %vm362_vm0, %v6068_v19  ;;  %512 = vst.msk [vmem:[#allocation3 + $0xe8] sm:$0xff] %vm362_vm0, %v6085_v28  ;;  %v1880_v50 = vld [vmem:[#allocation2 + $0xca] sm:$0xff] }
 0x13b   : > { %v1193_v51 = vpop.permute.xlu0 %1192  ;;  %v1368_v15 = vpop.permute.xlu1 %1367  ;;  %v2066_v16 = vld [vmem:[#allocation3 + $0x30] sm:$0xff] }
 0x13c   : > { %1272 = vst.msk [vmem:[#allocation3 + $0x88] sm:$0xff] %vm1254_vm6, %v1193_v51  ;;  %5063 = vmatprep.mubr.msk.f32.mxu0 %vm2104_vm11, %v2066_v16 }
 0x13d   : > { %1456 = vst.msk [vmem:[#allocation3 + $0x40] sm:$0xff] %vm1447_vm7, %v1368_v15  ;;  %1951 = vrot.lane.b32.xlu0 %v6052_v21, %s5401_s26  ;;  %v1888_v15 = vld [vmem:[#allocation2 + $0x12a] sm:$0xff] }
 0x13e   : > { %1967 = vrot.lane.b32.xlu1 %v6054_v14, %s5401_s26 }
 0x13f   : > { %v1384_v17 = vpop.permute.xlu0 %1383 }
 0x140   : > { %v1946_v18 = vpop.permute.xlu1 %1945  ;;  %1464 = vst.msk [vmem:[#allocation3 + $0x80] sm:$0xff] %vm1447_vm7, %v1384_v17 }
 0x141   : > { %2035 = vst.msk [vmem:[#allocation3 + $0x38] sm:$0xff] %vm2027_vm10, %v1946_v18  ;;  %607 = vrot.lane.b32.xlu0 %v1684_v63, %s7400_s21 }
 0x142   : > { %623 = vrot.lane.b32.xlu1 %v1692_v2, %s7400_s21 }
 0x143   : > { %v602_v23 = vpop.permute.xlu0 %601 }
 0x144   : > { %v618_v24 = vpop.permute.xlu1 %617  ;;  %687 = vst.msk [vmem:[#allocation3 + $0x58] sm:$0xff] %vm675_vm3, %v602_v23  ;;  %v1495_v23 = vld [vmem:[#allocation2 + $0xd8] sm:$0xff] }
 0x145   : > { %695 = vst.msk [vmem:[#allocation3 + $0x98] sm:$0xff] %vm675_vm3, %v618_v24  ;;  %1184 = vrot.lane.b32.xlu0 %v1685_v10, %s5397_s29 }
 0x146   : > { %1200 = vrot.lane.b32.xlu1 %v1693_v11, %s5397_s29 }
 0x147   : > { %v793_v25 = vpop.permute.xlu0 %792 }
 0x148   : > { %v809_v26 = vpop.permute.xlu1 %808  ;;  %v2067_v55 = vld [vmem:[#allocation3 + $0x38] sm:$0xff]  ;;  %879 = vst.msk [vmem:[#allocation3 + $0x50] sm:$0xff] %vm868_vm4, %v793_v25 }
 0x149   : > { %887 = vst.msk [vmem:[#allocation3 + $0x90] sm:$0xff] %vm868_vm4, %v809_v26  ;;  %5064 = vmatmul.mubr.msk.f32.gmra.mrb[6].mxu0 %vm2104_vm11, %v2067_v55  ;;  %1375 = vrot.lane.b32.xlu0 %v6052_v21, %s7401_s22  ;;  %v1503_v26 = vld [vmem:[#allocation2 + $0x138] sm:$0xff] }
 0x14a   : > { %1391 = vrot.lane.b32.xlu1 %v6054_v14, %s7401_s22 }
 0x14b   : > { %v1370_v29 = vpop.permute.xlu0 %1369 }
 0x14c   : > { %v1386_v30 = vpop.permute.xlu1 %1385  ;;  %1457 = vst.msk [vmem:[#allocation3 + $0x48] sm:$0xff] %vm1447_vm7, %v1370_v29 }
 0x14d   : > { %1465 = vst.msk [vmem:[#allocation3 + $0x88] sm:$0xff] %vm1447_vm7, %v1386_v30  ;;  %1953 = vrot.lane.b32.xlu0 %v1878_v56, %s5401_s26 }
 0x14e   : > { %1969 = vrot.lane.b32.xlu1 %v1886_v27, %s5401_s26 }
 0x14f   : > { %v1562_v31 = vpop.permute.xlu0 %1561 }
 0x150   : > { %v1578_v32 = vpop.permute.xlu1 %1577  ;;  %1650 = vst.msk [vmem:[#allocation3 + $0x40] sm:$0xff] %vm1641_vm8, %v1562_v31  ;;  %v1504_v31 = vld [vmem:[#allocation2 + $0x140] sm:$0xff] }
 0x151   : > { %1658 = vst.msk [vmem:[#allocation3 + $0x80] sm:$0xff] %vm1641_vm8, %v1578_v32  ;;  %609 = vrot.lane.b32.xlu0 %v1685_v10, %s7400_s21  ;;  %v361_v10 = vld [vmem:[%s5622_s25 + $0xf8] sm:$0xff]  ;;  %s7553_s25 = smov 64  }
 0x152   : > { %625 = vrot.lane.b32.xlu1 %v1693_v11, %s7400_s21  ;;  %450 = vst.msk [vmem:[#allocation2 + $0x189] sm:$0xff] %vm362_vm0, %v361_v10  ;;  %v1688_v32 = vld [vmem:[#allocation2 + $0xd9] sm:$0xff]  ;;  %v2531_v10 = vlaneseq }
 0x153   : > { %v795_v34 = vpop.permute.xlu0 %794 }
 0x154   : > { %v811_v35 = vpop.permute.xlu1 %810  ;;  %880 = vst.msk [vmem:[#allocation3 + $0x58] sm:$0xff] %vm868_vm4, %v795_v34 }
 0x155   : > { %888 = vst.msk [vmem:[#allocation3 + $0x98] sm:$0xff] %vm868_vm4, %v811_v35  ;;  %800 = vrot.lane.b32.xlu0 %v6052_v21, %s7402_s23 }
 0x156   : > { %816 = vrot.lane.b32.xlu1 %v6054_v14, %s7402_s23 }
 0x157   : > { %v986_v37 = vpop.permute.xlu0 %985 }
 0x158   : > { %v1002_v33 = vpop.permute.xlu1 %1001  ;;  %1072 = vst.msk [vmem:[#allocation3 + $0x50] sm:$0xff] %vm1061_vm5, %v986_v37  ;;  %v1696_v37 = vld [vmem:[#allocation2 + $0x139] sm:$0xff] }
 0x159   : > { %1080 = vst.msk [vmem:[#allocation3 + $0x90] sm:$0xff] %vm1061_vm5, %v1002_v33  ;;  %1377 = vrot.lane.b32.xlu0 %v1878_v56, %s7401_s22 }
 0x15a   : > { %1393 = vrot.lane.b32.xlu1 %v1886_v27, %s7401_s22 }
 0x15b   : > { %v1564_v39 = vpop.permute.xlu0 %1563 }
 0x15c   : > { %v1580_v36 = vpop.permute.xlu1 %1579  ;;  %1651 = vst.msk [vmem:[#allocation3 + $0x48] sm:$0xff] %vm1641_vm8, %v1564_v39  ;;  %v477_v39 = vld [vmem:[#allocation2 + $0x138] sm:$0xff] }
 0x15d   : > { %1659 = vst.msk [vmem:[#allocation3 + $0x88] sm:$0xff] %vm1641_vm8, %v1580_v36  ;;  %1569 = vrot.lane.b32.xlu0 %v5783_v61, %s5399_s16  ;;  %v1689_v36 = vld [vmem:[#allocation2 + $0xe1] sm:$0xff] }
 0x15e   : > { %1585 = vrot.lane.b32.xlu1 %v5903_v3, %s5399_s16  ;;  %509 = vst.msk [vmem:[#allocation3 + $0xd0] sm:$0xff] %vm362_vm0, %v477_v39 }
 0x15f   : > { %v1755_v40 = vpop.permute.xlu0 %1754 }
 0x160   : > { %v1771_v41 = vpop.permute.xlu1 %1770  ;;  %1843 = vst.msk [vmem:[#allocation3 + $0x40] sm:$0xff] %vm7386_vm9, %v1755_v40 }
 0x161   : > { %1851 = vst.msk [vmem:[#allocation3 + $0x80] sm:$0xff] %vm7386_vm9, %v1771_v41  ;;  %802 = vrot.lane.b32.xlu0 %v1878_v56, %s7402_s23 }
 0x162   : > { %818 = vrot.lane.b32.xlu1 %v1886_v27, %s7402_s23  ;;  %v1496_v27 = vld [vmem:[#allocation2 + $0xe0] sm:$0xff] }
 0x163   : > { %v988_v44 = vpop.permute.xlu0 %987 }
 0x164   : > { %v1004_v45 = vpop.permute.xlu1 %1003  ;;  %1073 = vst.msk [vmem:[#allocation3 + $0x58] sm:$0xff] %vm1061_vm5, %v988_v44 }
 0x165   : > { %1081 = vst.msk [vmem:[#allocation3 + $0x98] sm:$0xff] %vm1061_vm5, %v1004_v45  ;;  %993 = vrot.lane.b32.xlu0 %v5783_v61, %s5396_s28  ;;  %v1697_v45 = vld [vmem:[#allocation2 + $0x141] sm:$0xff] }
 0x166   : > { %1009 = vrot.lane.b32.xlu1 %v5903_v3, %s5396_s28 }
 0x167   : > { %v1179_v46 = vpop.permute.xlu0 %1178 }
 0x168   : > { %v1195_v47 = vpop.permute.xlu1 %1194  ;;  %1265 = vst.msk [vmem:[#allocation3 + $0x50] sm:$0xff] %vm1254_vm6, %v1179_v46  ;;  %v1881_v46 = vld [vmem:[#allocation2 + $0xda] sm:$0xff] }
 0x169   : > { %1273 = vst.msk [vmem:[#allocation3 + $0x90] sm:$0xff] %vm1254_vm6, %v1195_v47  ;;  %1571 = vrot.lane.b32.xlu0 %v5795_v1, %s5399_s16 }
 0x16a   : > { %1587 = vrot.lane.b32.xlu1 %v5925_v13, %s5399_s16 }
 0x16b   : > { %v1757_v61 = vpop.permute.xlu0 %1756 }
 0x16c   : > { %v1773_v53 = vpop.permute.xlu1 %1772  ;;  %1844 = vst.msk [vmem:[#allocation3 + $0x48] sm:$0xff] %vm7386_vm9, %v1757_v61 }
 0x16d   : > { %1852 = vst.msk [vmem:[#allocation3 + $0x88] sm:$0xff] %vm7386_vm9, %v1773_v53  ;;  %1762 = vrot.lane.b32.xlu0 %v1686_v48, %s5400_s24 }
 0x16e   : > { %1778 = vrot.lane.b32.xlu1 %v1694_v49, %s5400_s24 }
 0x16f   : > { %v1948_v3 = vpop.permute.xlu0 %1947 }
 0x170   : > { %v1964_v54 = vpop.permute.xlu1 %1963  ;;  %2036 = vst.msk [vmem:[#allocation3 + $0x40] sm:$0xff] %vm2027_vm10, %v1948_v3  ;;  %v478_v3 = vld [vmem:[#allocation2 + $0x140] sm:$0xff] }
 0x171   : > { %2044 = vst.msk [vmem:[#allocation3 + $0x80] sm:$0xff] %vm2027_vm10, %v1964_v54  ;;  %995 = vrot.lane.b32.xlu0 %v5795_v1, %s5396_s28 }
 0x172   : > { %1011 = vrot.lane.b32.xlu1 %v5925_v13, %s5396_s28  ;;  %v1879_v13 = vld [vmem:[#allocation2 + $0xc2] sm:$0xff]  ;;  %510 = vst.msk [vmem:[#allocation3 + $0xd8] sm:$0xff] %vm362_vm0, %v478_v3  ;;  %vm3400_vm0 = vcmask 1043459  }
 0x173   : > { %v604_v57 = vpop.permute.xlu0 %603 }
 0x174   : > { %v620_v58 = vpop.permute.xlu1 %619  ;;  %688 = vst.msk [vmem:[#allocation3 + $0x60] sm:$0xff] %vm675_vm3, %v604_v57 }
 0x175   : > { %696 = vst.msk [vmem:[#allocation3 + $0xa0] sm:$0xff] %vm675_vm3, %v620_v58  ;;  %1186 = vrot.lane.b32.xlu0 %v1686_v48, %s5397_s29  ;;  %v1882_v58 = vld [vmem:[#allocation2 + $0xe2] sm:$0xff] }
 0x176   : > { %1202 = vrot.lane.b32.xlu1 %v1694_v49, %s5397_s29 }
 0x177   : > { %v1181_v62 = vpop.permute.xlu0 %1180  ;;  %v2068_v2 = vld [vmem:[#allocation3 + $0x40] sm:$0xff] }
 0x178   : > { %v1197_v63 = vpop.permute.xlu1 %1196  ;;  %v2076_v1 = vld [vmem:[#allocation3 + $0x80] sm:$0xff]  ;;  %1266 = vst.msk [vmem:[#allocation3 + $0x58] sm:$0xff] %vm1254_vm6, %v1181_v62  ;;  %5066 = vmatprep.mubr.msk.f32.mxu0 %vm2104_vm11, %v2068_v2 }
 0x179   : > { %1274 = vst.msk [vmem:[#allocation3 + $0x98] sm:$0xff] %vm1254_vm6, %v1197_v63  ;;  %5078 = vmatprep.mubr.msk.f32.mxu1 %vm2104_vm11, %v2076_v1  ;;  %1764 = vrot.lane.b32.xlu0 %v1687_v59, %s5400_s24 }
 0x17a   : > { %1780 = vrot.lane.b32.xlu1 %v1695_v60, %s5400_s24 }
 0x17b   : > { %v1372_v9 = vpop.permute.xlu0 %1371 }
 0x17c   : > { %v1388_v5 = vpop.permute.xlu1 %1387  ;;  %1458 = vst.msk [vmem:[#allocation3 + $0x50] sm:$0xff] %vm1447_vm7, %v1372_v9  ;;  %v6263_v9 = vld [vmem:[%s7369_s2] ss:$0 sm:$0xff] }
 0x17d   : > { %1466 = vst.msk [vmem:[#allocation3 + $0x90] sm:$0xff] %vm1447_vm7, %v1388_v5  ;;  %1955 = vrot.lane.b32.xlu0 %v1879_v13, %s5401_s26 }
 0x17e   : > { %1971 = vrot.lane.b32.xlu1 %v1887_v4, %s5401_s26 }
 0x17f   : > { %v1950_v6 = vpop.permute.xlu0 %1949 }
 0x180   : > { %v1966_v7 = vpop.permute.xlu1 %1965  ;;  %2037 = vst.msk [vmem:[#allocation3 + $0x48] sm:$0xff] %vm2027_vm10, %v1950_v6  ;;  %v5402_v6 = vmov 1983009808  }
 0x181   : > { %2045 = vst.msk [vmem:[#allocation3 + $0x88] sm:$0xff] %vm2027_vm10, %v1966_v7  ;;  %627 = vrot.lane.b32.xlu0 %v1694_v49, %s7400_s21  ;;  %v1889_v49 = vld [vmem:[#allocation2 + $0x13a] sm:$0xff]  ;;  %v2529_v7 = vunpack.c.l.s4 %v5402_v6 }
 0x182   : > { %1188 = vrot.lane.b32.xlu1 %v1687_v59, %s5397_s29  ;;  %v1890_v59 = vld [vmem:[#allocation2 + $0x142] sm:$0xff] }
 0x183   : > { %v606_v11 = vpop.permute.xlu0 %605 }
 0x184   : > { %v622_v12 = vpop.permute.xlu1 %621  ;;  %689 = vst.msk [vmem:[#allocation3 + $0x68] sm:$0xff] %vm675_vm3, %v606_v11 }
 0x185   : > { %697 = vst.msk [vmem:[#allocation3 + $0xa8] sm:$0xff] %vm675_vm3, %v622_v12  ;;  %1204 = vrot.lane.b32.xlu0 %v1695_v60, %s5397_s29 }
 0x186   : > { %1379 = vrot.lane.b32.xlu1 %v1879_v13, %s7401_s22 }
 0x187   : > { %v797_v20 = vpop.permute.xlu0 %796  ;;  %v2069_v14 = vld [vmem:[#allocation3 + $0x48] sm:$0xff] }
 0x188   : > { %v813_v21 = vpop.permute.xlu1 %812  ;;  %v2077_v51 = vld [vmem:[#allocation3 + $0x88] sm:$0xff]  ;;  %881 = vst.msk [vmem:[#allocation3 + $0x60] sm:$0xff] %vm868_vm4, %v797_v20  ;;  %5067 = vmatmul.mubr.msk.f32.gmra.mrb[8].mxu0 %vm2104_vm11, %v2069_v14  ;;  %v2530_v14 = vunpack.c.0.s8 %v2529_v7 }
 0x189   : > { %889 = vst.msk [vmem:[#allocation3 + $0xa0] sm:$0xff] %vm868_vm4, %v813_v21  ;;  %5079 = vmatmul.mubr.msk.f32.vlgmr.msra.gmra.mrb[0].mxu1 %vm2104_vm11, %v2077_v51  ;;  %1395 = vrot.lane.b32.xlu0 %v1887_v4, %s7401_s22  ;;  %v2532_v51 = vshrl.u32 %v2531_v10, 7 }
 0x18a   : > { %1957 = vrot.lane.b32.xlu1 %v1880_v50, %s5401_s26 }
 0x18b   : > { %v1374_v16 = vpop.permute.xlu0 %1373 }
 0x18c   : > { %v1390_v17 = vpop.permute.xlu1 %1389  ;;  %1459 = vst.msk [vmem:[#allocation3 + $0x58] sm:$0xff] %vm1447_vm7, %v1374_v16  ;;  %v6276_v16 = vld [vmem:[#allocation2 + $0x151] sm:$0xff] }
 0x18d   : > { %1467 = vst.msk [vmem:[#allocation3 + $0x98] sm:$0xff] %vm1447_vm7, %v1390_v17  ;;  %1973 = vrot.lane.b32.xlu0 %v1888_v15, %s5401_s26 }
 0x18e   : > { %629 = vrot.lane.b32.xlu1 %v1695_v60, %s7400_s21 }
 0x18f   : > { %v1566_v18 = vpop.permute.xlu0 %1565 }
 0x190   : > { %v1582_v22 = vpop.permute.xlu1 %1581  ;;  %1652 = vst.msk [vmem:[#allocation3 + $0x50] sm:$0xff] %vm1641_vm8, %v1566_v18 }
 0x191   : > { %1660 = vst.msk [vmem:[#allocation3 + $0x90] sm:$0xff] %vm1641_vm8, %v1582_v22  ;;  %820 = vrot.lane.b32.xlu0 %v1887_v4, %s7402_s23 }
 0x192   : > { %1381 = vrot.lane.b32.xlu1 %v1880_v50, %s7401_s22 }
 0x193   : > { %v799_v24 = vpop.permute.xlu0 %798 }
 0x194   : > { %v815_v25 = vpop.permute.xlu1 %814  ;;  %882 = vst.msk [vmem:[#allocation3 + $0x68] sm:$0xff] %vm868_vm4, %v799_v24 }
 0x195   : > { %890 = vst.msk [vmem:[#allocation3 + $0xa8] sm:$0xff] %vm868_vm4, %v815_v25  ;;  %1397 = vrot.lane.b32.xlu0 %v1888_v15, %s7401_s22 }
 0x196   : > { %1573 = vrot.lane.b32.xlu1 %v1495_v23, %s5399_s16 }
 0x197   : > { %v990_v55 = vpop.permute.xlu0 %989 }
 0x198   : > { %v1006_v56 = vpop.permute.xlu1 %1005  ;;  %1074 = vst.msk [vmem:[#allocation3 + $0x60] sm:$0xff] %vm1061_vm5, %v990_v55  ;;  %v6288_v55 = vsub.s32 %v2530_v14, %v2532_v51 }
 0x199   : > { %1082 = vst.msk [vmem:[#allocation3 + $0xa0] sm:$0xff] %vm1061_vm5, %v1006_v56  ;;  %1589 = vrot.lane.b32.xlu0 %v1503_v26, %s5399_s16 }
 0x19a   : > { %822 = vrot.lane.b32.xlu1 %v1888_v15, %s7402_s23 }
 0x19b   : > { %v1568_v29 = vpop.permute.xlu0 %1567 }
 0x19c   : > { %v1584_v30 = vpop.permute.xlu1 %1583  ;;  %1653 = vst.msk [vmem:[#allocation3 + $0x58] sm:$0xff] %vm1641_vm8, %v1568_v29 }
 0x19d   : > { %1661 = vst.msk [vmem:[#allocation3 + $0x98] sm:$0xff] %vm1641_vm8, %v1584_v30  ;;  %1013 = vrot.lane.b32.xlu0 %v1503_v26, %s5396_s28 }
 0x19e   : > { %1575 = vrot.lane.b32.xlu1 %v1496_v27, %s5399_s16 }
 0x19f   : > { %v1759_v34 = vpop.permute.xlu0 %1758 }
 0x1a0   : > { %v1775_v35 = vpop.permute.xlu1 %1774  ;;  %1845 = vst.msk [vmem:[#allocation3 + $0x50] sm:$0xff] %vm7386_vm9, %v1759_v34 }
 0x1a1   : > { %1853 = vst.msk [vmem:[#allocation3 + $0x90] sm:$0xff] %vm7386_vm9, %v1775_v35  ;;  %1591 = vrot.lane.b32.xlu0 %v1504_v31, %s5399_s16 }
 0x1a2   : > { %1766 = vrot.lane.b32.xlu1 %v1688_v32, %s5400_s24 }
 0x1a3   : > { %v992_v33 = vpop.permute.xlu0 %991 }
 0x1a4   : > { %v1008_v38 = vpop.permute.xlu1 %1007  ;;  %1075 = vst.msk [vmem:[#allocation3 + $0x68] sm:$0xff] %vm1061_vm5, %v992_v33  ;;  %v6300_v33 = vld [vmem:[#allocation2 + $0x159] sm:$0xff] }
 0x1a5   : > { %1083 = vst.msk [vmem:[#allocation3 + $0xa8] sm:$0xff] %vm1061_vm5, %v1008_v38  ;;  %1782 = vrot.lane.b32.xlu0 %v1696_v37, %s5400_s24 }
 0x1a6   : > { %1015 = vrot.lane.b32.xlu1 %v1504_v31, %s5396_s28 }
 0x1a7   : > { %v1183_v40 = vpop.permute.xlu0 %1182 }
 0x1a8   : > { %v5056_v41 = vpop.f32.mrb[0].mxu0  ;;  %1267 = vst.msk [vmem:[#allocation3 + $0x60] sm:$0xff] %vm1254_vm6, %v1183_v40  ;;  %v1199_v43 = vpop.permute.xlu1 %1198  ;;  %v6303_v40 = vld [vmem:[#allocation2 + $0x152] sm:$0xff] }
 0x1a9   : > { %v2271_v44 = vpop.f32.mrb[1].mxu0  ;;  %1275 = vst.msk [vmem:[#allocation3 + $0xa0] sm:$0xff] %vm1254_vm6, %v1199_v43  ;;  %1206 = vrot.lane.b32.xlu0 %v1696_v37, %s5397_s29  ;;  %v2277_v11 = vadd.f32 %v5056_v41, %v6263_v9 }
 0x1aa   : > { %1768 = vrot.lane.b32.xlu1 %v1689_v36, %s5400_s24  ;;  %v2272_v50 = vadd.f32 %v6263_v9, %v2271_v44 }
 0x1ab   : > { %v1761_v47 = vpop.permute.xlu0 %1760  ;;  %v2431_v17 = vmax.f32 %v2277_v11, 0.0 }
 0x1ac   : > { %1846 = vst.msk [vmem:[#allocation3 + $0x58] sm:$0xff] %vm7386_vm9, %v1761_v47  ;;  %v1777_v48 = vpop.permute.xlu1 %1776  ;;  %v2430_v25 = vmax.f32 %v2272_v50, 0.0 }
 0x1ad   : > { %1854 = vst.msk [vmem:[#allocation3 + $0x98] sm:$0xff] %vm7386_vm9, %v1777_v48  ;;  %1784 = vrot.lane.b32.xlu0 %v1697_v45, %s5400_s24  ;;  %v2466_v29 = vsel %vm7385_vm12, %v2431_v17, -inf }
 0x1ae   : > { %1959 = vrot.lane.b32.xlu1 %v1881_v46, %s5401_s26  ;;  %v2463_v32 = vsel %vm7385_vm12, %v2430_v25, -inf }
 0x1af   : > { %v1952_v61 = vpop.permute.xlu0 %1951 }
 0x1b0   : > { %2038 = vst.msk [vmem:[#allocation3 + $0x50] sm:$0xff] %vm2027_vm10, %v1952_v61  ;;  %v1968_v53 = vpop.permute.xlu1 %1967 }
 0x1b1   : > { %2046 = vst.msk [vmem:[#allocation3 + $0x90] sm:$0xff] %vm2027_vm10, %v1968_v53  ;;  %1975 = vrot.lane.b32.xlu0 %v1889_v49, %s5401_s26 }
 0x1b2   : > { %631 = vrot.lane.b32.xlu1 %v1696_v37, %s7400_s21 }
 0x1b3   : > { %v608_v54 = vpop.permute.xlu0 %607 }
 0x1b4   : > { %690 = vst.msk [vmem:[#allocation3 + $0x70] sm:$0xff] %vm675_vm3, %v608_v54  ;;  %v624_v57 = vpop.permute.xlu1 %623 }
 0x1b5   : > { %698 = vst.msk [vmem:[#allocation3 + $0xb0] sm:$0xff] %vm675_vm3, %v624_v57  ;;  %1208 = vrot.lane.b32.xlu0 %v1697_v45, %s5397_s29 }
 0x1b6   : > { %1399 = vrot.lane.b32.xlu1 %v1889_v49, %s7401_s22 }
 0x1b7   : > { %v1185_v60 = vpop.permute.xlu0 %1184  ;;  %v2070_v62 = vld [vmem:[#allocation3 + $0x50] sm:$0xff] }
 0x1b8   : > { %1268 = vst.msk [vmem:[#allocation3 + $0x68] sm:$0xff] %vm1254_vm6, %v1185_v60  ;;  %v1201_v63 = vpop.permute.xlu1 %1200  ;;  %5069 = vmatprep.mubr.msk.f32.mxu0 %vm2104_vm11, %v2070_v62  ;;  %v2078_v2 = vld [vmem:[#allocation3 + $0x90] sm:$0xff] }
 0x1b9   : > { %1276 = vst.msk [vmem:[#allocation3 + $0xa8] sm:$0xff] %vm1254_vm6, %v1201_v63  ;;  %1961 = vrot.lane.b32.xlu0 %v1882_v58, %s5401_s26  ;;  %5081 = vmatprep.mubr.msk.f32.mxu1 %vm2104_vm11, %v2078_v2 }
 0x1ba   : > { %1977 = vrot.lane.b32.xlu1 %v1890_v59, %s5401_s26 }
 0x1bb   : > { %v1376_v1 = vpop.permute.xlu0 %1375 }
 0x1bc   : > { %1460 = vst.msk [vmem:[#allocation3 + $0x60] sm:$0xff] %vm1447_vm7, %v1376_v1  ;;  %v1392_v13 = vpop.permute.xlu1 %1391 }
 0x1bd   : > { %1468 = vst.msk [vmem:[#allocation3 + $0xa0] sm:$0xff] %vm1447_vm7, %v1392_v13  ;;  %633 = vrot.lane.b32.xlu0 %v1697_v45, %s7400_s21 }
 0x1be   : > { %824 = vrot.lane.b32.xlu1 %v1889_v49, %s7402_s23 }
 0x1bf   : > { %v1954_v4 = vpop.permute.xlu0 %1953 }
 0x1c0   : > { %2039 = vst.msk [vmem:[#allocation3 + $0x58] sm:$0xff] %vm2027_vm10, %v1954_v4  ;;  %v1970_v8 = vpop.permute.xlu1 %1969 }
 0x1c1   : > { %2047 = vst.msk [vmem:[#allocation3 + $0x98] sm:$0xff] %vm2027_vm10, %v1970_v8  ;;  %1401 = vrot.lane.b32.xlu0 %v1890_v59, %s7401_s22 }
 0x1c2   : > { %1593 = vrot.lane.b32.xlu1 %v6068_v19, %s5399_s16 }
 0x1c3   : > { %v610_v5 = vpop.permute.xlu0 %609 }
 0x1c4   : > { %691 = vst.msk [vmem:[#allocation3 + $0x78] sm:$0xff] %vm675_vm3, %v610_v5  ;;  %v626_v12 = vpop.permute.xlu1 %625 }
 0x1c5   : > { %699 = vst.msk [vmem:[#allocation3 + $0xb8] sm:$0xff] %vm675_vm3, %v626_v12  ;;  %826 = vrot.lane.b32.xlu0 %v1890_v59, %s7402_s23 }
 0x1c6   : > { %1017 = vrot.lane.b32.xlu1 %v6068_v19, %s5396_s28 }
 0x1c7   : > { %v801_v20 = vpop.permute.xlu0 %800  ;;  %v2071_v15 = vld [vmem:[#allocation3 + $0x58] sm:$0xff] }
 0x1c8   : > { %v5059_v21 = vpop.f32.mrb[2].mxu0  ;;  %883 = vst.msk [vmem:[#allocation3 + $0x70] sm:$0xff] %vm868_vm4, %v801_v20  ;;  %v817_v18 = vpop.permute.xlu1 %816  ;;  %5070 = vmatmul.mubr.msk.f32.gmra.mrb[10].mxu0 %vm2104_vm11, %v2071_v15  ;;  %v2079_v24 = vld [vmem:[#allocation3 + $0x98] sm:$0xff] }
 0x1c9   : > { %v2287_v22 = vadd.f32 %v5059_v21, %v6263_v9  ;;  %v2281_v23 = vpop.f32.mrb[3].mxu0  ;;  %891 = vst.msk [vmem:[#allocation3 + $0xb0] sm:$0xff] %vm868_vm4, %v817_v18  ;;  %5082 = vmatmul.mubr.msk.f32.gmra.mrb[2].mxu1 %vm2104_vm11, %v2079_v24  ;;  %1595 = vrot.lane.b32.xlu0 %v6085_v28, %s5399_s16  ;;  %v6328_v21 = vld [vmem:[#allocation2 + $0x15a] sm:$0xff] }
 0x1ca   : > { %v2282_v19 = vadd.f32 %v6263_v9, %v2281_v23  ;;  %1786 = vrot.lane.b32.xlu1 %v6276_v16, %s5400_s24 }
 0x1cb   : > { %v2433_v26 = vmax.f32 %v2287_v22, 0.0  ;;  %v1378_v27 = vpop.permute.xlu0 %1377 }
 0x1cc   : > { %v2432_v56 = vmax.f32 %v2282_v19, 0.0  ;;  %1461 = vst.msk [vmem:[#allocation3 + $0x68] sm:$0xff] %vm1447_vm7, %v1378_v27  ;;  %v1394_v31 = vpop.permute.xlu1 %1393 }
 0x1cd   : > { %v2467_v30 = vsel %vm7385_vm12, %v2433_v26, -inf  ;;  %1469 = vst.msk [vmem:[#allocation3 + $0xa8] sm:$0xff] %vm1447_vm7, %v1394_v31  ;;  %1019 = vrot.lane.b32.xlu0 %v6085_v28, %s5396_s28 }
 0x1ce   : > { %v2468_v34 = vmax.f32 %v2466_v29, %v2467_v30  ;;  %v2464_v35 = vsel %vm7385_vm12, %v2432_v56, -inf  ;;  %1210 = vrot.lane.b32.xlu1 %v6276_v16, %s5397_s29 }
 0x1cf   : > { %v2465_v37 = vmax.f32 %v2463_v32, %v2464_v35  ;;  %v1570_v36 = vpop.permute.xlu0 %1569 }
 0x1d0   : > { %v2544_v38 = vcombine.high %v2468_v34, %v2468_v34  ;;  %v2551_v39 = vrot.slane %v2468_v34, %v6288_v55  ;;  %1654 = vst.msk [vmem:[#allocation3 + $0x60] sm:$0xff] %vm1641_vm8, %v1570_v36  ;;  %v1586_v44 = vpop.permute.xlu1 %1585 }
 0x1d1   : > { %v2527_v41 = vcombine.high %v2465_v37, %v2465_v37  ;;  %v2534_v43 = vrot.slane %v2465_v37, %v6288_v55  ;;  %1662 = vst.msk [vmem:[#allocation3 + $0xa0] sm:$0xff] %vm1641_vm8, %v1586_v44  ;;  %1788 = vrot.lane.b32.xlu0 %v6300_v33, %s5400_s24 }
 0x1d2   : > { %v2558_v28 = vrot.slane %v2544_v38, %v6288_v55  ;;  %v2559_v45 = vcombine.high %v2551_v39, %v2551_v39  ;;  %v2892_v46 = vsel %vm7383_vm13, %v2551_v39, -inf  ;;  %1979 = vrot.lane.b32.xlu1 %v6303_v40, %s5401_s26 }
 0x1d3   : > { %v2893_v47 = vrot.slane %v2892_v46, 4  ;;  %v2541_v48 = vrot.slane %v2527_v41, %v6288_v55  ;;  %v2542_v49 = vcombine.high %v2534_v43, %v2534_v43  ;;  %v2864_v61 = vsel %vm7383_vm13, %v2534_v43, -inf  ;;  %v803_v58 = vpop.permute.xlu0 %802 }
 0x1d4   : > { %v2560_v53 = vcombine.high %v2558_v28, %v2558_v28  ;;  %v2899_v3 = vsel %vm7383_vm13, %v2559_v45, -inf  ;;  %v2906_v54 = vsel %vm7383_vm13, %v2558_v28, -inf  ;;  %v2865_v57 = vrot.slane %v2864_v61, 4  ;;  %884 = vst.msk [vmem:[#allocation3 + $0x78] sm:$0xff] %vm868_vm4, %v803_v58  ;;  %v819_v2 = vpop.permute.xlu1 %818 }
 0x1d5   : > { %v2894_v59 = vmax.f32 %v2892_v46, %v2893_v47  ;;  %v2900_v60 = vrot.slane %v2899_v3, 4  ;;  %v2907_v62 = vrot.slane %v2906_v54, 4  ;;  %v2543_v63 = vcombine.high %v2541_v48, %v2541_v48  ;;  %892 = vst.msk [vmem:[#allocation3 + $0xb8] sm:$0xff] %vm868_vm4, %v819_v2  ;;  %635 = vrot.lane.b32.xlu0 %v6276_v16, %s7400_s21 }
 0x1d6   : > { %v2913_v1 = vsel %vm7383_vm13, %v2560_v53, -inf  ;;  %v2866_v13 = vmax.f32 %v2864_v61, %v2865_v57  ;;  %v2871_v4 = vsel %vm7383_vm13, %v2542_v49, -inf  ;;  %v2878_v8 = vsel %vm7383_vm13, %v2541_v48, -inf  ;;  %1212 = vrot.lane.b32.xlu1 %v6300_v33, %s5397_s29 }
 0x1d7   : > { %v2901_v5 = vmax.f32 %v2899_v3, %v2900_v60  ;;  %v2908_v6 = vmax.f32 %v2906_v54, %v2907_v62  ;;  %v2914_v7 = vrot.slane %v2913_v1, 4  ;;  %v2872_v11 = vrot.slane %v2871_v4, 4  ;;  %v994_v20 = vpop.permute.xlu0 %993 }
 0x1d8   : > { %v2867_v10 = vrot.slane %v2866_v13, 2  ;;  %v2879_v12 = vrot.slane %v2878_v8, 4  ;;  %v2885_v50 = vsel %vm7383_vm13, %v2543_v63, -inf  ;;  %v2895_v14 = vrot.slane %v2894_v59, 2  ;;  %1076 = vst.msk [vmem:[#allocation3 + $0x70] sm:$0xff] %vm1061_vm5, %v994_v20  ;;  %v1010_v16 = vpop.permute.xlu1 %1009 }
 0x1d9   : > { %v2902_v51 = vrot.slane %v2901_v5, 2  ;;  %v2915_v15 = vmax.f32 %v2913_v1, %v2914_v7  ;;  %v2873_v18 = vmax.f32 %v2871_v4, %v2872_v11  ;;  %v2886_v23 = vrot.slane %v2885_v50, 4  ;;  %1084 = vst.msk [vmem:[#allocation3 + $0xb0] sm:$0xff] %vm1061_vm5, %v1010_v16  ;;  %1403 = vrot.lane.b32.xlu0 %v6303_v40, %s7401_s22 }
 0x1da   : > { %v2868_v17 = vmax.f32 %v2866_v13, %v2867_v10  ;;  %v2880_v22 = vmax.f32 %v2878_v8, %v2879_v12  ;;  %v2909_v24 = vrot.slane %v2908_v6, 2  ;;  %1981 = vrot.lane.b32.xlu1 %v6328_v21, %s5401_s26  ;;  %v2896_v29 = vmax.f32 %v2894_v59, %v2895_v14  ;;  %v1700_v8 = vld [vmem:[#allocation2 + $0x169] sm:$0xff] }
 0x1db   : > { %v2916_v25 = vrot.slane %v2915_v15, 2  ;;  %v2874_v19 = vrot.slane %v2873_v18, 2  ;;  %v2887_v56 = vmax.f32 %v2885_v50, %v2886_v23  ;;  %v1572_v27 = vpop.permute.xlu0 %1571  ;;  %v2903_v30 = vmax.f32 %v2901_v5, %v2902_v51  ;;  %v1701_v50 = vld [vmem:[#allocation2 + $0x171] sm:$0xff] }
 0x1dc   : > { %v2881_v26 = vrot.slane %v2880_v22, 2  ;;  %1655 = vst.msk [vmem:[#allocation3 + $0x68] sm:$0xff] %vm1641_vm8, %v1572_v27  ;;  %v1588_v31 = vpop.permute.xlu1 %1587  ;;  %v2869_v32 = vrot.slane %v2868_v17, 1  ;;  %v2910_v38 = vmax.f32 %v2908_v6, %v2909_v24  ;;  %v2897_v28 = vrot.slane %v2896_v29, 1 }
 0x1dd   : > { %v2875_v34 = vmax.f32 %v2873_v18, %v2874_v19  ;;  %v2888_v37 = vrot.slane %v2887_v56, 2  ;;  %1663 = vst.msk [vmem:[#allocation3 + $0xa8] sm:$0xff] %vm1641_vm8, %v1588_v31  ;;  %637 = vrot.lane.b32.xlu0 %v6300_v33, %s7400_s21  ;;  %v2917_v39 = vmax.f32 %v2915_v15, %v2916_v25  ;;  %v2904_v45 = vrot.slane %v2903_v30, 1  ;;  %v1894_v18 = vld [vmem:[#allocation2 + $0x172] sm:$0xff]  ;;  %v1510_v31 = vld [vmem:[#allocation2 + $0x188] sm:$0xff] }
 0x1de   : > { %v2882_v35 = vmax.f32 %v2880_v22, %v2881_v26  ;;  %828 = vrot.lane.b32.xlu1 %v6303_v40, %s7402_s23  ;;  %v2870_v47 = vmax.f32 %v2868_v17, %v2869_v32  ;;  %v2911_v40 = vrot.slane %v2910_v38, 1  ;;  %v2898_v57 = vmax.f32 %v2896_v29, %v2897_v28  ;;  %v1509_v26 = vld [vmem:[#allocation2 + $0x180] sm:$0xff] }
 0x1df   : > { %v2876_v36 = vrot.slane %v2875_v34, 1  ;;  %v2889_v43 = vmax.f32 %v2887_v56, %v2888_v37  ;;  %v1763_v44 = vpop.permute.xlu0 %1762  ;;  %v2918_v61 = vrot.slane %v2917_v39, 1  ;;  %v2905_v60 = vmax.f32 %v2903_v30, %v2904_v45 }
 0x1e0   : > { %v2883_v41 = vrot.slane %v2882_v35, 1  ;;  %1847 = vst.msk [vmem:[#allocation3 + $0x60] sm:$0xff] %vm7386_vm9, %v1763_v44  ;;  %v1779_v46 = vpop.permute.xlu1 %1778  ;;  %vm7388_vm13 = vcmask 1046534   ;;  %v2912_v63 = vmax.f32 %v2910_v38, %v2911_v40  ;;  %v3476_v40 = vld [vmem:[#allocation4] sm:$0xff] }
 0x1e1   : > { %v2877_v48 = vmax.f32 %v2875_v34, %v2876_v36  ;;  %v2890_v33 = vrot.slane %v2889_v43, 1  ;;  %1855 = vst.msk [vmem:[#allocation3 + $0xa0] sm:$0xff] %vm7386_vm9, %v1779_v46  ;;  %1405 = vrot.lane.b32.xlu0 %v6328_v21, %s7401_s22  ;;  %v2919_v1 = vmax.f32 %v2917_v39, %v2918_v61  ;;  %v1703_v36 = vld [vmem:[#allocation2 + $0x189] sm:$0xff]  ;;  %v1511_v61 = vld [vmem:[#allocation2 + $0x198] sm:$0xff] }
 0x1e2   : > { %v2884_v49 = vmax.f32 %v2882_v35, %v2883_v41  ;;  %1597 = vrot.lane.b32.xlu1 %v6139_v42, %s5399_s16  ;;  %v1702_v35 = vld [vmem:[#allocation2 + $0x181] sm:$0xff]  ;;  %v1896_v46 = vld [vmem:[#allocation2 + $0x18a] sm:$0xff]  ;;  %3484 = vst.msk [vmem:[#allocation5] sm:$0xff] %vm7385_vm12, %v3476_v40 }
 0x1e3   : > { %v2891_v53 = vmax.f32 %v2889_v43, %v2890_v33  ;;  %v3397_v3 = vsel %vm7384_vm14, %v2877_v48, %v2870_v47  ;;  %v996_v54 = vpop.permute.xlu0 %995  ;;  %vm7387_vm14 = vcmask 1047559   ;;  %v1895_v43 = vld [vmem:[#allocation2 + $0x182] sm:$0xff] }
 0x1e4   : > { %v3399_v58 = vsel %vm3398_vm15, %v2884_v49, %v3397_v3  ;;  %1077 = vst.msk [vmem:[#allocation3 + $0x78] sm:$0xff] %vm1061_vm5, %v996_v54  ;;  %v1012_v59 = vpop.permute.xlu1 %1011  ;;  %v1512_v54 = vld [vmem:[#allocation2 + $0x1a0] sm:$0xff] }
 0x1e5   : > { %v3401_v62 = vsel %vm3400_vm0, %v2891_v53, %v3399_v58  ;;  %1085 = vst.msk [vmem:[#allocation3 + $0xb8] sm:$0xff] %vm1061_vm5, %v1012_v59  ;;  %830 = vrot.lane.b32.xlu0 %v6328_v21, %s7402_s23  ;;  %v1893_v21 = vld [vmem:[#allocation2 + $0x16a] sm:$0xff] }
 0x1e6   : > { %v3403_v2 = vsel %vm3402_vm1, %v2898_v57, %v3401_v62  ;;  %1021 = vrot.lane.b32.xlu1 %v6139_v42, %s5396_s28 }
 0x1e7   : > { %v3405_v13 = vsel %vm7389_vm2, %v2905_v60, %v3403_v2  ;;  %v1187_v4 = vpop.permute.xlu0 %1186 }
 0x1e8   : > { %v3407_v5 = vsel %vm7388_vm13, %v2912_v63, %v3405_v13  ;;  %1269 = vst.msk [vmem:[#allocation3 + $0x70] sm:$0xff] %vm1254_vm6, %v1187_v4  ;;  %v1203_v6 = vpop.permute.xlu1 %1202 }
 0x1e9   : > { %v3409_v7 = vsel %vm7387_vm14, %v2919_v1, %v3407_v5  ;;  %1277 = vst.msk [vmem:[#allocation3 + $0xb0] sm:$0xff] %vm1254_vm6, %v1203_v6  ;;  %1599 = vrot.lane.b32.xlu0 %v6157_v52, %s5399_s16  ;;  %v1704_v1 = vld [vmem:[#allocation2 + $0x199] sm:$0xff] }
 0x1ea   : > { %3468 = vst.msk [vmem:[#allocation4 + $0x11] sm:$0xff] %vm7385_vm12, %v3409_v7  ;;  %1790 = vrot.lane.b32.xlu1 %v1700_v8, %s5400_s24 }
 0x1eb   : > { %v1765_v42 = vpop.permute.xlu0 %1764  ;;  %v6367_v10 = vpop.f32.mrb[4].mxu0 }
 0x1ec   : > { %1848 = vst.msk [vmem:[#allocation3 + $0x68] sm:$0xff] %vm7386_vm9, %v1765_v42  ;;  %v1781_v11 = vpop.permute.xlu1 %1780  ;;  %v6370_v12 = vpop.f32.mrb[5].mxu0  ;;  %v2297_v48 = vadd.f32 %v6367_v10, %v6263_v9 }
 0x1ed   : > { %1856 = vst.msk [vmem:[#allocation3 + $0xa8] sm:$0xff] %vm7386_vm9, %v1781_v11  ;;  %1023 = vrot.lane.b32.xlu0 %v6157_v52, %s5396_s28  ;;  %v2292_v33 = vadd.f32 %v6263_v9, %v6370_v12  ;;  %v1897_v12 = vld [vmem:[#allocation2 + $0x19a] sm:$0xff] }
 0x1ee   : > { %1214 = vrot.lane.b32.xlu1 %v1700_v8, %s5397_s29  ;;  %v2435_v57 = vmax.f32 %v2297_v48, 0.0 }
 0x1ef   : > { %v1956_v20 = vpop.permute.xlu0 %1955  ;;  %v2434_v62 = vmax.f32 %v2292_v33, 0.0 }
 0x1f0   : > { %2040 = vst.msk [vmem:[#allocation3 + $0x60] sm:$0xff] %vm2027_vm10, %v1956_v20  ;;  %v1972_v14 = vpop.permute.xlu1 %1971  ;;  %v2472_v5 = vsel %vm7385_vm12, %v2435_v57, -inf }
 0x1f1   : > { %2048 = vst.msk [vmem:[#allocation3 + $0xa0] sm:$0xff] %vm2027_vm10, %v1972_v14  ;;  %1792 = vrot.lane.b32.xlu0 %v1701_v50, %s5400_s24  ;;  %v6379_v51 = vld [vmem:[#allocation4 + $0x10] sm:$0xff]  ;;  %v2469_v42 = vsel %vm7385_vm12, %v2434_v62, -inf }
 0x1f2   : > { %1983 = vrot.lane.b32.xlu1 %v1893_v21, %s5401_s26  ;;  %3485 = vst.msk [vmem:[#allocation5 + $0x10] sm:$0xff] %vm7385_vm12, %v6379_v51  ;;  %v1898_v14 = vld [vmem:[#allocation2 + $0x1a2] sm:$0xff] }
 0x1f3   : > { %v628_v52 = vpop.permute.xlu0 %627 }
 0x1f4   : > { %700 = vst.msk [vmem:[#allocation3 + $0xc0] sm:$0xff] %vm675_vm3, %v628_v52  ;;  %v1189_v15 = vpop.permute.xlu1 %1188 }
 0x1f5   : > { %1270 = vst.msk [vmem:[#allocation3 + $0x78] sm:$0xff] %vm1254_vm6, %v1189_v15  ;;  %639 = vrot.lane.b32.xlu0 %v1700_v8, %s7400_s21  ;;  %v1705_v8 = vld [vmem:[#allocation2 + $0x1a1] sm:$0xff] }
 0x1f6   : > { %1216 = vrot.lane.b32.xlu1 %v1701_v50, %s5397_s29 }
 0x1f7   : > { %v1205_v16 = vpop.permute.xlu0 %1204  ;;  %v2072_v17 = vld [vmem:[#allocation3 + $0x60] sm:$0xff] }
 0x1f8   : > { %1278 = vst.msk [vmem:[#allocation3 + $0xb8] sm:$0xff] %vm1254_vm6, %v1205_v16  ;;  %v1380_v22 = vpop.permute.xlu1 %1379  ;;  %5072 = vmatprep.mubr.msk.f32.mxu0 %vm2104_vm11, %v2072_v17  ;;  %v2080_v23 = vld [vmem:[#allocation3 + $0xa0] sm:$0xff] }
 0x1f9   : > { %1462 = vst.msk [vmem:[#allocation3 + $0x70] sm:$0xff] %vm1447_vm7, %v1380_v22  ;;  %1407 = vrot.lane.b32.xlu0 %v1893_v21, %s7401_s22  ;;  %5084 = vmatprep.mubr.msk.f32.mxu1 %vm2104_vm11, %v2080_v23 }
 0x1fa   : > { %1985 = vrot.lane.b32.xlu1 %v1894_v18, %s5401_s26 }
 0x1fb   : > { %v1396_v24 = vpop.permute.xlu0 %1395 }
 0x1fc   : > { %1470 = vst.msk [vmem:[#allocation3 + $0xb0] sm:$0xff] %vm1447_vm7, %v1396_v24  ;;  %v1958_v25 = vpop.permute.xlu1 %1957 }
 0x1fd   : > { %2041 = vst.msk [vmem:[#allocation3 + $0x68] sm:$0xff] %vm2027_vm10, %v1958_v25  ;;  %641 = vrot.lane.b32.xlu0 %v1701_v50, %s7400_s21 }
 0x1fe   : > { %832 = vrot.lane.b32.xlu1 %v1893_v21, %s7402_s23 }
 0x1ff   : > { %v1974_v19 = vpop.permute.xlu0 %1973 }
 0x200   : > { %2049 = vst.msk [vmem:[#allocation3 + $0xa8] sm:$0xff] %vm2027_vm10, %v1974_v19  ;;  %v630_v56 = vpop.permute.xlu1 %629 }
 0x201   : > { %701 = vst.msk [vmem:[#allocation3 + $0xc8] sm:$0xff] %vm675_vm3, %v630_v56  ;;  %1409 = vrot.lane.b32.xlu0 %v1894_v18, %s7401_s22 }
 0x202   : > { %1601 = vrot.lane.b32.xlu1 %v1509_v26, %s5399_s16 }
 0x203   : > { %v821_v27 = vpop.permute.xlu0 %820 }
 0x204   : > { %893 = vst.msk [vmem:[#allocation3 + $0xc0] sm:$0xff] %vm868_vm4, %v821_v27  ;;  %v1382_v29 = vpop.permute.xlu1 %1381  ;;  %v2073_v30 = vld [vmem:[#allocation3 + $0x68] sm:$0xff] }
 0x205   : > { %1463 = vst.msk [vmem:[#allocation3 + $0x78] sm:$0xff] %vm1447_vm7, %v1382_v29  ;;  %5073 = vmatmul.mubr.msk.f32.gmra.mrb[12].mxu0 %vm2104_vm11, %v2073_v30  ;;  %834 = vrot.lane.b32.xlu0 %v1894_v18, %s7402_s23 }
 0x206   : > { %1025 = vrot.lane.b32.xlu1 %v1509_v26, %s5396_s28  ;;  %v3492_v26 = vld [vmem:[#allocation4 + $0x1] sm:$0xff] }
 0x207   : > { %v1398_v32 = vpop.permute.xlu0 %1397  ;;  %v2081_v34 = vld [vmem:[#allocation3 + $0xa8] sm:$0xff] }
 0x208   : > { %1471 = vst.msk [vmem:[#allocation3 + $0xb8] sm:$0xff] %vm1447_vm7, %v1398_v32  ;;  %v1574_v37 = vpop.permute.xlu1 %1573  ;;  %5085 = vmatmul.mubr.msk.f32.gmra.mrb[4].mxu1 %vm2104_vm11, %v2081_v34  ;;  %v3541_v32 = vld [vmem:[#allocation4 + $0x2] sm:$0xff] }
 0x209   : > { %1656 = vst.msk [vmem:[#allocation3 + $0x70] sm:$0xff] %vm1641_vm8, %v1574_v37  ;;  %1603 = vrot.lane.b32.xlu0 %v1510_v31, %s5399_s16 }
 0x20a   : > { %1794 = vrot.lane.b32.xlu1 %v1702_v35, %s5400_s24 }
 0x20b   : > { %v1590_v38 = vpop.permute.xlu0 %1589 }
 0x20c   : > { %1664 = vst.msk [vmem:[#allocation3 + $0xb0] sm:$0xff] %vm1641_vm8, %v1590_v38  ;;  %v823_v39 = vpop.permute.xlu1 %822 }
 0x20d   : > { %894 = vst.msk [vmem:[#allocation3 + $0xc8] sm:$0xff] %vm868_vm4, %v823_v39  ;;  %1027 = vrot.lane.b32.xlu0 %v1510_v31, %s5396_s28  ;;  %s5403_s28 = smov 48  }
 0x20e   : > { %1218 = vrot.lane.b32.xlu1 %v1702_v35, %s5397_s29 }
 0x20f   : > { %v1014_v41 = vpop.permute.xlu0 %1013 }
 0x210   : > { %1086 = vst.msk [vmem:[#allocation3 + $0xc0] sm:$0xff] %vm1061_vm5, %v1014_v41  ;;  %v1576_v44 = vpop.permute.xlu1 %1575 }
 0x211   : > { %1657 = vst.msk [vmem:[#allocation3 + $0x78] sm:$0xff] %vm1641_vm8, %v1576_v44  ;;  %1796 = vrot.lane.b32.xlu0 %v1703_v36, %s5400_s24 }
 0x212   : > { %1987 = vrot.lane.b32.xlu1 %v1895_v43, %s5401_s26 }
 0x213   : > { %v1592_v28 = vpop.permute.xlu0 %1591 }
 0x214   : > { %1665 = vst.msk [vmem:[#allocation3 + $0xb8] sm:$0xff] %vm1641_vm8, %v1592_v28  ;;  %v1767_v45 = vpop.permute.xlu1 %1766 }
 0x215   : > { %1849 = vst.msk [vmem:[#allocation3 + $0x70] sm:$0xff] %vm7386_vm9, %v1767_v45  ;;  %1220 = vrot.lane.b32.xlu0 %v1703_v36, %s5397_s29 }
 0x216   : > { %1411 = vrot.lane.b32.xlu1 %v1895_v43, %s7401_s22 }
 0x217   : > { %v1783_v47 = vpop.permute.xlu0 %1782 }
 0x218   : > { %1857 = vst.msk [vmem:[#allocation3 + $0xb0] sm:$0xff] %vm7386_vm9, %v1783_v47  ;;  %v1016_v49 = vpop.permute.xlu1 %1015 }
 0x219   : > { %1087 = vst.msk [vmem:[#allocation3 + $0xc8] sm:$0xff] %vm1061_vm5, %v1016_v49  ;;  %1989 = vrot.lane.b32.xlu0 %v1896_v46, %s5401_s26 }
 0x21a   : > { %1413 = vrot.lane.b32.xlu1 %v1896_v46, %s7401_s22  ;;  %s5405_s22 = smov 80  }
 0x21b   : > { %v1207_v53 = vpop.permute.xlu0 %1206 }
 0x21c   : > { %v5065_v3 = vpop.f32.mrb[6].mxu0  ;;  %1279 = vst.msk [vmem:[#allocation3 + $0xc0] sm:$0xff] %vm1254_vm6, %v1207_v53  ;;  %v1769_v58 = vpop.permute.xlu1 %1768 }
 0x21d   : > { %v2307_v59 = vadd.f32 %v5065_v3, %v6263_v9  ;;  %v2301_v60 = vpop.f32.mrb[7].mxu0  ;;  %1850 = vst.msk [vmem:[#allocation3 + $0x78] sm:$0xff] %vm7386_vm9, %v1769_v58  ;;  %1605 = vrot.lane.b32.xlu0 %v1511_v61, %s5399_s16 }
 0x21e   : > { %v2302_v63 = vadd.f32 %v6263_v9, %v2301_v60  ;;  %1607 = vrot.lane.b32.xlu1 %v1512_v54, %s5399_s16  ;;  %s7394_s16 = smov 64  }
 0x21f   : > { %v2437_v2 = vmax.f32 %v2307_v59, 0.0  ;;  %v1785_v4 = vpop.permute.xlu0 %1784 }
 0x220   : > { %v2436_v13 = vmax.f32 %v2302_v63, 0.0  ;;  %1858 = vst.msk [vmem:[#allocation3 + $0xb8] sm:$0xff] %vm7386_vm9, %v1785_v4  ;;  %v1960_v7 = vpop.permute.xlu1 %1959 }
 0x221   : > { %v2473_v6 = vsel %vm7385_vm12, %v2437_v2, -inf  ;;  %2042 = vst.msk [vmem:[#allocation3 + $0x70] sm:$0xff] %vm2027_vm10, %v1960_v7  ;;  %1798 = vrot.lane.b32.xlu0 %v1704_v1, %s5400_s24  ;;  %v3639_v2 = vld [vmem:[#allocation4 + $0x11] sm:$0xff] }
 0x222   : > { %v2474_v10 = vmax.f32 %v2472_v5, %v2473_v6  ;;  %v2470_v9 = vsel %vm7385_vm12, %v2436_v13, -inf  ;;  %1800 = vrot.lane.b32.xlu1 %v1705_v8, %s5400_s24  ;;  %vm7403_vm12 = vcmask 123904   ;;  %s7457_s24 = smov 112  }
 0x223   : > { %v2471_v11 = vmax.f32 %v2469_v42, %v2470_v9  ;;  %v1976_v21 = vpop.permute.xlu0 %1975  ;;  %vm7404_vm9 = vmmov %vm7403_vm12 }
 0x224   : > { %v2578_v50 = vcombine.high %v2474_v10, %v2474_v10  ;;  %v2585_v20 = vrot.slane %v2474_v10, %v6288_v55  ;;  %2050 = vst.msk [vmem:[#allocation3 + $0xb0] sm:$0xff] %vm2027_vm10, %v1976_v21  ;;  %v632_v16 = vpop.permute.xlu1 %631  ;;  %vm7405_vm14 = vmmov %vm7404_vm9  ;;  %v3869_v21 = vld [vmem:[%s7370_s3 + $0x8] sm:$0xff] }
 0x225   : > { %v2561_v52 = vcombine.high %v2471_v11, %v2471_v11  ;;  %v2568_v15 = vrot.slane %v2471_v11, %v6288_v55  ;;  %702 = vst.msk [vmem:[#allocation3 + $0xd0] sm:$0xff] %vm675_vm3, %v632_v16  ;;  %1991 = vrot.lane.b32.xlu0 %v1897_v12, %s5401_s26  ;;  %vm7406_vm13 = vmmov %vm7404_vm9 }
 0x226   : > { %v2592_v17 = vrot.slane %v2578_v50, %v6288_v55  ;;  %v2593_v18 = vcombine.high %v2585_v20, %v2585_v20  ;;  %v2948_v22 = vsel %vm7403_vm12, %v2585_v20, -inf  ;;  %1993 = vrot.lane.b32.xlu1 %v1898_v14, %s5401_s26  ;;  %vm7407_vm12 = vmmov %vm7404_vm9  ;;  %v3868_v20 = vld [vmem:[%s7370_s3] sm:$0xff] }
 0x227   : > { %v2949_v23 = vrot.slane %v2948_v22, 4  ;;  %v2575_v24 = vrot.slane %v2561_v52, %v6288_v55  ;;  %v2576_v25 = vcombine.high %v2568_v15, %v2568_v15  ;;  %v2920_v19 = vsel %vm7404_vm9, %v2568_v15, -inf  ;;  %v1209_v31 = vpop.permute.xlu0 %1208  ;;  %vm7408_vm2 = vmmov %vm7404_vm9 }
 0x228   : > { %v2594_v56 = vcombine.high %v2592_v17, %v2592_v17  ;;  %v2955_v27 = vsel %vm7405_vm14, %v2593_v18, -inf  ;;  %v2962_v29 = vsel %vm7406_vm13, %v2592_v17, -inf  ;;  %v2921_v30 = vrot.slane %v2920_v19, 4  ;;  %1280 = vst.msk [vmem:[#allocation3 + $0xc8] sm:$0xff] %vm1254_vm6, %v1209_v31  ;;  %v1400_v39 = vpop.permute.xlu1 %1399  ;;  %v2074_v36 = vld [vmem:[#allocation3 + $0x70] sm:$0xff]  ;;  %vm7409_vm13 = vmmov %vm7408_vm2 }
 0x229   : > { %v2950_v34 = vmax.f32 %v2948_v22, %v2949_v23  ;;  %v2956_v35 = vrot.slane %v2955_v27, 4  ;;  %v2963_v37 = vrot.slane %v2962_v29, 4  ;;  %v2577_v38 = vcombine.high %v2575_v24, %v2575_v24  ;;  %1472 = vst.msk [vmem:[#allocation3 + $0xc0] sm:$0xff] %vm1447_vm7, %v1400_v39  ;;  %3508 = vrot.lane.b32.xlu0 %v3492_v26, %s5397_s29  ;;  %5075 = vmatprep.mubr.msk.f32.mxu0 %vm2104_vm11, %v2074_v36 }
 0x22a   : > { %v2969_v41 = vsel %vm7404_vm9, %v2594_v56, -inf  ;;  %v2922_v43 = vmax.f32 %v2920_v19, %v2921_v30  ;;  %v2927_v44 = vsel %vm7407_vm12, %v2576_v25, -inf  ;;  %v2934_v28 = vsel %vm7408_vm2, %v2575_v24, -inf  ;;  %3557 = vrot.lane.b32.xlu1 %v3541_v32, %s5401_s26  ;;  %v3870_v32 = vld [vmem:[%s7370_s3 + $0x10] sm:$0xff] }
 0x22b   : > { %v2957_v45 = vmax.f32 %v2955_v27, %v2956_v35  ;;  %v2964_v46 = vmax.f32 %v2962_v29, %v2963_v37  ;;  %v2970_v47 = vrot.slane %v2969_v41, 4  ;;  %v2928_v49 = vrot.slane %v2927_v44, 4  ;;  %v1962_v61 = vpop.permute.xlu0 %1961  ;;  %v2082_v53 = vld [vmem:[#allocation3 + $0xb0] sm:$0xff] }
 0x22c   : > { %v2923_v48 = vrot.slane %v2922_v43, 2  ;;  %v2935_v33 = vrot.slane %v2934_v28, 4  ;;  %v2941_v40 = vsel %vm7409_vm13, %v2577_v38, -inf  ;;  %v2951_v3 = vrot.slane %v2950_v34, 2  ;;  %2043 = vst.msk [vmem:[#allocation3 + $0x78] sm:$0xff] %vm2027_vm10, %v1962_v61  ;;  %v1978_v58 = vpop.permute.xlu1 %1977  ;;  %5087 = vmatprep.mubr.msk.f32.mxu1 %vm2104_vm11, %v2082_v53 }
 0x22d   : > { %v2958_v54 = vrot.slane %v2957_v45, 2  ;;  %v2971_v57 = vmax.f32 %v2969_v41, %v2970_v47  ;;  %v2929_v60 = vmax.f32 %v2927_v44, %v2928_v49  ;;  %v2942_v63 = vrot.slane %v2941_v40, 4  ;;  %2051 = vst.msk [vmem:[#allocation3 + $0xb8] sm:$0xff] %vm2027_vm10, %v1978_v58  ;;  %3606 = vrot.lane.b32.xlu0 %v6379_v51, %s5403_s28  ;;  %v3688_v51 = vld [vmem:[#allocation4 + $0x12] sm:$0xff] }
 0x22e   : > { %v2924_v59 = vmax.f32 %v2922_v43, %v2923_v48  ;;  %v2936_v62 = vmax.f32 %v2934_v28, %v2935_v33  ;;  %v2965_v1 = vrot.slane %v2964_v46, 2  ;;  %3655 = vrot.lane.b32.xlu1 %v3639_v2, %s7394_s16  ;;  %v2952_v7 = vmax.f32 %v2950_v34, %v2951_v3  ;;  %v3871_v34 = vld [vmem:[%s7370_s3 + $0x18] sm:$0xff]  ;;  %v3872_v47 = vld [vmem:[%s7370_s3 + $0x20] sm:$0xff]  ;;  %v3873_v48 = vld [vmem:[%s7370_s3 + $0x28] sm:$0xff] }
 0x22f   : > { %v2972_v13 = vrot.slane %v2971_v57, 2  ;;  %v2930_v4 = vrot.slane %v2929_v60, 2  ;;  %v2943_v5 = vmax.f32 %v2941_v40, %v2942_v63  ;;  %v634_v6 = vpop.permute.xlu0 %633  ;;  %v2959_v42 = vmax.f32 %v2957_v45, %v2958_v54 }
 0x230   : > { %v2937_v8 = vrot.slane %v2936_v62, 2  ;;  %703 = vst.msk [vmem:[#allocation3 + $0xd8] sm:$0xff] %vm675_vm3, %v634_v6  ;;  %v825_v10 = vpop.permute.xlu1 %824  ;;  %v2925_v9 = vrot.slane %v2924_v59, 1  ;;  %v2966_v14 = vmax.f32 %v2964_v46, %v2965_v1  ;;  %v5406_v23 = vmov 0.0|0.0   ;;  %v3876_v1 = vld [vmem:[%s7370_s3 + $0x40] sm:$0xff] }
 0x231   : > { %v2931_v11 = vmax.f32 %v2929_v60, %v2930_v4  ;;  %v2944_v50 = vrot.slane %v2943_v5, 2  ;;  %895 = vst.msk [vmem:[#allocation3 + $0xd0] sm:$0xff] %vm868_vm4, %v825_v10  ;;  %3510 = vrot.lane.b32.xlu0 %v3639_v2, %s5397_s29  ;;  %v2973_v52 = vmax.f32 %v2971_v57, %v2972_v13  ;;  %5156 = vmatprep.subr.bf16.mxu1 %v5406_v23  ;;  %v2953_v24 = vrot.slane %v2952_v7, 1  ;;  %v3875_v60 = vld [vmem:[%s7370_s3 + $0x38] sm:$0xff]  ;;  %v3877_v13 = vld [vmem:[%s7370_s3 + $0x48] sm:$0xff] }
 0x232   : > { %v2938_v12 = vmax.f32 %v2936_v62, %v2937_v8  ;;  %3704 = vrot.lane.b32.xlu1 %v3688_v51, %s5405_s22  ;;  %v2960_v25 = vrot.slane %v2959_v42, 1  ;;  %v5157_v56 = vpack.c.bf16 %v3869_v21, %v3868_v20  ;;  %v2926_v27 = vmax.f32 %v2924_v59, %v2925_v9  ;;  %v3874_v59 = vld [vmem:[%s7370_s3 + $0x30] sm:$0xff]  ;;  %v3879_v10 = vld [vmem:[%s7370_s3 + $0x58] sm:$0xff]  ;;  %v3881_v20 = vld [vmem:[%s7370_s3 + $0x68] sm:$0xff] }
 0x233   : > { %v2932_v15 = vrot.slane %v2931_v11, 1  ;;  %v2945_v17 = vmax.f32 %v2943_v5, %v2944_v50  ;;  %v1402_v18 = vpop.permute.xlu0 %1401  ;;  %v2075_v22 = vld [vmem:[#allocation3 + $0x78] sm:$0xff]  ;;  %v2967_v35 = vrot.slane %v2966_v14, 1  ;;  %v5160_v37 = vpack.c.bf16 %v3871_v34, %v3870_v32 }
 0x234   : > { %v2939_v16 = vrot.slane %v2938_v12, 1  ;;  %1473 = vst.msk [vmem:[#allocation3 + $0xc8] sm:$0xff] %vm1447_vm7, %v1402_v18  ;;  %v1594_v19 = vpop.permute.xlu1 %1593  ;;  %5076 = vmatmul.mubr.msk.f32.gmra.mrb[14].mxu0 %vm2104_vm11, %v2075_v22  ;;  %v2083_v26 = vld [vmem:[#allocation3 + $0xb8] sm:$0xff]  ;;  %5158 = vmatpush1.bf16.msra.mxu1 %v5157_v56  ;;  %v2974_v38 = vrot.slane %v2973_v52, 1  ;;  %vm7410_vm14 = vcmask 1041409   ;;  %v2954_v43 = vmax.f32 %v2952_v7, %v2953_v24 }
 0x235   : > { %v2933_v29 = vmax.f32 %v2931_v11, %v2932_v15  ;;  %v2946_v31 = vrot.slane %v2945_v17, 1  ;;  %1666 = vst.msk [vmem:[#allocation3 + $0xc0] sm:$0xff] %vm1641_vm8, %v1594_v19  ;;  %5088 = vmatmul.mubr.msk.f32.gmra.mrb[6].mxu1 %vm2104_vm11, %v2083_v26  ;;  %3559 = vrot.lane.b32.xlu0 %v3688_v51, %s5401_s26  ;;  %v2961_v45 = vmax.f32 %v2959_v42, %v2960_v25  ;;  %vm7411_vm2 = vcmask 1045509   ;;  %v3878_v42 = vld [vmem:[%s7370_s3 + $0x50] sm:$0xff]  ;;  %v3880_v51 = vld [vmem:[%s7370_s3 + $0x60] sm:$0xff]  ;;  %v3885_v19 = vld [vmem:[%s7370_s3 + $0x88] sm:$0xff] }
 0x236   : > { %v2940_v30 = vmax.f32 %v2938_v12, %v2939_v16  ;;  %5159 = vmatprep.subr.bf16.mxu1 %v5406_v23  ;;  %v2968_v49 = vmax.f32 %v2966_v14, %v2967_v35  ;;  %v5163_v40 = vpack.c.bf16 %v3873_v48, %v3872_v47  ;;  %v2975_v61 = vmax.f32 %v2973_v52, %v2974_v38  ;;  %v3882_v16 = vld [vmem:[%s7370_s3 + $0x70] sm:$0xff]  ;;  %v3884_v25 = vld [vmem:[%s7370_s3 + $0x80] sm:$0xff] }
 0x237   : > { %v2947_v39 = vmax.f32 %v2945_v17, %v2946_v31  ;;  %v3410_v36 = vsel %vm7410_vm14, %v2933_v29, %v2926_v27  ;;  %v827_v41 = vpop.permute.xlu0 %826  ;;  %vm7412_vm9 = vcmask 1046534   ;;  %vm7413_vm12 = vcmask 1047559   ;;  %v3883_v17 = vld [vmem:[%s7370_s3 + $0x78] sm:$0xff] }
 0x238   : > { %v3411_v44 = vsel %vm3398_vm15, %v2940_v30, %v3410_v36  ;;  %896 = vst.msk [vmem:[#allocation3 + $0xd8] sm:$0xff] %vm868_vm4, %v827_v41  ;;  %v1018_v28 = vpop.permute.xlu1 %1017  ;;  %5161 = vmatpush1.bf16.msra.mxu1 %v5160_v37  ;;  %vm7414_vm13 = vcmask 261344   ;;  %vm7415_vm14 = vcmask 130048   ;;  %v5166_v62 = vpack.c.bf16 %v3875_v60, %v3874_v59 }
 0x239   : > { %v3412_v46 = vsel %vm3400_vm0, %v2947_v39, %v3411_v44  ;;  %1088 = vst.msk [vmem:[#allocation3 + $0xd0] sm:$0xff] %vm1061_vm5, %v1018_v28  ;;  %5162 = vmatprep.subr.bf16.mxu1 %v5406_v23  ;;  %v5169_v8 = vpack.c.bf16 %v3877_v13, %v3876_v1  ;;  %v5172_v11 = vpack.c.bf16 %v3879_v10, %v3878_v42 }
 0x23a   : > { %v3413_v33 = vsel %vm3402_vm1, %v2954_v43, %v3412_v46  ;;  %v5175_v14 = vpack.c.bf16 %v3881_v20, %v3880_v51  ;;  %v5178_v22 = vpack.c.bf16 %v3883_v17, %v3882_v16  ;;  %v5181_v56 = vpack.c.bf16 %v3885_v19, %v3884_v25 }
 0x23b   : > { %v3414_v53 = vsel %vm7411_vm2, %v2961_v45, %v3413_v33  ;;  %v1596_v3 = vpop.permute.xlu0 %1595  ;;  %vm7416_vm2 = vmmov %vm7414_vm13 }
 0x23c   : > { %v3415_v54 = vsel %vm7412_vm9, %v2968_v49, %v3414_v53  ;;  %1667 = vst.msk [vmem:[#allocation3 + $0xc8] sm:$0xff] %vm1641_vm8, %v1596_v3  ;;  %v1787_v57 = vpop.permute.xlu1 %1786  ;;  %5164 = vmatpush1.bf16.msra.mxu1 %v5163_v40  ;;  %vm7417_vm9 = vmmov %vm7415_vm14 }
 0x23d   : > { %v3416_v58 = vsel %vm7413_vm12, %v2975_v61, %v3415_v54  ;;  %1859 = vst.msk [vmem:[#allocation3 + $0xc0] sm:$0xff] %vm7414_vm13, %v1787_v57  ;;  %5165 = vmatprep.subr.bf16.mxu1 %v5406_v23  ;;  %vm7418_vm12 = vmmov %vm7417_vm9 }
 0x23e   : > { %3469 = vst.msk [vmem:[#allocation4 + $0x21] sm:$0xff] %vm7415_vm14, %v3416_v58  ;;  %vm7419_vm13 = vmmov %vm7416_vm2 }
 0x23f   : > { %v1020_v63 = vpop.permute.xlu0 %1019  ;;  %vm7420_vm14 = vmmov %vm7416_vm2 }
 0x240   : > { %1089 = vst.msk [vmem:[#allocation3 + $0xd8] sm:$0xff] %vm1061_vm5, %v1020_v63  ;;  %v1211_v2 = vpop.permute.xlu1 %1210  ;;  %5167 = vmatpush1.bf16.msra.mxu1 %v5166_v62 }
 0x241   : > { %1281 = vst.msk [vmem:[#allocation3 + $0xd0] sm:$0xff] %vm1254_vm6, %v1211_v2  ;;  %5168 = vmatprep.subr.bf16.mxu1 %v5406_v23 }
 0x243   : > { %v1789_v4 = vpop.permute.xlu0 %1788 }
 0x244   : > { %1860 = vst.msk [vmem:[#allocation3 + $0xc8] sm:$0xff] %vm7416_vm2, %v1789_v4  ;;  %v1980_v5 = vpop.permute.xlu1 %1979  ;;  %5170 = vmatpush1.bf16.msra.mxu1 %v5169_v8 }
 0x245   : > { %2052 = vst.msk [vmem:[#allocation3 + $0xc0] sm:$0xff] %vm2027_vm10, %v1980_v5  ;;  %v3738_v6 = vld [vmem:[#allocation4 + $0x20] sm:$0xff]  ;;  %5171 = vmatprep.subr.bf16.mxu1 %v5406_v23 }
 0x246   : > { %v3689_v7 = vld [vmem:[#allocation4 + $0x22] sm:$0xff]  ;;  %3754 = vrot.lane.b32.xlu1 %v3738_v6, %s7396_s17  ;;  %3608 = vrot.lane.b32.xlu0 %v3738_v6, %s5403_s28  ;;  %3486 = vst.msk [vmem:[#allocation5 + $0x20] sm:$0xff] %vm7418_vm12, %v3738_v6 }
 0x247   : > { %3844 = vst.msk [vmem:[#allocation5 + $0x8] sm:$0xff] %vm7417_vm9, %v3689_v7  ;;  %v636_v9 = vpop.permute.xlu0 %635  ;;  %v3787_v50 = vld [vmem:[#allocation4 + $0x21] sm:$0xff]  ;;  %vm3728_vm9 = vcmask 786048  }
 0x248   : > { %704 = vst.msk [vmem:[#allocation3 + $0xe0] sm:$0xff] %vm675_vm3, %v636_v9  ;;  %v1213_v12 = vpop.permute.xlu1 %1212  ;;  %5173 = vmatpush1.bf16.msra.mxu1 %v5172_v11  ;;  %v6629_v11 = vld [vmem:[%s7369_s2] ss:$0 sm:$0xff] }
 0x249   : > { %1282 = vst.msk [vmem:[#allocation3 + $0xd8] sm:$0xff] %vm1254_vm6, %v1213_v12  ;;  %5174 = vmatprep.subr.bf16.mxu1 %v5406_v23 }
 0x24a   : > { %3803 = vrot.lane.b32.xlu1 %v3787_v50, %s7390_s14  ;;  %3657 = vrot.lane.b32.xlu0 %v3787_v50, %s7394_s16 }
 0x24b   : > { %v1404_v21 = vpop.permute.xlu0 %1403 }
 0x24c   : > { %1474 = vst.msk [vmem:[#allocation3 + $0xd0] sm:$0xff] %vm1447_vm7, %v1404_v21  ;;  %v1982_v52 = vpop.permute.xlu1 %1981  ;;  %v2084_v15 = vld [vmem:[#allocation3 + $0xc0] sm:$0xff]  ;;  %5176 = vmatpush1.bf16.msra.mxu1 %v5175_v14 }
 0x24d   : > { %2053 = vst.msk [vmem:[#allocation3 + $0xc8] sm:$0xff] %vm2027_vm10, %v1982_v52  ;;  %5090 = vmatprep.mubr.msk.f32.mxu1 %vm2104_vm11, %v2084_v15  ;;  %5177 = vmatprep.subr.bf16.mxu1 %v5406_v23 }
 0x24e   : > { %3512 = vrot.lane.b32.xlu1 %v3787_v50, %s5397_s29  ;;  %3706 = vrot.lane.b32.xlu0 %v3689_v7, %s5405_s22 }
 0x24f   : > { %v638_v18 = vpop.permute.xlu0 %637 }
 0x250   : > { %705 = vst.msk [vmem:[#allocation3 + $0xe8] sm:$0xff] %vm675_vm3, %v638_v18  ;;  %v829_v24 = vpop.permute.xlu1 %828  ;;  %5179 = vmatpush1.bf16.msra.mxu1 %v5178_v22 }
 0x251   : > { %897 = vst.msk [vmem:[#allocation3 + $0xe0] sm:$0xff] %vm868_vm4, %v829_v24  ;;  %5180 = vmatprep.subr.bf16.mxu1 %v5406_v23 }
 0x252   : > { %3561 = vrot.lane.b32.xlu1 %v3689_v7, %s5401_s26 }
 0x253   : > { %v1406_v26 = vpop.permute.xlu0 %1405 }
 0x254   : > { %1475 = vst.msk [vmem:[#allocation3 + $0xd8] sm:$0xff] %vm1447_vm7, %v1406_v26  ;;  %v1598_v27 = vpop.permute.xlu1 %1597  ;;  %v2085_v29 = vld [vmem:[#allocation3 + $0xc8] sm:$0xff]  ;;  %5182 = vmatpush1.bf16.msra.mxu1 %v5181_v56 }
 0x255   : > { %1668 = vst.msk [vmem:[#allocation3 + $0xd0] sm:$0xff] %vm1641_vm8, %v1598_v27  ;;  %5091 = vmatmul.mubr.msk.f32.gmra.mrb[8].mxu1 %vm2104_vm11, %v2085_v29  ;;  %5223 = vmatprep.subr.bf16.mxu1 %v5406_v23 }
 0x257   : > { %v831_v30 = vpop.permute.xlu0 %830 }
 0x258   : > { %898 = vst.msk [vmem:[#allocation3 + $0xe8] sm:$0xff] %vm868_vm4, %v831_v30  ;;  %v1022_v31 = vpop.permute.xlu1 %1021 }
 0x259   : > { %1090 = vst.msk [vmem:[#allocation3 + $0xe0] sm:$0xff] %vm1061_vm5, %v1022_v31 }
 0x25b   : > { %v1600_v32 = vpop.permute.xlu0 %1599  ;;  %v6587_v37 = vpop.f32.mrb[8].mxu0 }
 0x25c   : > { %v6584_v34 = vpop.f32.mrb[0].mxu1  ;;  %1669 = vst.msk [vmem:[#allocation3 + $0xd8] sm:$0xff] %vm1641_vm8, %v1600_v32  ;;  %v1791_v35 = vpop.permute.xlu1 %1790  ;;  %v2317_v12 = vadd.f32 %v6629_v11, %v6587_v37 }
 0x25d   : > { %1861 = vst.msk [vmem:[#allocation3 + $0xd0] sm:$0xff] %vm7419_vm13, %v1791_v35  ;;  %v6590_v38 = vpop.f32.mrb[9].mxu0  ;;  %v6592_v39 = vpop.f32.mrb[1].mxu1  ;;  %v2357_v51 = vadd.f32 %v6629_v11, %v6584_v34  ;;  %vm7424_vm13 = vmmov %vm7418_vm12 }
 0x25e   : > { %v2312_v20 = vadd.f32 %v6629_v11, %v6590_v38  ;;  %v2352_v21 = vadd.f32 %v6629_v11, %v6592_v39  ;;  %v2439_v15 = vmax.f32 %v2317_v12, 0.0 }
 0x25f   : > { %v1024_v36 = vpop.permute.xlu0 %1023  ;;  %v2447_v22 = vmax.f32 %v2357_v51, 0.0 }
 0x260   : > { %1091 = vst.msk [vmem:[#allocation3 + $0xe8] sm:$0xff] %vm1061_vm5, %v1024_v36  ;;  %v1215_v41 = vpop.permute.xlu1 %1214  ;;  %v2438_v24 = vmax.f32 %v2312_v20, 0.0  ;;  %v2446_v56 = vmax.f32 %v2352_v21, 0.0  ;;  %v2478_v35 = vsel %vm7418_vm12, %v2439_v15, -inf }
 0x261   : > { %1283 = vst.msk [vmem:[#allocation3 + $0xe0] sm:$0xff] %vm1254_vm6, %v1215_v41 }
 0x263   : > { %v1793_v43 = vpop.permute.xlu0 %1792 }
 0x264   : > { %1862 = vst.msk [vmem:[#allocation3 + $0xd8] sm:$0xff] %vm7420_vm14, %v1793_v43  ;;  %v1984_v44 = vpop.permute.xlu1 %1983  ;;  %vm7425_vm14 = vmmov %vm7418_vm12 }
 0x265   : > { %2054 = vst.msk [vmem:[#allocation3 + $0xd0] sm:$0xff] %vm2027_vm10, %v1984_v44  ;;  %v2490_v43 = vsel %vm7425_vm14, %v2447_v22, -inf }
 0x267   : > { %v640_v28 = vpop.permute.xlu0 %639 }
 0x268   : > { %706 = vst.msk [vmem:[#allocation3 + $0xf0] sm:$0xff] %vm675_vm3, %v640_v28  ;;  %v1217_v45 = vpop.permute.xlu1 %1216 }
 0x269   : > { %1284 = vst.msk [vmem:[#allocation3 + $0xe8] sm:$0xff] %vm1254_vm6, %v1217_v45 }
 0x26b   : > { %v1408_v46 = vpop.permute.xlu0 %1407 }
 0x26c   : > { %1476 = vst.msk [vmem:[#allocation3 + $0xe0] sm:$0xff] %vm1447_vm7, %v1408_v46  ;;  %v1986_v47 = vpop.permute.xlu1 %1985  ;;  %v2086_v48 = vld [vmem:[#allocation3 + $0xd0] sm:$0xff]  ;;  %v3853_v46 = vld [vmem:[#allocation5 + $0x8] sm:$0xff] }
 0x26d   : > { %2055 = vst.msk [vmem:[#allocation3 + $0xd8] sm:$0xff] %vm2027_vm10, %v1986_v47  ;;  %5093 = vmatprep.mubr.msk.f32.mxu1 %vm2104_vm11, %v2086_v48 }
 0x26f   : > { %v642_v49 = vpop.permute.xlu0 %641 }
 0x270   : > { %707 = vst.msk [vmem:[#allocation3 + $0xf8] sm:$0xff] %vm675_vm3, %v642_v49  ;;  %v833_v33 = vpop.permute.xlu1 %832  ;;  %vm7421_vm3 = vmmov %vm7416_vm2 }
 0x271   : > { %899 = vst.msk [vmem:[#allocation3 + $0xf0] sm:$0xff] %vm868_vm4, %v833_v33 }
 0x273   : > { %v1410_v40 = vpop.permute.xlu0 %1409 }
 0x274   : > { %1477 = vst.msk [vmem:[#allocation3 + $0xe8] sm:$0xff] %vm1447_vm7, %v1410_v40  ;;  %v1602_v61 = vpop.permute.xlu1 %1601  ;;  %v2087_v53 = vld [vmem:[#allocation3 + $0xd8] sm:$0xff] }
 0x275   : > { %1670 = vst.msk [vmem:[#allocation3 + $0xe0] sm:$0xff] %vm1641_vm8, %v1602_v61  ;;  %5094 = vmatmul.mubr.msk.f32.gmra.mrb[10].mxu1 %vm2104_vm11, %v2087_v53 }
 0x277   : > { %v835_v3 = vpop.permute.xlu0 %834 }
 0x278   : > { %900 = vst.msk [vmem:[#allocation3 + $0xf8] sm:$0xff] %vm868_vm4, %v835_v3  ;;  %v1026_v54 = vpop.permute.xlu1 %1025  ;;  %vm7422_vm4 = vmmov %vm7416_vm2 }
 0x279   : > { %1092 = vst.msk [vmem:[#allocation3 + $0xf0] sm:$0xff] %vm1061_vm5, %v1026_v54 }
 0x27b   : > { %v1604_v57 = vpop.permute.xlu0 %1603 }
 0x27c   : > { %1671 = vst.msk [vmem:[#allocation3 + $0xe8] sm:$0xff] %vm1641_vm8, %v1604_v57  ;;  %v1795_v58 = vpop.permute.xlu1 %1794 }
 0x27d   : > { %1863 = vst.msk [vmem:[#allocation3 + $0xe0] sm:$0xff] %vm7421_vm3, %v1795_v58  ;;  %vm7426_vm3 = vmmov %vm7418_vm12 }
 0x27e   : > { %v2475_v44 = vsel %vm7426_vm3, %v2438_v24, -inf }
 0x27f   : > { %v1028_v59 = vpop.permute.xlu0 %1027 }
 0x280   : > { %1093 = vst.msk [vmem:[#allocation3 + $0xf8] sm:$0xff] %vm1061_vm5, %v1028_v59  ;;  %v1219_v60 = vpop.permute.xlu1 %1218  ;;  %vm7423_vm5 = vmmov %vm7416_vm2 }
 0x281   : > { %1285 = vst.msk [vmem:[#allocation3 + $0xf0] sm:$0xff] %vm1254_vm6, %v1219_v60 }
 0x283   : > { %v1797_v62 = vpop.permute.xlu0 %1796 }
 0x284   : > { %1864 = vst.msk [vmem:[#allocation3 + $0xe8] sm:$0xff] %vm7416_vm2, %v1797_v62  ;;  %v1988_v63 = vpop.permute.xlu1 %1987  ;;  %vm7427_vm2 = vmmov %vm7426_vm3 }
 0x285   : > { %2056 = vst.msk [vmem:[#allocation3 + $0xe0] sm:$0xff] %vm2027_vm10, %v1988_v63  ;;  %vm7430_vm12 = vmmov %vm7427_vm2 }
 0x287   : > { %v1221_v2 = vpop.permute.xlu0 %1220 }
 0x288   : > { %1286 = vst.msk [vmem:[#allocation3 + $0xf8] sm:$0xff] %vm1254_vm6, %v1221_v2  ;;  %v1412_v1 = vpop.permute.xlu1 %1411  ;;  %vm7393_vm6 = vcmask 261248  }
 0x289   : > { %1478 = vst.msk [vmem:[#allocation3 + $0xf0] sm:$0xff] %vm1447_vm7, %v1412_v1 }
 0x28b   : > { %v1990_v13 = vpop.permute.xlu0 %1989 }
 0x28c   : > { %2057 = vst.msk [vmem:[#allocation3 + $0xe8] sm:$0xff] %vm2027_vm10, %v1990_v13  ;;  %v1414_v4 = vpop.permute.xlu1 %1413  ;;  %v2088_v8 = vld [vmem:[#allocation3 + $0xe0] sm:$0xff] }
 0x28d   : > { %1479 = vst.msk [vmem:[#allocation3 + $0xf8] sm:$0xff] %vm1447_vm7, %v1414_v4  ;;  %5096 = vmatprep.mubr.msk.f32.mxu1 %vm2104_vm11, %v2088_v8  ;;  %vm7392_vm7 = vcmask 392448  }
 0x28f   : > { %v1606_v5 = vpop.permute.xlu0 %1605 }
 0x290   : > { %1672 = vst.msk [vmem:[#allocation3 + $0xf0] sm:$0xff] %vm1641_vm8, %v1606_v5  ;;  %v1608_v6 = vpop.permute.xlu1 %1607 }
 0x291   : > { %1673 = vst.msk [vmem:[#allocation3 + $0xf8] sm:$0xff] %vm1641_vm8, %v1608_v6  ;;  %vm3630_vm8 = vcmask 523648  }
 0x293   : > { %v1799_v7 = vpop.permute.xlu0 %1798  ;;  %v2089_v42 = vld [vmem:[#allocation3 + $0xe8] sm:$0xff] }
 0x294   : > { %1865 = vst.msk [vmem:[#allocation3 + $0xf0] sm:$0xff] %vm7422_vm4, %v1799_v7  ;;  %v1801_v10 = vpop.permute.xlu1 %1800  ;;  %5097 = vmatmul.mubr.msk.f32.gmra.mrb[12].mxu1 %vm2104_vm11, %v2089_v42  ;;  %vm7428_vm4 = vmmov %vm7427_vm2 }
 0x295   : > { %1866 = vst.msk [vmem:[#allocation3 + $0xf8] sm:$0xff] %vm7423_vm5, %v1801_v10  ;;  %v2487_v47 = vsel %vm7428_vm4, %v2446_v56, -inf  ;;  %vm7429_vm5 = vmmov %vm7427_vm2 }
 0x297   : > { %v1992_v9 = vpop.permute.xlu0 %1991 }
 0x298   : > { %2058 = vst.msk [vmem:[#allocation3 + $0xf0] sm:$0xff] %vm2027_vm10, %v1992_v9  ;;  %v1994_v50 = vpop.permute.xlu1 %1993 }
 0x299   : > { %2059 = vst.msk [vmem:[#allocation3 + $0xf8] sm:$0xff] %vm2027_vm10, %v1994_v50  ;;  %vm3679_vm10 = vcmask 654848  }
 0x29b   : > { %v3509_v14 = vpop.permute.xlu0 %3508  ;;  %v5071_v52 = vpop.f32.mrb[10].mxu0 }
 0x29c   : > { %3533 = vst.msk [vmem:[#allocation5] sm:$0xff] %vm7393_vm6, %v3509_v14  ;;  %v5083_v16 = vpop.f32.mrb[2].mxu1  ;;  %v3558_v17 = vpop.permute.xlu1 %3557  ;;  %v2327_v18 = vadd.f32 %v6629_v11, %v5071_v52 }
 0x29d   : > { %v2367_v25 = vadd.f32 %v6629_v11, %v5083_v16  ;;  %3582 = vst.msk [vmem:[#allocation5] sm:$0xff] %vm7392_vm7, %v3558_v17  ;;  %v2321_v19 = vpop.f32.mrb[11].mxu0  ;;  %v2361_v26 = vpop.f32.mrb[3].mxu1 }
 0x29e   : > { %v2441_v27 = vmax.f32 %v2327_v18, 0.0  ;;  %v2322_v29 = vadd.f32 %v6629_v11, %v2321_v19  ;;  %v2362_v30 = vadd.f32 %v6629_v11, %v2361_v26 }
 0x29f   : > { %v2449_v31 = vmax.f32 %v2367_v25, 0.0  ;;  %v3607_v32 = vpop.permute.xlu0 %3606  ;;  %v2090_v34 = vld [vmem:[#allocation3 + $0xf0] sm:$0xff] }
 0x2a0   : > { %v2479_v37 = vsel %vm7424_vm13, %v2441_v27, -inf  ;;  %v2440_v38 = vmax.f32 %v2322_v29, 0.0  ;;  %v2448_v39 = vmax.f32 %v2362_v30, 0.0  ;;  %v3656_v36 = vpop.permute.xlu1 %3655  ;;  %3631 = vst.msk [vmem:[#allocation5] sm:$0xff] %vm3630_vm8, %v3607_v32  ;;  %5099 = vmatprep.mubr.msk.f32.mxu1 %vm2104_vm11, %v2090_v34  ;;  %v2091_v41 = vld [vmem:[#allocation3 + $0xf8] sm:$0xff]  ;;  %vm7431_vm13 = vmmov %vm7427_vm2 }
 0x2a1   : > { %v2491_v28 = vsel %vm7427_vm2, %v2449_v31, -inf  ;;  %v2480_v45 = vmax.f32 %v2478_v35, %v2479_v37  ;;  %5100 = vmatmul.mubr.msk.f32.gmra.mrb[14].mxu1 %vm2104_vm11, %v2091_v41  ;;  %3680 = vst.msk [vmem:[#allocation5] sm:$0xff] %vm3679_vm10, %v3656_v36  ;;  %vm7432_vm11 = vcmask 123904  }
 0x2a2   : > { %v2492_v48 = vmax.f32 %v2490_v43, %v2491_v28  ;;  %v2476_v49 = vsel %vm7429_vm5, %v2440_v38, -inf  ;;  %v2488_v33 = vsel %vm7430_vm12, %v2448_v39, -inf  ;;  %4931 = vmatprep.mubr.msk.f32.mxu1 %vm7431_vm13, %v3853_v46  ;;  %vm7433_vm14 = vmmov %vm7432_vm11 }
 0x2a3   : > { %v2612_v40 = vcombine.high %v2480_v45, %v2480_v45  ;;  %v2619_v61 = vrot.slane %v2480_v45, %v6288_v55  ;;  %v2477_v53 = vmax.f32 %v2475_v44, %v2476_v49  ;;  %v6661_v3 = vmax.f32 %v2487_v47, %v2488_v33  ;;  %v3511_v54 = vpop.permute.xlu0 %3510  ;;  %vm7434_vm3 = vmmov %vm7432_vm11 }
 0x2a4   : > { %v2680_v57 = vcombine.high %v2492_v48, %v2492_v48  ;;  %v2687_v58 = vrot.slane %v2492_v48, %v6288_v55  ;;  %v3705_v59 = vpop.permute.xlu1 %3704  ;;  %3534 = vst.msk [vmem:[#allocation5 + $0x10] sm:$0xff] %vm7393_vm6, %v3511_v54  ;;  %vm7435_vm2 = vmmov %vm7434_vm3 }
 0x2a5   : > { %v2626_v60 = vrot.slane %v2612_v40, %v6288_v55  ;;  %v2627_v62 = vcombine.high %v2619_v61, %v2619_v61  ;;  %v3004_v63 = vsel %vm7432_vm11, %v2619_v61, -inf  ;;  %3729 = vst.msk [vmem:[#allocation5] sm:$0xff] %vm3728_vm9, %v3705_v59  ;;  %vm7436_vm4 = vmmov %vm7435_vm2  ;;  %v2595_v34 = vcombine.high %v2477_v53, %v2477_v53 }
 0x2a6   : > { %v2694_v2 = vrot.slane %v2680_v57, %v6288_v55  ;;  %v2695_v1 = vcombine.high %v2687_v58, %v2687_v58  ;;  %v3116_v13 = vsel %vm7433_vm14, %v2687_v58, -inf  ;;  %v3005_v4 = vrot.slane %v3004_v63, 4  ;;  %vm7437_vm5 = vmmov %vm7435_vm2 }
 0x2a7   : > { %v3117_v8 = vrot.slane %v3116_v13, 4  ;;  %v2628_v5 = vcombine.high %v2626_v60, %v2626_v60  ;;  %v3011_v6 = vsel %vm7434_vm3, %v2627_v62, -inf  ;;  %v3018_v7 = vsel %vm7435_vm2, %v2626_v60, -inf  ;;  %v3560_v42 = vpop.permute.xlu0 %3559  ;;  %vm7438_vm12 = vmmov %vm7435_vm2 }
 0x2a8   : > { %v2696_v10 = vcombine.high %v2694_v2, %v2694_v2  ;;  %v3123_v9 = vsel %vm7436_vm4, %v2695_v1, -inf  ;;  %v3130_v12 = vsel %vm7437_vm5, %v2694_v2, -inf  ;;  %v3006_v50 = vmax.f32 %v3004_v63, %v3005_v4  ;;  %3583 = vst.msk [vmem:[#allocation5 + $0x10] sm:$0xff] %vm7392_vm7, %v3560_v42  ;;  %vm7439_vm13 = vmmov %vm7435_vm2 }
 0x2a9   : > { %v3118_v51 = vmax.f32 %v3116_v13, %v3117_v8  ;;  %v3124_v20 = vrot.slane %v3123_v9, 4  ;;  %v3131_v21 = vrot.slane %v3130_v12, 4  ;;  %v3012_v14 = vrot.slane %v3011_v6, 4  ;;  %vm7440_vm3 = vmmov %vm7435_vm2 }
 0x2aa   : > { %v3137_v52 = vsel %vm7438_vm12, %v2696_v10, -inf  ;;  %v3007_v15 = vrot.slane %v3006_v50, 2  ;;  %v3019_v16 = vrot.slane %v3018_v7, 4  ;;  %v3025_v17 = vsel %vm7439_vm13, %v2628_v5, -inf  ;;  %vm7441_vm4 = vmmov %vm7435_vm2 }
 0x2ab   : > { %v3119_v18 = vrot.slane %v3118_v51, 2  ;;  %v3125_v22 = vmax.f32 %v3123_v9, %v3124_v20  ;;  %v3132_v24 = vmax.f32 %v3130_v12, %v3131_v21  ;;  %v3138_v25 = vrot.slane %v3137_v52, 4  ;;  %vm7442_vm5 = vmmov %vm7435_vm2 }
 0x2ac   : > { %v3008_v19 = vmax.f32 %v3006_v50, %v3007_v15  ;;  %v3013_v26 = vmax.f32 %v3011_v6, %v3012_v14  ;;  %v3026_v56 = vrot.slane %v3025_v17, 4  ;;  %v3020_v27 = vmax.f32 %v3018_v7, %v3019_v16  ;;  %vm7443_vm12 = vmmov %vm7435_vm2 }
 0x2ad   : > { %v6677_v30 = vmax.f32 %v3118_v51, %v3119_v18  ;;  %v3126_v31 = vrot.slane %v3125_v22, 2  ;;  %v3133_v32 = vrot.slane %v3132_v24, 2  ;;  %v6679_v35 = vmax.f32 %v3137_v52, %v3138_v25  ;;  %vm7444_vm13 = vmmov %vm7435_vm2 }
 0x2ae   : > { %v3014_v29 = vrot.slane %v3013_v26, 2  ;;  %v3009_v37 = vrot.slane %v3008_v19, 1  ;;  %v3027_v38 = vmax.f32 %v3025_v17, %v3026_v56  ;;  %v3021_v39 = vrot.slane %v3020_v27, 2 }
 0x2af   : > { %v2602_v41 = vrot.slane %v2477_v53, %v6288_v55  ;;  %vm3778_vm11 = vcmask 917248   ;;  %vm3827_vm14 = vcmask 1048448   ;;  %v3121_v43 = vrot.slane %v6677_v30, 1 }
 0x2b0   : > { %v6681_v36 = vmax.f32 %v3013_v26, %v3014_v29  ;;  %v6685_v44 = vmax.f32 %v3125_v22, %v3126_v31  ;;  %v6687_v28 = vmax.f32 %v3132_v24, %v3133_v32  ;;  %v2609_v45 = vrot.slane %v2595_v34, %v6288_v55 }
 0x2b1   : > { %v3140_v46 = vrot.slane %v6679_v35, 2  ;;  %v6691_v47 = vmax.f32 %v3008_v19, %v3009_v37  ;;  %v3028_v48 = vrot.slane %v3027_v38, 2  ;;  %v2610_v49 = vcombine.high %v2602_v41, %v2602_v41 }
 0x2b2   : > { %v6693_v33 = vmax.f32 %v3020_v27, %v3021_v39  ;;  %v2611_v40 = vcombine.high %v2609_v45, %v2609_v45  ;;  %v2976_v61 = vsel %vm7440_vm3, %v2602_v41, -inf  ;;  %v2990_v53 = vsel %vm7435_vm2, %v2609_v45, -inf  ;;  %vm7445_vm3 = vmmov %vm7435_vm2 }
 0x2b3   : > { %v3016_v54 = vrot.slane %v6681_v36, 1  ;;  %v2977_v57 = vrot.slane %v2976_v61, 4  ;;  %v2983_v58 = vsel %vm7441_vm4, %v2610_v49, -inf  ;;  %v2991_v59 = vrot.slane %v2990_v53, 4 }
 0x2b4   : > { %v2984_v60 = vrot.slane %v2983_v58, 4  ;;  %v2997_v62 = vsel %vm7442_vm5, %v2611_v40, -inf  ;;  %v2663_v63 = vcombine.high %v6661_v3, %v6661_v3  ;;  %v2670_v2 = vrot.slane %v6661_v3, %v6288_v55 }
 0x2b5   : > { %v6704_v1 = vmax.f32 %v3027_v38, %v3028_v48  ;;  %v2978_v13 = vmax.f32 %v2976_v61, %v2977_v57  ;;  %v2992_v4 = vmax.f32 %v2990_v53, %v2991_v59  ;;  %v2998_v8 = vrot.slane %v2997_v62, 4 }
 0x2b6   : > { %v2985_v7 = vmax.f32 %v2983_v58, %v2984_v60  ;;  %v2677_v42 = vrot.slane %v2663_v63, %v6288_v55  ;;  %v2678_v10 = vcombine.high %v2670_v2, %v2670_v2  ;;  %v3088_v9 = vsel %vm7443_vm12, %v2670_v2, -inf }
 0x2b7   : > { %v2979_v12 = vrot.slane %v2978_v13, 2  ;;  %v2993_v50 = vrot.slane %v2992_v4, 2  ;;  %v2999_v3 = vmax.f32 %v2997_v62, %v2998_v8  ;;  %v3089_v51 = vrot.slane %v3088_v9, 4 }
 0x2b8   : > { %v3755_v5 = vpop.permute.xlu1 %3754  ;;  %v3609_v6 = vpop.permute.xlu0 %3608  ;;  %v2986_v20 = vrot.slane %v2985_v7, 2  ;;  %v2679_v21 = vcombine.high %v2677_v42, %v2677_v42  ;;  %v3095_v14 = vsel %vm7444_vm13, %v2678_v10, -inf  ;;  %v3102_v52 = vsel %vm7445_vm3, %v2677_v42, -inf }
 0x2b9   : > { %3779 = vst.msk [vmem:[#allocation5] sm:$0xff] %vm3778_vm11, %v3755_v5  ;;  %v2980_v15 = vmax.f32 %v2978_v13, %v2979_v12  ;;  %v2994_v16 = vmax.f32 %v2992_v4, %v2993_v50  ;;  %v3000_v17 = vrot.slane %v2999_v3, 2  ;;  %v3090_v18 = vmax.f32 %v3088_v9, %v3089_v51 }
 0x2ba   : > { %3632 = vst.msk [vmem:[#allocation5 + $0x10] sm:$0xff] %vm3630_vm8, %v3609_v6  ;;  %v2987_v25 = vmax.f32 %v2985_v7, %v2986_v20  ;;  %v3096_v19 = vrot.slane %v3095_v14, 4  ;;  %v3103_v26 = vrot.slane %v3102_v52, 4  ;;  %v3109_v56 = vsel %vm7435_vm2, %v2679_v21, -inf }
 0x2bb   : > { %v2981_v27 = vrot.slane %v2980_v15, 1  ;;  %v2995_v29 = vrot.slane %v2994_v16, 1  ;;  %v3001_v31 = vmax.f32 %v2999_v3, %v3000_v17  ;;  %v3091_v32 = vrot.slane %v3090_v18, 2 }
 0x2bc   : > { %v3804_v22 = vpop.permute.xlu1 %3803  ;;  %v3658_v24 = vpop.permute.xlu0 %3657  ;;  %v2988_v34 = vrot.slane %v2987_v25, 1  ;;  %v3097_v37 = vmax.f32 %v3095_v14, %v3096_v19  ;;  %v3104_v38 = vmax.f32 %v3102_v52, %v3103_v26  ;;  %v3110_v39 = vrot.slane %v3109_v56, 4 }
 0x2bd   : > { %3828 = vst.msk [vmem:[#allocation5] sm:$0xff] %vm3827_vm14, %v3804_v22  ;;  %v2982_v41 = vmax.f32 %v2980_v15, %v2981_v27  ;;  %v2996_v45 = vmax.f32 %v2994_v16, %v2995_v29  ;;  %v3002_v48 = vrot.slane %v3001_v31, 1  ;;  %v3092_v49 = vmax.f32 %v3090_v18, %v3091_v32 }
 0x2be   : > { %3681 = vst.msk [vmem:[#allocation5 + $0x10] sm:$0xff] %vm3679_vm10, %v3658_v24  ;;  %v2989_v53 = vmax.f32 %v2987_v25, %v2988_v34  ;;  %v3098_v57 = vrot.slane %v3097_v37, 2  ;;  %v3105_v58 = vrot.slane %v3104_v38, 2  ;;  %v3111_v59 = vmax.f32 %v3109_v56, %v3110_v39 }
 0x2bf   : > { %v3023_v60 = vrot.slane %v6693_v33, 1  ;;  %v3030_v62 = vrot.slane %v6704_v1, 1  ;;  %v3003_v63 = vmax.f32 %v3001_v31, %v3002_v48  ;;  %v3093_v2 = vrot.slane %v3092_v49, 1 }
 0x2c0   : > { %v3513_v40 = vpop.permute.xlu1 %3512  ;;  %v3707_v61 = vpop.permute.xlu0 %3706  ;;  %vm7446_vm4 = vcmask 1041409   ;;  %v3099_v4 = vmax.f32 %v3097_v37, %v3098_v57  ;;  %v3106_v8 = vmax.f32 %v3104_v38, %v3105_v58  ;;  %v3112_v5 = vrot.slane %v3111_v59, 2 }
 0x2c1   : > { %3535 = vst.msk [vmem:[#allocation5 + $0x20] sm:$0xff] %vm7393_vm6, %v3513_v40  ;;  %v3417_v13 = vsel %vm7446_vm4, %v2989_v53, %v2982_v41  ;;  %v3128_v6 = vrot.slane %v6685_v44, 1  ;;  %v3141_v7 = vmax.f32 %v6679_v35, %v3140_v46  ;;  %v3017_v42 = vmax.f32 %v6681_v36, %v3016_v54  ;;  %vm7450_vm3 = vmmov %vm7446_vm4 }
 0x2c2   : > { %3730 = vst.msk [vmem:[#allocation5 + $0x10] sm:$0xff] %vm3728_vm9, %v3707_v61  ;;  %v3418_v10 = vsel %vm3398_vm15, %v2996_v45, %v3417_v13  ;;  %v3100_v3 = vrot.slane %v3099_v4, 1  ;;  %v3107_v51 = vrot.slane %v3106_v8, 1  ;;  %v3113_v20 = vmax.f32 %v3111_v59, %v3112_v5 }
 0x2c3   : > { %v3419_v50 = vsel %vm3400_vm0, %v3003_v63, %v3418_v10  ;;  %v3024_v21 = vmax.f32 %v6693_v33, %v3023_v60  ;;  %v3031_v35 = vmax.f32 %v6704_v1, %v3030_v62  ;;  %v3094_v36 = vmax.f32 %v3092_v49, %v3093_v2 }
 0x2c4   : > { %v3562_v9 = vpop.permute.xlu1 %3561  ;;  %v3852_v12 = vld [vmem:[#allocation5] sm:$0xff]  ;;  %v3420_v46 = vsel %vm3402_vm1, %v6691_v47, %v3419_v50  ;;  %vm7447_vm5 = vcmask 1045509   ;;  %v3101_v14 = vmax.f32 %v3099_v4, %v3100_v3  ;;  %v3108_v52 = vmax.f32 %v3106_v8, %v3107_v51 }
 0x2c5   : > { %3584 = vst.msk [vmem:[#allocation5 + $0x20] sm:$0xff] %vm7392_vm7, %v3562_v9  ;;  %3982 = vmatmul.mubr.f32.vlgmr.msra.gmra.mrb[16].mxu1 %v3852_v12  ;;  %v3421_v54 = vsel %vm7447_vm5, %v3017_v42, %v3420_v46  ;;  %v3114_v15 = vrot.slane %v3113_v20, 1  ;;  %v3135_v16 = vrot.slane %v6687_v28, 1  ;;  %vm7448_vm12 = vcmask 1046534   ;;  %vm7452_vm4 = vmmov %vm7447_vm5 }
 0x2c6   : > { %v3422_v17 = vsel %vm7448_vm12, %v3024_v21, %v3421_v54  ;;  %v3142_v18 = vrot.slane %v3141_v7, 1  ;;  %vm7449_vm13 = vcmask 1047559   ;;  %v3431_v33 = vsel %vm7450_vm3, %v3101_v14, %v3094_v36  ;;  %vm7453_vm5 = vmmov %vm7448_vm12 }
 0x2c7   : > { %v3423_v22 = vsel %vm7449_vm13, %v3031_v35, %v3422_v17  ;;  %v3115_v24 = vmax.f32 %v3113_v20, %v3114_v15  ;;  %v3122_v47 = vmax.f32 %v6677_v30, %v3121_v43  ;;  %vm7451_vm2 = vcmask 130048   ;;  %vm7454_vm12 = vmmov %vm7449_vm13 }
 0x2c8   : > { %3470 = vst.msk [vmem:[#allocation4 + $0x31] sm:$0xff] %vm7451_vm2, %v3423_v22  ;;  %v3432_v1 = vsel %vm3398_vm15, %v3108_v52, %v3431_v33  ;;  %v3129_v25 = vmax.f32 %v6685_v44, %v3128_v6  ;;  %v3136_v26 = vmax.f32 %v6687_v28, %v3135_v16  ;;  %v3143_v27 = vmax.f32 %v3141_v7, %v3142_v18  ;;  %vm7455_vm13 = vmmov %vm7451_vm2 }
 0x2c9   : > { %v3433_v19 = vsel %vm3400_vm0, %v3115_v24, %v3432_v1  ;;  %vm7456_vm3 = vmmov %vm7451_vm2 }
 0x2ca   : > { %v3434_v56 = vsel %vm3402_vm1, %v3122_v47, %v3433_v19  ;;  %vm7466_vm7 = vmmov %vm7451_vm2 }
 0x2cb   : > { %v3435_v29 = vsel %vm7452_vm4, %v3129_v25, %v3434_v56  ;;  %vm7458_vm4 = vmmov %vm7451_vm2 }
 0x2cc   : > { %v3436_v31 = vsel %vm7453_vm5, %v3136_v26, %v3435_v29  ;;  %vm7459_vm5 = vmmov %vm7451_vm2 }
 0x2cd   : > { %v3437_v32 = vsel %vm7454_vm12, %v3143_v27, %v3436_v31  ;;  %vm7460_vm12 = vmmov %vm7451_vm2 }
 0x2ce   : > { %3472 = vst.msk [vmem:[#allocation4 + $0x51] sm:$0xff] %vm7455_vm13, %v3437_v32  ;;  %vm7461_vm13 = vmmov %vm7451_vm2 }
 0x2cf   : > { %v3592_v30 = vld [vmem:[#allocation4 + $0x30] sm:$0xff]  ;;  %vm7467_vm6 = vmmov %vm7451_vm2 }
 0x2d0   : > { %v3690_v43 = vld [vmem:[#allocation4 + $0x32] sm:$0xff]  ;;  %3610 = vrot.lane.b32.xlu1 %v3592_v30, %s5403_s28  ;;  %3756 = vrot.lane.b32.xlu0 %v3592_v30, %s7396_s17  ;;  %3487 = vst.msk [vmem:[#allocation5 + $0x30] sm:$0xff] %vm7451_vm2, %v3592_v30 }
 0x2d1   : > { %3845 = vst.msk [vmem:[#allocation5 + $0x18] sm:$0xff] %vm7456_vm3, %v3690_v43  ;;  %v3641_v44 = vld [vmem:[#allocation4 + $0x31] sm:$0xff]  ;;  %vm7462_vm3 = vmmov %vm7451_vm2 }
 0x2d4   : > { %3659 = vrot.lane.b32.xlu1 %v3641_v44, %s7394_s16  ;;  %3805 = vrot.lane.b32.xlu0 %v3641_v44, %s7457_s24 }
 0x2d5   : > { %v6758_v28 = vld [vmem:[#allocation4 + $0x50] sm:$0xff] }
 0x2d6   : > { %v6760_v34 = vld [vmem:[#allocation4 + $0x52] sm:$0xff]  ;;  %3489 = vst.msk [vmem:[#allocation5 + $0x50] sm:$0xff] %vm7459_vm5, %v6758_v28  ;;  %vm7464_vm5 = vmmov %vm7451_vm2 }
 0x2d7   : > { %3847 = vst.msk [vmem:[#allocation5 + $0x38] sm:$0xff] %vm7458_vm4, %v6760_v34  ;;  %vm7463_vm4 = vmmov %vm7451_vm2 }
 0x2d8   : > { %v5074_v37 = vpop.f32.mrb[12].mxu0  ;;  %v3855_v38 = vld [vmem:[#allocation5 + $0x18] sm:$0xff]  ;;  %3708 = vrot.lane.b32.xlu1 %v3690_v43, %s5405_s22  ;;  %3514 = vrot.lane.b32.xlu0 %v3641_v44, %s5397_s29 }
 0x2d9   : > { %v2331_v39 = vpop.f32.mrb[13].mxu0  ;;  %4932 = vmatprep.mubr.msk.f32.mxu1 %vm7460_vm12, %v3855_v38  ;;  %v2337_v48 = vadd.f32 %v6629_v11, %v5074_v37  ;;  %vm7465_vm12 = vmmov %vm7451_vm2 }
 0x2da   : > { %v2332_v49 = vadd.f32 %v6629_v11, %v2331_v39 }
 0x2db   : > { %v5086_v41 = vpop.f32.mrb[4].mxu1  ;;  %v2443_v57 = vmax.f32 %v2337_v48, 0.0 }
 0x2dc   : > { %v2371_v45 = vpop.f32.mrb[5].mxu1  ;;  %3563 = vrot.lane.b32.xlu0 %v3690_v43, %s5401_s26  ;;  %v2377_v40 = vadd.f32 %v6629_v11, %v5086_v41  ;;  %v2442_v58 = vmax.f32 %v2332_v49, 0.0 }
 0x2dd   : > { %v2372_v61 = vadd.f32 %v6629_v11, %v2371_v45  ;;  %v2484_v10 = vsel %vm7461_vm13, %v2443_v57, -inf  ;;  %vm7468_vm13 = vcmask 123904  }
 0x2de   : > { %v2451_v63 = vmax.f32 %v2377_v40, 0.0  ;;  %v2481_v9 = vsel %vm7462_vm3, %v2442_v58, -inf }
 0x2df   : > { %v2450_v8 = vmax.f32 %v2372_v61, 0.0 }
 0x2e0   : > { %v2496_v3 = vsel %vm7463_vm4, %v2451_v63, -inf }
 0x2e1   : > { %v2493_v35 = vsel %vm7466_vm7, %v2450_v8, -inf  ;;  %vm7469_vm7 = vmmov %vm7468_vm13 }
 0x307   : > { %v5077_v53 = vpop.f32.mrb[14].mxu0 }
 0x308   : > { %v2347_v59 = vadd.f32 %v6629_v11, %v5077_v53  ;;  %v5089_v60 = vpop.f32.mrb[6].mxu1  ;;  %v2341_v62 = vpop.f32.mrb[15].mxu0 }
 0x309   : > { %v2387_v2 = vadd.f32 %v6629_v11, %v5089_v60  ;;  %v2342_v13 = vadd.f32 %v6629_v11, %v2341_v62  ;;  %v2381_v4 = vpop.f32.mrb[7].mxu1 }
 0x30a   : > { %v2445_v5 = vmax.f32 %v2347_v59, 0.0  ;;  %v2382_v6 = vadd.f32 %v6629_v11, %v2381_v4 }
 0x30b   : > { %v2453_v7 = vmax.f32 %v2387_v2, 0.0  ;;  %v2444_v42 = vmax.f32 %v2342_v13, 0.0 }
 0x30c   : > { %v2485_v12 = vsel %vm7451_vm2, %v2445_v5, -inf  ;;  %v2452_v50 = vmax.f32 %v2382_v6, 0.0 }
 0x30d   : > { %v2486_v51 = vmax.f32 %v2484_v10, %v2485_v12  ;;  %v2497_v20 = vsel %vm7464_vm5, %v2453_v7, -inf  ;;  %v2482_v21 = vsel %vm7465_vm12, %v2444_v42, -inf }
 0x30e   : > { %v2498_v46 = vmax.f32 %v2496_v3, %v2497_v20  ;;  %v2483_v36 = vmax.f32 %v2481_v9, %v2482_v21  ;;  %v2494_v54 = vsel %vm7467_vm6, %v2452_v50, -inf  ;;  %vm7470_vm6 = vmmov %vm7469_vm7 }
 0x30f   : > { %v2646_v14 = vcombine.high %v2486_v51, %v2486_v51  ;;  %v2653_v52 = vrot.slane %v2486_v51, %v6288_v55  ;;  %v6787_v15 = vmax.f32 %v2493_v35, %v2494_v54  ;;  %vm7471_vm3 = vmmov %vm7470_vm6 }
 0x310   : > { %v2714_v16 = vcombine.high %v2498_v46, %v2498_v46  ;;  %v2721_v17 = vrot.slane %v2498_v46, %v6288_v55  ;;  %vm7472_vm2 = vmmov %vm7471_vm3  ;;  %v2629_v63 = vcombine.high %v2483_v36, %v2483_v36  ;;  %v2636_v8 = vrot.slane %v2483_v36, %v6288_v55 }
 0x311   : > { %v2660_v18 = vrot.slane %v2646_v14, %v6288_v55  ;;  %v2661_v22 = vcombine.high %v2653_v52, %v2653_v52  ;;  %v3060_v24 = vsel %vm7468_vm13, %v2653_v52, -inf  ;;  %vm7473_vm4 = vmmov %vm7472_vm2  ;;  %v2697_v12 = vcombine.high %v6787_v15, %v6787_v15 }
 0x312   : > { %v3061_v33 = vrot.slane %v3060_v24, 4  ;;  %v2728_v47 = vrot.slane %v2714_v16, %v6288_v55  ;;  %v2729_v1 = vcombine.high %v2721_v17, %v2721_v17  ;;  %v3172_v25 = vsel %vm7469_vm7, %v2721_v17, -inf  ;;  %vm7474_vm5 = vmmov %vm7472_vm2 }
 0x313   : > { %v2662_v19 = vcombine.high %v2660_v18, %v2660_v18  ;;  %v3067_v26 = vsel %vm7470_vm6, %v2661_v22, -inf  ;;  %v3074_v56 = vsel %vm7471_vm3, %v2660_v18, -inf  ;;  %v3173_v27 = vrot.slane %v3172_v25, 4  ;;  %vm7475_vm12 = vmmov %vm7472_vm2 }
 0x314   : > { %v3062_v29 = vmax.f32 %v3060_v24, %v3061_v33  ;;  %v3068_v31 = vrot.slane %v3067_v26, 4  ;;  %v3075_v32 = vrot.slane %v3074_v56, 4  ;;  %v2730_v30 = vcombine.high %v2728_v47, %v2728_v47  ;;  %vm7476_vm13 = vmmov %vm7472_vm2 }
 0x315   : > { %v3081_v43 = vsel %vm7472_vm2, %v2662_v19, -inf  ;;  %v3174_v44 = vmax.f32 %v3172_v25, %v3173_v27  ;;  %v3179_v37 = vsel %vm7473_vm4, %v2729_v1, -inf  ;;  %v3186_v38 = vsel %vm7474_vm5, %v2728_v47, -inf  ;;  %vm7477_vm7 = vmmov %vm7472_vm2 }
 0x316   : > { %v3063_v39 = vrot.slane %v3062_v29, 2  ;;  %v3069_v41 = vmax.f32 %v3067_v26, %v3068_v31  ;;  %v3076_v45 = vmax.f32 %v3074_v56, %v3075_v32  ;;  %v3082_v48 = vrot.slane %v3081_v43, 4  ;;  %vm7478_vm6 = vmmov %vm7472_vm2 }
 0x317   : > { %v3175_v49 = vrot.slane %v3174_v44, 2  ;;  %v3180_v40 = vrot.slane %v3179_v37, 4  ;;  %v3187_v61 = vrot.slane %v3186_v38, 4  ;;  %v3193_v57 = vsel %vm7475_vm12, %v2730_v30, -inf  ;;  %vm7479_vm3 = vmmov %vm7472_vm2 }
 0x318   : > { %v3064_v53 = vmax.f32 %v3062_v29, %v3063_v39  ;;  %v3070_v58 = vrot.slane %v3069_v41, 2  ;;  %v3077_v59 = vrot.slane %v3076_v45, 2  ;;  %v3083_v60 = vmax.f32 %v3081_v43, %v3082_v48  ;;  %vm7480_vm4 = vmmov %vm7472_vm2 }
 0x319   : > { %v6800_v62 = vmax.f32 %v3174_v44, %v3175_v49  ;;  %v3181_v2 = vmax.f32 %v3179_v37, %v3180_v40  ;;  %v6802_v13 = vmax.f32 %v3186_v38, %v3187_v61  ;;  %v3194_v4 = vrot.slane %v3193_v57, 4  ;;  %vm7481_vm5 = vmmov %vm7472_vm2 }
 0x31a   : > { %v3065_v5 = vrot.slane %v3064_v53, 1  ;;  %v6805_v6 = vmax.f32 %v3069_v41, %v3070_v58  ;;  %v6807_v7 = vmax.f32 %v3076_v45, %v3077_v59  ;;  %v3084_v42 = vrot.slane %v3083_v60, 2  ;;  %vm7482_vm12 = vmmov %vm7472_vm2 }
 0x31b   : > { %v3177_v10 = vrot.slane %v6800_v62, 1  ;;  %v2643_v9 = vrot.slane %v2629_v63, %v6288_v55  ;;  %v3182_v50 = vrot.slane %v3181_v2, 2  ;;  %v3189_v3 = vrot.slane %v6802_v13, 2 }
 0x31c   : > { %v6814_v51 = vmax.f32 %v3193_v57, %v3194_v4  ;;  %v2644_v20 = vcombine.high %v2636_v8, %v2636_v8  ;;  %v6816_v21 = vmax.f32 %v3064_v53, %v3065_v5  ;;  %v3032_v46 = vsel %vm7476_vm13, %v2636_v8, -inf }
 0x31d   : > { %v2645_v35 = vcombine.high %v2643_v9, %v2643_v9  ;;  %v3046_v36 = vsel %vm7477_vm7, %v2643_v9, -inf  ;;  %v3072_v54 = vrot.slane %v6805_v6, 1  ;;  %v3079_v14 = vrot.slane %v6807_v7, 1 }
 0x31e   : > { %v6822_v52 = vmax.f32 %v3083_v60, %v3084_v42  ;;  %v3033_v16 = vrot.slane %v3032_v46, 4  ;;  %v3039_v17 = vsel %vm7478_vm6, %v2644_v20, -inf  ;;  %v3047_v18 = vrot.slane %v3046_v36, 4 }
 0x31f   : > { %v3053_v22 = vsel %vm7479_vm3, %v2645_v35, -inf  ;;  %v2704_v24 = vrot.slane %v6787_v15, %v6288_v55  ;;  %v6828_v33 = vmax.f32 %v3181_v2, %v3182_v50  ;;  %v3040_v1 = vrot.slane %v3039_v17, 4 }
 0x320   : > { %v3034_v47 = vmax.f32 %v3032_v46, %v3033_v16  ;;  %v3054_v25 = vrot.slane %v3053_v22, 4  ;;  %v3048_v19 = vmax.f32 %v3046_v36, %v3047_v18  ;;  %v2711_v26 = vrot.slane %v2697_v12, %v6288_v55 }
 0x321   : > { %v2712_v56 = vcombine.high %v2704_v24, %v2704_v24  ;;  %v3144_v27 = vsel %vm7472_vm2, %v2704_v24, -inf  ;;  %v3041_v31 = vmax.f32 %v3039_v17, %v3040_v1  ;;  %v3196_v42 = vrot.slane %v6814_v51, 2 }
 0x322   : > { %v3035_v29 = vrot.slane %v3034_v47, 2  ;;  %v3055_v32 = vmax.f32 %v3053_v22, %v3054_v25  ;;  %v3145_v30 = vrot.slane %v3144_v27, 4  ;;  %v3049_v43 = vrot.slane %v3048_v19, 2 }
 0x323   : > { %v2713_v44 = vcombine.high %v2711_v26, %v2711_v26  ;;  %v3151_v37 = vsel %vm7480_vm4, %v2712_v56, -inf  ;;  %v3158_v15 = vsel %vm7481_vm5, %v2711_v26, -inf  ;;  %v3042_v39 = vrot.slane %v3041_v31, 2 }
 0x324   : > { %v3036_v38 = vmax.f32 %v3034_v47, %v3035_v29  ;;  %v3056_v41 = vrot.slane %v3055_v32, 2  ;;  %v3146_v45 = vmax.f32 %v3144_v27, %v3145_v30  ;;  %v3050_v48 = vmax.f32 %v3048_v19, %v3049_v43 }
 0x325   : > { %v3152_v49 = vrot.slane %v3151_v37, 4  ;;  %v3159_v40 = vrot.slane %v3158_v15, 4  ;;  %v3165_v61 = vsel %vm7482_vm12, %v2713_v44, -inf  ;;  %v3043_v58 = vmax.f32 %v3041_v31, %v3042_v39 }
 0x326   : > { %v3037_v57 = vrot.slane %v3036_v38, 1  ;;  %v3057_v59 = vmax.f32 %v3055_v32, %v3056_v41  ;;  %v3147_v60 = vrot.slane %v3146_v45, 2  ;;  %v3051_v2 = vrot.slane %v3050_v48, 1 }
 0x327   : > { %v3153_v4 = vmax.f32 %v3151_v37, %v3152_v49  ;;  %v3160_v8 = vmax.f32 %v3158_v15, %v3159_v40  ;;  %v3166_v5 = vrot.slane %v3165_v61, 4  ;;  %v3044_v9 = vrot.slane %v3043_v58, 1 }
 0x328   : > { %v6835_v53 = vpop.f32.mrb[8].mxu1  ;;  %v3058_v12 = vrot.slane %v3057_v59, 1  ;;  %v3148_v50 = vmax.f32 %v3146_v45, %v3147_v60  ;;  %v3052_v20 = vmax.f32 %v3050_v48, %v3051_v2  ;;  %v3038_v16 = vmax.f32 %v3036_v38, %v3037_v57 }
 0x329   : > { %v6837_v63 = vpop.f32.mrb[9].mxu1  ;;  %v3154_v35 = vrot.slane %v3153_v4, 2  ;;  %v3161_v46 = vrot.slane %v3160_v8, 2  ;;  %v3167_v36 = vmax.f32 %v3165_v61, %v3166_v5  ;;  %v3045_v17 = vmax.f32 %v3043_v58, %v3044_v9 }
 0x32a   : > { %v3059_v18 = vmax.f32 %v3057_v59, %v3058_v12  ;;  %v3149_v22 = vrot.slane %v3148_v50, 1  ;;  %v3190_v24 = vmax.f32 %v6802_v13, %v3189_v3  ;;  %v3073_v19 = vmax.f32 %v6805_v6, %v3072_v54 }
 0x32b   : > { %v3155_v47 = vmax.f32 %v3153_v4, %v3154_v35  ;;  %v3162_v1 = vmax.f32 %v3160_v8, %v3161_v46  ;;  %v3168_v25 = vrot.slane %v3167_v36, 2  ;;  %v3086_v26 = vrot.slane %v6822_v52, 1 }
 0x32c   : > { %v3197_v56 = vmax.f32 %v6814_v51, %v3196_v42  ;;  %vm7483_vm13 = vcmask 1041409   ;;  %v3080_v13 = vmax.f32 %v6807_v7, %v3079_v14  ;;  %v3184_v3 = vrot.slane %v6828_v33, 1 }
 0x32d   : > { %v3424_v27 = vsel %vm7483_vm13, %v3045_v17, %v3038_v16  ;;  %v3156_v31 = vrot.slane %v3155_v47, 1  ;;  %v3163_v32 = vrot.slane %v3162_v1, 1  ;;  %v3169_v30 = vmax.f32 %v3167_v36, %v3168_v25  ;;  %vm7486_vm3 = vmmov %vm7483_vm13 }
 0x32e   : > { %v3425_v29 = vsel %vm3398_vm15, %v3052_v20, %v3424_v27  ;;  %v3150_v6 = vmax.f32 %v3148_v50, %v3149_v22  ;;  %v3087_v15 = vmax.f32 %v6822_v52, %v3086_v26  ;;  %v3191_v38 = vrot.slane %v3190_v24, 1 }
 0x32f   : > { %v3426_v43 = vsel %vm3400_vm0, %v3059_v18, %v3425_v29  ;;  %v3157_v51 = vmax.f32 %v3155_v47, %v3156_v31  ;;  %v3164_v44 = vmax.f32 %v3162_v1, %v3163_v32  ;;  %v3170_v37 = vrot.slane %v3169_v30, 1 }
 0x330   : > { %v3427_v54 = vsel %vm3402_vm1, %v6816_v21, %v3426_v43  ;;  %vm7484_vm7 = vcmask 1045509   ;;  %v3198_v41 = vrot.slane %v3197_v56, 1  ;;  %vm7485_vm6 = vcmask 1046534  }
 0x331   : > { %v3428_v39 = vsel %vm7484_vm7, %v3073_v19, %v3427_v54  ;;  %v3171_v7 = vmax.f32 %v3169_v30, %v3170_v37  ;;  %v3438_v14 = vsel %vm7486_vm3, %v3157_v51, %v3150_v6  ;;  %v3178_v48 = vmax.f32 %v6800_v62, %v3177_v10  ;;  %vm7489_vm5 = vmmov %vm7484_vm7 }
 0x332   : > { %v3429_v45 = vsel %vm7485_vm6, %v3080_v13, %v3428_v39  ;;  %vm7487_vm2 = vcmask 1047559   ;;  %v3439_v49 = vsel %vm3398_vm15, %v3164_v44, %v3438_v14  ;;  %v3185_v40 = vmax.f32 %v6828_v33, %v3184_v3  ;;  %vm7490_vm12 = vmmov %vm7485_vm6 }
 0x333   : > { %v3430_v21 = vsel %vm7487_vm2, %v3087_v15, %v3429_v45  ;;  %vm7488_vm4 = vcmask 130048   ;;  %v3440_v52 = vsel %vm3400_vm0, %v3171_v7, %v3439_v49  ;;  %v3192_v61 = vmax.f32 %v3190_v24, %v3191_v38  ;;  %vm7491_vm13 = vmmov %vm7487_vm2  ;;  %v3790_v24 = vld [vmem:[#allocation4 + $0x51] sm:$0xff] }
 0x334   : > { %3471 = vst.msk [vmem:[#allocation4 + $0x41] sm:$0xff] %vm7488_vm4, %v3430_v21  ;;  %v3441_v57 = vsel %vm3402_vm1, %v3178_v48, %v3440_v52  ;;  %v3199_v58 = vmax.f32 %v3197_v56, %v3198_v41  ;;  %vm7492_vm7 = vmmov %vm7488_vm4  ;;  %v2397_v9 = vadd.f32 %v6629_v11, %v6835_v53  ;;  %v2392_v12 = vadd.f32 %v6629_v11, %v6837_v63 }
 0x335   : > { %v3442_v59 = vsel %vm7489_vm5, %v3185_v40, %v3441_v57  ;;  %vm7493_vm6 = vmmov %vm7488_vm4 }
 0x336   : > { %v3443_v60 = vsel %vm7490_vm12, %v3192_v61, %v3442_v59  ;;  %vm7494_vm3 = vmmov %vm7488_vm4  ;;  %v2455_v46 = vmax.f32 %v2397_v9, 0.0  ;;  %v2454_v16 = vmax.f32 %v2392_v12, 0.0  ;;  %vm7498_vm12 = vcmask 261248  }
 0x337   : > { %v3444_v62 = vsel %vm7491_vm13, %v3199_v58, %v3443_v60  ;;  %vm7495_vm2 = vmmov %vm7494_vm3 }
 0x338   : > { %3473 = vst.msk [vmem:[#allocation4 + $0x61] sm:$0xff] %vm7492_vm7, %v3444_v62  ;;  %vm7496_vm4 = vmmov %vm7495_vm2 }
 0x339   : > { %vm7497_vm5 = vmmov %vm7495_vm2 }
 0x33a   : > { %v2502_v1 = vsel %vm7497_vm5, %v2455_v46, -inf  ;;  %vm7499_vm13 = vmmov %vm7495_vm2 }
 0x33b   : > { %v3740_v10 = vld [vmem:[#allocation4 + $0x40] sm:$0xff]  ;;  %vm7500_vm7 = vmmov %vm7495_vm2 }
 0x33c   : > { %v3691_v2 = vld [vmem:[#allocation4 + $0x42] sm:$0xff]  ;;  %3758 = vrot.lane.b32.xlu1 %v3740_v10, %s7396_s17  ;;  %3612 = vrot.lane.b32.xlu0 %v3740_v10, %s5403_s28  ;;  %3488 = vst.msk [vmem:[#allocation5 + $0x40] sm:$0xff] %vm7494_vm3, %v3740_v10  ;;  %vm7502_vm3 = vcmask 392448  }
 0x33d   : > { %3846 = vst.msk [vmem:[#allocation5 + $0x28] sm:$0xff] %vm7493_vm6, %v3691_v2  ;;  %v3789_v33 = vld [vmem:[#allocation4 + $0x41] sm:$0xff]  ;;  %vm7501_vm6 = vmmov %vm7495_vm2 }
 0x33f   : > { %v6876_v4 = vld [vmem:[#allocation4 + $0x60] sm:$0xff] }
 0x340   : > { %3807 = vrot.lane.b32.xlu1 %v3789_v33, %s7457_s24  ;;  %3661 = vrot.lane.b32.xlu0 %v3789_v33, %s7394_s16  ;;  %v6878_v8 = vld [vmem:[#allocation4 + $0x62] sm:$0xff]  ;;  %3490 = vst.msk [vmem:[#allocation5 + $0x60] sm:$0xff] %vm7496_vm4, %v6876_v4  ;;  %vm7503_vm4 = vcmask 123904  }
 0x341   : > { %3848 = vst.msk [vmem:[#allocation5 + $0x48] sm:$0xff] %vm7495_vm2, %v6878_v8  ;;  %vm7504_vm5 = vmmov %vm7503_vm4 }
 0x342   : > { %v3611_v5 = vpop.permute.xlu1 %3610  ;;  %v3757_v42 = vpop.permute.xlu0 %3756 }
 0x343   : > { %3633 = vst.msk [vmem:[#allocation5 + $0x20] sm:$0xff] %vm3630_vm8, %v3611_v5 }
 0x344   : > { %3780 = vst.msk [vmem:[#allocation5 + $0x10] sm:$0xff] %vm3778_vm11, %v3757_v42  ;;  %3516 = vrot.lane.b32.xlu1 %v3789_v33, %s5397_s29  ;;  %3710 = vrot.lane.b32.xlu0 %v3691_v2, %s5405_s22 }
 0x346   : > { %v3660_v50 = vpop.permute.xlu1 %3659  ;;  %v3806_v20 = vpop.permute.xlu0 %3805 }
 0x347   : > { %3682 = vst.msk [vmem:[#allocation5 + $0x20] sm:$0xff] %vm3679_vm10, %v3660_v50 }
 0x348   : > { %3829 = vst.msk [vmem:[#allocation5 + $0x10] sm:$0xff] %vm3827_vm14, %v3806_v20  ;;  %v5095_v35 = vpop.f32.mrb[10].mxu1  ;;  %3565 = vrot.lane.b32.xlu1 %v3691_v2, %s5401_s26  ;;  %3760 = vrot.lane.b32.xlu0 %v6758_v28, %s7396_s17 }
 0x349   : > { %v2407_v53 = vadd.f32 %v6629_v11, %v5095_v35  ;;  %v2401_v36 = vpop.f32.mrb[11].mxu1 }
 0x34a   : > { %v2402_v17 = vadd.f32 %v6629_v11, %v2401_v36  ;;  %v3709_v63 = vpop.permute.xlu1 %3708  ;;  %v3515_v22 = vpop.permute.xlu0 %3514  ;;  %v2499_v11 = vsel %vm7500_vm7, %v2454_v16, -inf  ;;  %vm7507_vm7 = vmmov %vm7503_vm4  ;;  %v3791_v36 = vld [vmem:[#allocation4 + $0x61] sm:$0xff] }
 0x34b   : > { %v2457_v18 = vmax.f32 %v2407_v53, 0.0  ;;  %3731 = vst.msk [vmem:[#allocation5 + $0x20] sm:$0xff] %vm3728_vm9, %v3709_v63 }
 0x34c   : > { %v2456_v47 = vmax.f32 %v2402_v17, 0.0  ;;  %3536 = vst.msk [vmem:[#allocation5 + $0x30] sm:$0xff] %vm7498_vm12, %v3515_v22  ;;  %3614 = vrot.lane.b32.xlu1 %v6758_v28, %s5403_s28  ;;  %3809 = vrot.lane.b32.xlu0 %v3790_v24, %s7457_s24  ;;  %v3857_v28 = vld [vmem:[#allocation5 + $0x28] sm:$0xff]  ;;  %vm7505_vm12 = vmmov %vm7503_vm4 }
 0x34d   : > { %v2503_v25 = vsel %vm7499_vm13, %v2457_v18, -inf  ;;  %vm7506_vm13 = vmmov %vm7503_vm4 }
 0x34e   : > { %v2504_v19 = vmax.f32 %v2502_v1, %v2503_v25  ;;  %v2500_v26 = vsel %vm7501_vm6, %v2456_v47, -inf  ;;  %v3564_v29 = vpop.permute.xlu0 %3563  ;;  %vm7508_vm6 = vmmov %vm7503_vm4 }
 0x34f   : > { %v3854_v56 = vld [vmem:[#allocation5 + $0x10] sm:$0xff]  ;;  %v2501_v27 = vmax.f32 %v2499_v11, %v2500_v26  ;;  %3585 = vst.msk [vmem:[#allocation5 + $0x30] sm:$0xff] %vm7502_vm3, %v3564_v29  ;;  %vm7509_vm3 = vmmov %vm7503_vm4 }
 0x350   : > { %3987 = vmatmul.mubr.f32.gmra.mrb[18].mxu1 %v3854_v56  ;;  %v2748_v31 = vcombine.high %v2504_v19, %v2504_v19  ;;  %v2755_v32 = vrot.slane %v2504_v19, %v6288_v55  ;;  %3663 = vrot.lane.b32.xlu1 %v3790_v24, %s7394_s16 }
 0x351   : > { %3518 = vrot.lane.b32.xlu0 %v3790_v24, %s5397_s29  ;;  %v2731_v30 = vcombine.high %v2501_v27, %v2501_v27  ;;  %v2738_v13 = vrot.slane %v2501_v27, %v6288_v55  ;;  %4933 = vmatprep.mubr.msk.f32.mxu1 %vm7495_vm2, %v3857_v28  ;;  %vm7510_vm2 = vmmov %vm7509_vm3 }
 0x352   : > { %v2762_v3 = vrot.slane %v2748_v31, %v6288_v55  ;;  %v2763_v43 = vcombine.high %v2755_v32, %v2755_v32  ;;  %v3228_v6 = vsel %vm7503_vm4, %v2755_v32, -inf  ;;  %vm7511_vm4 = vcmask 1041409  }
 0x353   : > { %v3229_v54 = vrot.slane %v3228_v6, 4  ;;  %v2745_v51 = vrot.slane %v2731_v30, %v6288_v55  ;;  %v2746_v44 = vcombine.high %v2738_v13, %v2738_v13  ;;  %v3200_v37 = vsel %vm7504_vm5, %v2738_v13, -inf }
 0x354   : > { %v2764_v15 = vcombine.high %v2762_v3, %v2762_v3  ;;  %v3235_v38 = vsel %vm7505_vm12, %v2763_v43, -inf  ;;  %v3242_v39 = vsel %vm7506_vm13, %v2762_v3, -inf  ;;  %v3201_v41 = vrot.slane %v3200_v37, 4  ;;  %3712 = vrot.lane.b32.xlu1 %v6760_v34, %s5405_s22 }
 0x355   : > { %v3230_v45 = vmax.f32 %v3228_v6, %v3229_v54  ;;  %v3236_v7 = vrot.slane %v3235_v38, 4  ;;  %v3243_v14 = vrot.slane %v3242_v39, 4  ;;  %v2747_v48 = vcombine.high %v2745_v51, %v2745_v51  ;;  %3567 = vrot.lane.b32.xlu0 %v6760_v34, %s5401_s26 }
 0x356   : > { %v3249_v21 = vsel %vm7507_vm7, %v2764_v15, -inf  ;;  %v3202_v49 = vmax.f32 %v3200_v37, %v3201_v41  ;;  %v3207_v40 = vsel %vm7508_vm6, %v2746_v44, -inf  ;;  %v3214_v52 = vsel %vm7509_vm3, %v2745_v51, -inf }
 0x357   : > { %v3237_v61 = vmax.f32 %v3235_v38, %v3236_v7  ;;  %v3244_v57 = vmax.f32 %v3242_v39, %v3243_v14  ;;  %v3250_v58 = vrot.slane %v3249_v21, 4  ;;  %v3208_v60 = vrot.slane %v3207_v40, 4 }
 0x358   : > { %v3203_v59 = vrot.slane %v3202_v49, 2  ;;  %v3215_v62 = vrot.slane %v3214_v52, 4  ;;  %v3221_v10 = vsel %vm7510_vm2, %v2747_v48, -inf  ;;  %v3231_v2 = vrot.slane %v3230_v45, 2  ;;  %3762 = vrot.lane.b32.xlu1 %v6876_v4, %s7396_s17 }
 0x359   : > { %v3238_v33 = vrot.slane %v3237_v61, 2  ;;  %v3251_v5 = vmax.f32 %v3249_v21, %v3250_v58  ;;  %3616 = vrot.lane.b32.xlu0 %v6876_v4, %s5403_s28  ;;  %v3209_v42 = vmax.f32 %v3207_v40, %v3208_v60  ;;  %v3222_v12 = vrot.slane %v3221_v10, 4 }
 0x35a   : > { %v3204_v34 = vmax.f32 %v3202_v49, %v3203_v59  ;;  %v3216_v9 = vmax.f32 %v3214_v52, %v3215_v62  ;;  %v3245_v50 = vrot.slane %v3244_v57, 2  ;;  %v3232_v16 = vmax.f32 %v3230_v45, %v3231_v2 }
 0x35b   : > { %v3252_v20 = vrot.slane %v3251_v5, 2  ;;  %v3210_v35 = vrot.slane %v3209_v42, 2  ;;  %v3223_v53 = vmax.f32 %v3221_v10, %v3222_v12  ;;  %v3239_v17 = vmax.f32 %v3237_v61, %v3238_v33 }
 0x35c   : > { %v3217_v46 = vrot.slane %v3216_v9, 2  ;;  %3811 = vrot.lane.b32.xlu1 %v3791_v36, %s7457_s24  ;;  %v3205_v63 = vrot.slane %v3204_v34, 1  ;;  %v3246_v24 = vmax.f32 %v3244_v57, %v3245_v50  ;;  %v3233_v19 = vrot.slane %v3232_v16, 1 }
 0x35d   : > { %3665 = vrot.lane.b32.xlu0 %v3791_v36, %s7394_s16  ;;  %v3211_v18 = vmax.f32 %v3209_v42, %v3210_v35  ;;  %v3224_v4 = vrot.slane %v3223_v53, 2  ;;  %v3253_v47 = vmax.f32 %v3251_v5, %v3252_v20  ;;  %v3240_v26 = vrot.slane %v3239_v17, 1 }
 0x35e   : > { %v3218_v22 = vmax.f32 %v3216_v9, %v3217_v46  ;;  %v3206_v56 = vmax.f32 %v3204_v34, %v3205_v63  ;;  %v3247_v32 = vrot.slane %v3246_v24, 1  ;;  %v3234_v3 = vmax.f32 %v3232_v16, %v3233_v19 }
 0x35f   : > { %v3212_v1 = vrot.slane %v3211_v18, 1  ;;  %v3225_v11 = vmax.f32 %v3223_v53, %v3224_v4  ;;  %v3254_v28 = vrot.slane %v3253_v47, 1  ;;  %v3241_v6 = vmax.f32 %v3239_v17, %v3240_v26 }
 0x360   : > { %v3219_v25 = vrot.slane %v3218_v22, 1  ;;  %3520 = vrot.lane.b32.xlu1 %v3791_v36, %s5397_s29  ;;  %v3248_v44 = vmax.f32 %v3246_v24, %v3247_v32  ;;  %vm7512_vm5 = vcmask 1045509   ;;  %vm7513_vm12 = vcmask 1046534  }
 0x361   : > { %3714 = vrot.lane.b32.xlu0 %v6878_v8, %s5405_s22  ;;  %v3213_v27 = vmax.f32 %v3211_v18, %v3212_v1  ;;  %v3226_v31 = vrot.slane %v3225_v11, 1  ;;  %v3255_v38 = vmax.f32 %v3253_v47, %v3254_v28  ;;  %vm7514_vm13 = vcmask 1047559  }
 0x362   : > { %v3220_v29 = vmax.f32 %v3218_v22, %v3219_v25  ;;  %vm7515_vm7 = vcmask 130048  }
 0x363   : > { %v3227_v30 = vmax.f32 %v3225_v11, %v3226_v31  ;;  %v3445_v13 = vsel %vm7511_vm4, %v3213_v27, %v3206_v56  ;;  %vm7516_vm6 = vmmov %vm7515_vm7 }
 0x364   : > { %v3446_v43 = vsel %vm3398_vm15, %v3220_v29, %v3445_v13  ;;  %3569 = vrot.lane.b32.xlu1 %v6878_v8, %s5401_s26  ;;  %v5328_v8 = vld [vmem:[%s7369_s2] ss:$0 sm:$0xff]  ;;  %vm7517_vm3 = vmmov %vm7516_vm6 }
 0x365   : > { %v3447_v54 = vsel %vm3400_vm0, %v3227_v30, %v3446_v43  ;;  %vm7518_vm2 = vmmov %vm7517_vm3 }
 0x366   : > { %v3448_v37 = vsel %vm3402_vm1, %v3234_v3, %v3447_v54  ;;  %vm7519_vm4 = vmmov %vm7518_vm2 }
 0x367   : > { %v5098_v51 = vpop.f32.mrb[12].mxu1  ;;  %v3449_v39 = vsel %vm7512_vm5, %v3241_v6, %v3448_v37  ;;  %vm7520_vm5 = vmmov %vm7518_vm2 }
 0x368   : > { %v2411_v15 = vpop.f32.mrb[13].mxu1  ;;  %v3450_v41 = vsel %vm7513_vm12, %v3248_v44, %v3449_v39  ;;  %v2417_v7 = vadd.f32 %v5328_v8, %v5098_v51  ;;  %vm7521_vm12 = vmmov %vm7518_vm2 }
 0x369   : > { %v3451_v45 = vsel %vm7514_vm13, %v3255_v38, %v3450_v41  ;;  %v2412_v14 = vadd.f32 %v5328_v8, %v2411_v15  ;;  %vm7522_vm13 = vcmask 123904  }
 0x36a   : > { %3474 = vst.msk [vmem:[#allocation4 + $0x71] sm:$0xff] %vm7515_vm7, %v3451_v45  ;;  %v2459_v40 = vmax.f32 %v2417_v7, 0.0  ;;  %vm7523_vm7 = vmmov %vm7522_vm13 }
 0x36b   : > { %v2458_v57 = vmax.f32 %v2412_v14, 0.0 }
 0x36c   : > { %v2508_v10 = vsel %vm7518_vm2, %v2459_v40, -inf }
 0x36d   : > { %v2505_v33 = vsel %vm7520_vm5, %v2458_v57, -inf }
 0x371   : > { %v3596_v48 = vld [vmem:[#allocation4 + $0x70] sm:$0xff] }
 0x372   : > { %v3694_v21 = vld [vmem:[#allocation4 + $0x72] sm:$0xff]  ;;  %3618 = vrot.lane.b32.xlu1 %v3596_v48, %s5403_s28  ;;  %3764 = vrot.lane.b32.xlu0 %v3596_v48, %s7396_s17  ;;  %3491 = vst.msk [vmem:[#allocation5 + $0x70] sm:$0xff] %vm7517_vm3, %v3596_v48 }
 0x373   : > { %3849 = vst.msk [vmem:[#allocation5 + $0x58] sm:$0xff] %vm7516_vm6, %v3694_v21  ;;  %v3645_v60 = vld [vmem:[#allocation4 + $0x71] sm:$0xff]  ;;  %vm7524_vm6 = vmmov %vm7523_vm7 }
 0x374   : > { %v5101_v49 = vpop.f32.mrb[14].mxu1  ;;  %vm7525_vm3 = vmmov %vm7524_vm6 }
 0x375   : > { %v2427_v52 = vadd.f32 %v5328_v8, %v5101_v49  ;;  %v2421_v61 = vpop.f32.mrb[15].mxu1  ;;  %vm7526_vm2 = vmmov %vm7525_vm3 }
 0x376   : > { %v2422_v58 = vadd.f32 %v5328_v8, %v2421_v61  ;;  %3667 = vrot.lane.b32.xlu1 %v3645_v60, %s7394_s16  ;;  %3813 = vrot.lane.b32.xlu0 %v3645_v60, %s7457_s24  ;;  %vm7528_vm5 = vmmov %vm7526_vm2 }
 0x377   : > { %v2461_v59 = vmax.f32 %v2427_v52, 0.0 }
 0x378   : > { %v2460_v62 = vmax.f32 %v2422_v58, 0.0 }
 0x379   : > { %v2509_v2 = vsel %vm7519_vm4, %v2461_v59, -inf  ;;  %vm7527_vm4 = vmmov %vm7526_vm2 }
 0x37a   : > { %v2510_v5 = vmax.f32 %v2508_v10, %v2509_v2  ;;  %v2506_v34 = vsel %vm7521_vm12, %v2460_v62, -inf  ;;  %3716 = vrot.lane.b32.xlu1 %v3694_v21, %s5405_s22  ;;  %3522 = vrot.lane.b32.xlu0 %v3645_v60, %s5397_s29  ;;  %vm7529_vm12 = vmmov %vm7526_vm2 }
 0x37b   : > { %v2507_v42 = vmax.f32 %v2505_v33, %v2506_v34 }
 0x37c   : > { %v2782_v9 = vcombine.high %v2510_v5, %v2510_v5  ;;  %v2789_v12 = vrot.slane %v2510_v5, %v6288_v55 }
 0x37d   : > { %v2765_v50 = vcombine.high %v2507_v42, %v2507_v42  ;;  %v2772_v20 = vrot.slane %v2507_v42, %v6288_v55 }
 0x37e   : > { %v2796_v35 = vrot.slane %v2782_v9, %v6288_v55  ;;  %v2797_v46 = vcombine.high %v2789_v12, %v2789_v12  ;;  %v3284_v53 = vsel %vm7522_vm13, %v2789_v12, -inf  ;;  %3571 = vrot.lane.b32.xlu0 %v3694_v21, %s5401_s26  ;;  %vm7530_vm13 = vcmask 1041409  }
 0x37f   : > { %v3285_v36 = vrot.slane %v3284_v53, 4  ;;  %v2779_v16 = vrot.slane %v2765_v50, %v6288_v55  ;;  %v2780_v17 = vcombine.high %v2772_v20, %v2772_v20  ;;  %v3256_v63 = vsel %vm7523_vm7, %v2772_v20, -inf }
 0x380   : > { %v2798_v18 = vcombine.high %v2796_v35, %v2796_v35  ;;  %v3291_v22 = vsel %vm7524_vm6, %v2797_v46, -inf  ;;  %v3298_v4 = vsel %vm7525_vm3, %v2796_v35, -inf  ;;  %v3257_v24 = vrot.slane %v3256_v63, 4 }
 0x381   : > { %v3286_v47 = vmax.f32 %v3284_v53, %v3285_v36  ;;  %v3292_v1 = vrot.slane %v3291_v22, 4  ;;  %v3299_v25 = vrot.slane %v3298_v4, 4  ;;  %v2781_v11 = vcombine.high %v2779_v16, %v2779_v16 }
 0x382   : > { %v3305_v19 = vsel %vm7526_vm2, %v2798_v18, -inf  ;;  %v3258_v26 = vmax.f32 %v3256_v63, %v3257_v24  ;;  %v3263_v56 = vsel %vm7527_vm4, %v2780_v17, -inf  ;;  %v3270_v27 = vsel %vm7528_vm5, %v2779_v16, -inf }
 0x383   : > { %v3293_v29 = vmax.f32 %v3291_v22, %v3292_v1  ;;  %v3300_v31 = vmax.f32 %v3298_v4, %v3299_v25  ;;  %v3306_v32 = vrot.slane %v3305_v19, 4  ;;  %v3264_v30 = vrot.slane %v3263_v56, 4  ;;  %v3745_v25 = vld [vmem:[#allocation4 + $0x90] sm:$0xff] }
 0x384   : > { %v3259_v28 = vrot.slane %v3258_v26, 2  ;;  %v3271_v13 = vrot.slane %v3270_v27, 4  ;;  %v3277_v3 = vsel %vm7529_vm12, %v2781_v11, -inf  ;;  %v3287_v43 = vrot.slane %v3286_v47, 2  ;;  %v3794_v11 = vld [vmem:[#allocation4 + $0x91] sm:$0xff] }
 0x385   : > { %v3294_v6 = vrot.slane %v3293_v29, 2  ;;  %v3307_v54 = vmax.f32 %v3305_v19, %v3306_v32  ;;  %v3265_v44 = vmax.f32 %v3263_v56, %v3264_v30  ;;  %v3278_v15 = vrot.slane %v3277_v3, 4  ;;  %v3843_v19 = vld [vmem:[#allocation4 + $0x92] sm:$0xff] }
 0x386   : > { %v3260_v51 = vmax.f32 %v3258_v26, %v3259_v28  ;;  %v3272_v37 = vmax.f32 %v3270_v27, %v3271_v13  ;;  %v3301_v38 = vrot.slane %v3300_v31, 2  ;;  %v3288_v7 = vmax.f32 %v3286_v47, %v3287_v43 }
 0x387   : > { %v3308_v39 = vrot.slane %v3307_v54, 2  ;;  %v3266_v41 = vrot.slane %v3265_v44, 2  ;;  %v3279_v8 = vmax.f32 %v3277_v3, %v3278_v15  ;;  %v3295_v14 = vmax.f32 %v3293_v29, %v3294_v6  ;;  %v3859_v3 = vld [vmem:[#allocation5 + $0x38] sm:$0xff] }
 0x388   : > { %v3273_v45 = vrot.slane %v3272_v37, 2  ;;  %v3261_v48 = vrot.slane %v3260_v51, 1  ;;  %v3302_v52 = vmax.f32 %v3300_v31, %v3301_v38  ;;  %v3289_v60 = vrot.slane %v3288_v7, 1  ;;  %v3861_v38 = vld [vmem:[#allocation5 + $0x48] sm:$0xff] }
 0x389   : > { %v3267_v21 = vmax.f32 %v3265_v44, %v3266_v41  ;;  %v3280_v40 = vrot.slane %v3279_v8, 2  ;;  %v3309_v61 = vmax.f32 %v3307_v54, %v3308_v39  ;;  %v3296_v62 = vrot.slane %v3295_v14, 1 }
 0x38a   : > { %v3274_v49 = vmax.f32 %v3272_v37, %v3273_v45  ;;  %v3262_v10 = vmax.f32 %v3260_v51, %v3261_v48  ;;  %v3303_v34 = vrot.slane %v3302_v52, 1  ;;  %v3290_v50 = vmax.f32 %v3288_v7, %v3289_v60 }
 0x38b   : > { %v3268_v57 = vrot.slane %v3267_v21, 1  ;;  %v3281_v59 = vmax.f32 %v3279_v8, %v3280_v40  ;;  %v3310_v42 = vrot.slane %v3309_v61, 1  ;;  %v3297_v35 = vmax.f32 %v3295_v14, %v3296_v62 }
 0x38c   : > { %v3275_v58 = vrot.slane %v3274_v49, 1  ;;  %v3304_v53 = vmax.f32 %v3302_v52, %v3303_v34  ;;  %vm7531_vm7 = vcmask 1045509   ;;  %vm7532_vm6 = vcmask 1046534  }
 0x38d   : > { %v3269_v2 = vmax.f32 %v3267_v21, %v3268_v57  ;;  %v3282_v5 = vrot.slane %v3281_v59, 1  ;;  %v3311_v16 = vmax.f32 %v3309_v61, %v3310_v42  ;;  %vm7533_vm3 = vcmask 1047559  }
 0x38e   : > { %v3276_v33 = vmax.f32 %v3274_v49, %v3275_v58  ;;  %vm7534_vm2 = vcmask 130048   ;;  %vm7537_vm5 = vcmask 261248   ;;  %vm7538_vm12 = vcmask 392448   ;;  %v3863_v49 = vld [vmem:[#allocation5 + $0x58] sm:$0xff] }
 0x38f   : > { %v3283_v9 = vmax.f32 %v3281_v59, %v3282_v5  ;;  %v3452_v12 = vsel %vm7530_vm13, %v3269_v2, %v3262_v10  ;;  %vm7535_vm4 = vmmov %vm7534_vm2  ;;  %vm4244_vm13 = vcmask 259072  }
 0x390   : > { %v3453_v20 = vsel %vm3398_vm15, %v3276_v33, %v3452_v12  ;;  %4246 = vst.msk [vmem:[#allocation6 + $0x8] sm:$0x3f] %vm4244_vm13, %v5393_v0  ;;  %4245 = vst.msk [vmem:[#allocation6] sm:$0x3f] %vm4244_vm13, %v5393_v0 }
 0x391   : > { %v3454_v46 = vsel %vm3400_vm0, %v3283_v9, %v3453_v20  ;;  %4247 = vst.msk [vmem:[#allocation6 + $0x10] sm:$0x3f] %vm4244_vm13, %v5393_v0  ;;  %4248 = vst.msk [vmem:[#allocation6 + $0x18] sm:$0x3f] %vm4244_vm13, %v5393_v0 }
 0x392   : > { %v3455_v36 = vsel %vm3402_vm1, %v3290_v50, %v3454_v46  ;;  %vm7536_vm1 = vmmov %vm7534_vm2  ;;  %4249 = vst.msk [vmem:[#allocation6 + $0x20] sm:$0x3f] %vm4244_vm13, %v5393_v0 }
 0x393   : > { %v3456_v17 = vsel %vm7531_vm7, %v3297_v35, %v3455_v36  ;;  %3851 = vst.msk [vmem:[#allocation5 + $0x78] sm:$0xff] %vm7536_vm1, %v3843_v19  ;;  %vm7539_vm7 = vmmov %vm7536_vm1  ;;  %v7041_v35 = vld [vmem:[%s7371_s4] ss:$0 sm:$0xff] }
 0x394   : > { %v3457_v63 = vsel %vm7532_vm6, %v3304_v53, %v3456_v17  ;;  %4250 = vst.msk [vmem:[#allocation6 + $0x28] sm:$0x3f] %vm4244_vm13, %v5393_v0  ;;  %vm7540_vm6 = vmmov %vm7537_vm5 }
 0x395   : > { %v3458_v18 = vsel %vm7533_vm3, %v3311_v16, %v3457_v63  ;;  %vm7541_vm3 = vmmov %vm7538_vm12 }
 0x396   : > { %3475 = vst.msk [vmem:[#allocation4 + $0x81] sm:$0xff] %vm7534_vm2, %v3458_v18  ;;  %vm7542_vm2 = vmmov %vm7536_vm1 }
 0x397   : > { %vm7544_vm1 = vmmov %vm7541_vm3 }
 0x398   : > { %v6983_v22 = vpop.f32.mrb[16].mxu1  ;;  %vm7547_vm13 = vmmov %vm7544_vm1 }
 0x399   : > { %v3985_v4 = vpop.f32.mrb[17].mxu1  ;;  %v3984_v46 = vadd.f32 %v7041_v35, %v6983_v22 }
 0x39a   : > { %v3867_v12 = vld [vmem:[#allocation5 + $0x78] sm:$0xff] }
 0x39b   : > { %v4022_v36 = vmax.f32 %v3984_v46, 0.0 }
 0x39d   : > { %v3744_v24 = vld [vmem:[#allocation4 + $0x80] sm:$0xff] }
 0x39e   : > { %v3695_v47 = vld [vmem:[#allocation4 + $0x82] sm:$0xff]  ;;  %3766 = vrot.lane.b32.xlu1 %v3744_v24, %s7396_s17  ;;  %3620 = vrot.lane.b32.xlu0 %v3744_v24, %s5403_s28 }
 0x39f   : > { %3850 = vst.msk [vmem:[#allocation5 + $0x68] sm:$0xff] %vm7535_vm4, %v3695_v47  ;;  %v3793_v1 = vld [vmem:[#allocation4 + $0x81] sm:$0xff]  ;;  %vm7543_vm4 = vmmov %vm7537_vm5 }
 0x3a2   : > { %3815 = vrot.lane.b32.xlu1 %v3793_v1, %s7457_s24  ;;  %3669 = vrot.lane.b32.xlu0 %v3793_v1, %s7394_s16 }
 0x3a6   : > { %3718 = vrot.lane.b32.xlu1 %v3695_v47, %s5405_s22  ;;  %3768 = vrot.lane.b32.xlu0 %v3745_v25, %s7396_s17  ;;  %v3865_v10 = vld [vmem:[#allocation5 + $0x68] sm:$0xff] }
 0x3aa   : > { %3817 = vrot.lane.b32.xlu1 %v3794_v11, %s7457_s24 }
 0x3ae   : > { %v3759_v26 = vpop.permute.xlu1 %3758  ;;  %v3613_v56 = vpop.permute.xlu0 %3612 }
 0x3af   : > { %3781 = vst.msk [vmem:[#allocation5 + $0x20] sm:$0xff] %vm3778_vm11, %v3759_v26 }
 0x3b0   : > { %3634 = vst.msk [vmem:[#allocation5 + $0x30] sm:$0xff] %vm3630_vm8, %v3613_v56 }
 0x3b2   : > { %v3808_v27 = vpop.permute.xlu1 %3807  ;;  %v3662_v29 = vpop.permute.xlu0 %3661 }
 0x3b3   : > { %3830 = vst.msk [vmem:[#allocation5 + $0x20] sm:$0xff] %vm3827_vm14, %v3808_v27 }
 0x3b4   : > { %3683 = vst.msk [vmem:[#allocation5 + $0x30] sm:$0xff] %vm3679_vm10, %v3662_v29 }
 0x3b6   : > { %v3517_v31 = vpop.permute.xlu1 %3516  ;;  %v3711_v32 = vpop.permute.xlu0 %3710 }
 0x3b7   : > { %3537 = vst.msk [vmem:[#allocation5 + $0x40] sm:$0xff] %vm7537_vm5, %v3517_v31  ;;  %vm7545_vm5 = vmmov %vm7542_vm2 }
 0x3b8   : > { %3732 = vst.msk [vmem:[#allocation5 + $0x30] sm:$0xff] %vm3728_vm9, %v3711_v32 }
 0x3ba   : > { %v3566_v28 = vpop.permute.xlu1 %3565  ;;  %v3761_v30 = vpop.permute.xlu0 %3760  ;;  %v3856_v13 = vld [vmem:[#allocation5 + $0x20] sm:$0xff] }
 0x3bb   : > { %3586 = vst.msk [vmem:[#allocation5 + $0x40] sm:$0xff] %vm7538_vm12, %v3566_v28  ;;  %3992 = vmatmul.mubr.f32.gmra.mrb[20].mxu1 %v3856_v13  ;;  %vm7546_vm12 = vmmov %vm7543_vm4 }
 0x3bc   : > { %3782 = vst.msk [vmem:[#allocation5 + $0x30] sm:$0xff] %vm3778_vm11, %v3761_v30  ;;  %4934 = vmatprep.mubr.msk.f32.mxu1 %vm7539_vm7, %v3859_v3  ;;  %vm7548_vm7 = vmmov %vm7542_vm2 }
 0x3be   : > { %v3615_v43 = vpop.permute.xlu1 %3614  ;;  %v3810_v6 = vpop.permute.xlu0 %3809 }
 0x3bf   : > { %3635 = vst.msk [vmem:[#allocation5 + $0x40] sm:$0xff] %vm3630_vm8, %v3615_v43 }
 0x3c0   : > { %3831 = vst.msk [vmem:[#allocation5 + $0x30] sm:$0xff] %vm3827_vm14, %v3810_v6 }
 0x3c2   : > { %v3664_v54 = vpop.permute.xlu1 %3663 }
 0x3c3   : > { %v3519_v51 = vpop.permute.xlu0 %3518  ;;  %3684 = vst.msk [vmem:[#allocation5 + $0x40] sm:$0xff] %vm3679_vm10, %v3664_v54 }
 0x3c4   : > { %3538 = vst.msk [vmem:[#allocation5 + $0x50] sm:$0xff] %vm7540_vm6, %v3519_v51 }
 0x3c6   : > { %v3713_v44 = vpop.permute.xlu1 %3712 }
 0x3c7   : > { %v3568_v37 = vpop.permute.xlu0 %3567  ;;  %v3858_v15 = vld [vmem:[#allocation5 + $0x30] sm:$0xff]  ;;  %3733 = vst.msk [vmem:[#allocation5 + $0x40] sm:$0xff] %vm3728_vm9, %v3713_v44 }
 0x3c8   : > { %3587 = vst.msk [vmem:[#allocation5 + $0x50] sm:$0xff] %vm7541_vm3, %v3568_v37  ;;  %3997 = vmatmul.mubr.f32.gmra.mrb[22].mxu1 %v3858_v15  ;;  %vm4319_vm3 = vcmask 523520  }
 0x3c9   : > { %4935 = vmatprep.mubr.msk.f32.mxu1 %vm7542_vm2, %v3861_v38 }
 0x3ca   : > { %v3763_v39 = vpop.permute.xlu1 %3762 }
 0x3cb   : > { %v3617_v41 = vpop.permute.xlu0 %3616  ;;  %3783 = vst.msk [vmem:[#allocation5 + $0x40] sm:$0xff] %vm3778_vm11, %v3763_v39 }
 0x3cc   : > { %3636 = vst.msk [vmem:[#allocation5 + $0x50] sm:$0xff] %vm3630_vm8, %v3617_v41 }
 0x3ce   : > { %v3812_v45 = vpop.permute.xlu1 %3811 }
 0x3cf   : > { %v3666_v8 = vpop.permute.xlu0 %3665  ;;  %3832 = vst.msk [vmem:[#allocation5 + $0x40] sm:$0xff] %vm3827_vm14, %v3812_v45 }
 0x3d0   : > { %3685 = vst.msk [vmem:[#allocation5 + $0x50] sm:$0xff] %vm3679_vm10, %v3666_v8 }
 0x3d2   : > { %v3521_v7 = vpop.permute.xlu1 %3520 }
 0x3d3   : > { %v3715_v14 = vpop.permute.xlu0 %3714  ;;  %3539 = vst.msk [vmem:[#allocation5 + $0x60] sm:$0xff] %vm7543_vm4, %v3521_v7 }
 0x3d4   : > { %3734 = vst.msk [vmem:[#allocation5 + $0x50] sm:$0xff] %vm3728_vm9, %v3715_v14 }
 0x3d6   : > { %v3570_v48 = vpop.permute.xlu1 %3569  ;;  %v3860_v21 = vld [vmem:[#allocation5 + $0x40] sm:$0xff] }
 0x3d7   : > { %3588 = vst.msk [vmem:[#allocation5 + $0x60] sm:$0xff] %vm7544_vm1, %v3570_v48  ;;  %4002 = vmatmul.mubr.f32.gmra.mrb[24].mxu1 %v3860_v21 }
 0x3d8   : > { %4936 = vmatprep.mubr.msk.f32.mxu1 %vm7545_vm5, %v3863_v49  ;;  %vm4712_vm5 = vcmask 253952  }
 0x3e4   : > { %v3619_v40 = vpop.permute.xlu1 %3618  ;;  %v3765_v52 = vpop.permute.xlu0 %3764 }
 0x3e5   : > { %3637 = vst.msk [vmem:[#allocation5 + $0x60] sm:$0xff] %vm3630_vm8, %v3619_v40 }
 0x3e6   : > { %3784 = vst.msk [vmem:[#allocation5 + $0x50] sm:$0xff] %vm3778_vm11, %v3765_v52 }
 0x3e8   : > { %v3668_v61 = vpop.permute.xlu1 %3667  ;;  %v3814_v57 = vpop.permute.xlu0 %3813 }
 0x3e9   : > { %3686 = vst.msk [vmem:[#allocation5 + $0x60] sm:$0xff] %vm3679_vm10, %v3668_v61 }
 0x3ea   : > { %3833 = vst.msk [vmem:[#allocation5 + $0x50] sm:$0xff] %vm3827_vm14, %v3814_v57 }
 0x3ec   : > { %v3717_v58 = vpop.permute.xlu1 %3716  ;;  %v3523_v59 = vpop.permute.xlu0 %3522 }
 0x3ed   : > { %3735 = vst.msk [vmem:[#allocation5 + $0x60] sm:$0xff] %vm3728_vm9, %v3717_v58 }
 0x3ee   : > { %3540 = vst.msk [vmem:[#allocation5 + $0x70] sm:$0xff] %vm7546_vm12, %v3523_v59  ;;  %vm4718_vm12 = vcmask 516352  }
 0x3f0   : > { %v3572_v60 = vpop.permute.xlu0 %3571 }
 0x3f1   : > { %v3862_v62 = vld [vmem:[#allocation5 + $0x50] sm:$0xff]  ;;  %3589 = vst.msk [vmem:[#allocation5 + $0x70] sm:$0xff] %vm7547_vm13, %v3572_v60  ;;  %vm4724_vm13 = vcmask 778752  }
 0x3f2   : > { %4007 = vmatmul.mubr.f32.gmra.mrb[26].mxu1 %v3862_v62 }
 0x3f3   : > { %4937 = vmatprep.mubr.msk.f32.mxu1 %vm7548_vm7, %v3865_v10  ;;  %vm4730_vm7 = vcmask 1041152  }
 0x410   : > { %v3767_v2 = vpop.permute.xlu1 %3766  ;;  %v3621_v33 = vpop.permute.xlu0 %3620 }
 0x411   : > { %3785 = vst.msk [vmem:[#allocation5 + $0x60] sm:$0xff] %vm3778_vm11, %v3767_v2 }
 0x412   : > { %3638 = vst.msk [vmem:[#allocation5 + $0x70] sm:$0xff] %vm3630_vm8, %v3621_v33  ;;  %vm7549_vm8 = vmmov %vm7542_vm2  ;;  %vm4338_vm2 = vcmask 785920  }
 0x414   : > { %v3816_v5 = vpop.permute.xlu1 %3815  ;;  %v3670_v34 = vpop.permute.xlu0 %3669 }
 0x415   : > { %3834 = vst.msk [vmem:[#allocation5 + $0x60] sm:$0xff] %vm3827_vm14, %v3816_v5 }
 0x416   : > { %3687 = vst.msk [vmem:[#allocation5 + $0x70] sm:$0xff] %vm3679_vm10, %v3670_v34  ;;  %vm4030_vm10 = vcmask 261120  }
 0x417   : > { %v4031_v4 = vsel %vm4030_vm10, %v4022_v36, -inf }
 0x418   : > { %v3719_v42 = vpop.permute.xlu1 %3718  ;;  %v3769_v9 = vpop.permute.xlu0 %3768 }
 0x419   : > { %3736 = vst.msk [vmem:[#allocation5 + $0x70] sm:$0xff] %vm3728_vm9, %v3719_v42  ;;  %vm4131_vm9 = vcmask 254976  }
 0x41a   : > { %3786 = vst.msk [vmem:[#allocation5 + $0x70] sm:$0xff] %vm3778_vm11, %v3769_v9  ;;  %vm7550_vm11 = vcmask 1041409  }
 0x41b   : > { %vm7551_vm6 = vmmov %vm7550_vm11 }
 0x41c   : > { %v3818_v50 = vpop.permute.xlu1 %3817  ;;  %v3864_v20 = vld [vmem:[#allocation5 + $0x60] sm:$0xff]  ;;  %vm7552_vm4 = vmmov %vm7551_vm6 }
 0x41d   : > { %3835 = vst.msk [vmem:[#allocation5 + $0x70] sm:$0xff] %vm3827_vm14, %v3818_v50  ;;  %4012 = vmatmul.mubr.f32.gmra.mrb[28].mxu1 %v3864_v20  ;;  %vm4284_vm14 = vcmask 257024   ;;  %vm7555_vm1 = vmmov %vm7552_vm4 }
 0x41e   : > { %4938 = vmatprep.mubr.msk.f32.mxu1 %vm7549_vm8, %v3867_v12  ;;  %vm4820_vm8 = vcmask 73728  }
 0x423   : > { %v3988_v53 = vpop.f32.mrb[18].mxu1 }
 0x424   : > { %v3989_v16 = vadd.f32 %v7041_v35, %v3988_v53  ;;  %v3990_v17 = vpop.f32.mrb[19].mxu1  ;;  %v3866_v63 = vld [vmem:[#allocation5 + $0x70] sm:$0xff] }
 0x425   : > { %4017 = vmatmul.mubr.f32.gmra.mrb[30].mxu1 %v3866_v63 }
 0x426   : > { %v4023_v18 = vmax.f32 %v3989_v16, 0.0 }
 0x428   : > { %v4032_v24 = vsel %vm4030_vm10, %v4023_v18, -inf }
 0x429   : > { %v4033_v47 = vmax.f32 %v4031_v4, %v4032_v24 }
 0x42b   : > { %v4047_v1 = vcombine.high %v4033_v47, %v4033_v47  ;;  %v4054_v25 = vrot.slane %v4033_v47, %v6288_v55 }
 0x42d   : > { %v4061_v22 = vrot.slane %v4047_v1, %v6288_v55  ;;  %v4062_v11 = vcombine.high %v4054_v25, %v4054_v25  ;;  %v4132_v19 = vsel %vm4131_vm9, %v4054_v25, -inf }
 0x42e   : > { %v4133_v26 = vrot.slane %v4132_v19, 4 }
 0x42f   : > { %v4063_v56 = vcombine.high %v4061_v22, %v4061_v22  ;;  %v4139_v27 = vsel %vm4131_vm9, %v4062_v11, -inf  ;;  %v4146_v29 = vsel %vm4131_vm9, %v4061_v22, -inf }
 0x430   : > { %v4134_v31 = vmax.f32 %v4132_v19, %v4133_v26  ;;  %v4140_v32 = vrot.slane %v4139_v27, 4  ;;  %v4147_v28 = vrot.slane %v4146_v29, 4 }
 0x431   : > { %v4153_v30 = vsel %vm4131_vm9, %v4063_v56, -inf }
 0x432   : > { %v4135_v13 = vrot.slane %v4134_v31, 2  ;;  %v4141_v3 = vmax.f32 %v4139_v27, %v4140_v32  ;;  %v4148_v43 = vmax.f32 %v4146_v29, %v4147_v28  ;;  %v4154_v6 = vrot.slane %v4153_v30, 4 }
 0x434   : > { %v4136_v54 = vmax.f32 %v4134_v31, %v4135_v13  ;;  %v4142_v51 = vrot.slane %v4141_v3, 2  ;;  %v4149_v44 = vrot.slane %v4148_v43, 2  ;;  %v4155_v37 = vmax.f32 %v4153_v30, %v4154_v6 }
 0x436   : > { %v4137_v15 = vrot.slane %v4136_v54, 1  ;;  %v4143_v38 = vmax.f32 %v4141_v3, %v4142_v51  ;;  %v4150_v39 = vmax.f32 %v4148_v43, %v4149_v44  ;;  %v4156_v41 = vrot.slane %v4155_v37, 2 }
 0x438   : > { %v4144_v45 = vrot.slane %v4143_v38, 1  ;;  %v4151_v8 = vrot.slane %v4150_v39, 1  ;;  %v4157_v7 = vmax.f32 %v4155_v37, %v4156_v41  ;;  %v4138_v14 = vmax.f32 %v4136_v54, %v4137_v15 }
 0x43a   : > { %v4145_v48 = vmax.f32 %v4143_v38, %v4144_v45  ;;  %v4152_v21 = vmax.f32 %v4150_v39, %v4151_v8  ;;  %v4158_v49 = vrot.slane %v4157_v7, 1  ;;  %v4465_v8 = vld [vmem:[%s7372_s5 + $0x80] sm:$0xff] }
 0x43c   : > { %v4159_v40 = vmax.f32 %v4157_v7, %v4158_v49  ;;  %v4267_v52 = vsel %vm7550_vm11, %v4145_v48, %v4138_v14  ;;  %v4466_v7 = vld [vmem:[%s7372_s5 + $0x88] sm:$0xff]  ;;  %v4449_v14 = vld [vmem:[%s7372_s5] sm:$0xff] }
 0x43d   : > { %v4268_v61 = vsel %vm3398_vm15, %v4152_v21, %v4267_v52  ;;  %v5183_v21 = vpack.c.bf16 %v4466_v7, %v4465_v8  ;;  %v4450_v49 = vld [vmem:[%s7372_s5 + $0x8] sm:$0xff]  ;;  %v4468_v52 = vld [vmem:[%s7372_s5 + $0x98] sm:$0xff] }
 0x43e   : > { %v4269_v57 = vsel %vm3400_vm0, %v4159_v40, %v4268_v61  ;;  %v4467_v40 = vld [vmem:[%s7372_s5 + $0x90] sm:$0xff] }
 0x43f   : > { %4285 = vst.msk [vmem:[#allocation6 + $0x9] sm:$0xf] %vm4284_vm14, %v4269_v57  ;;  %v5185_v57 = vpack.c.bf16 %v4450_v49, %v4449_v14  ;;  %5184 = vmatprep.subr.bf16.mxu0 %v5183_v21 }
 0x441   : > { %5186 = vmatpush3.bf16.msra.mxu0 %v5185_v57 }
 0x446   : > { %v5309_v58 = vld [vmem:[#allocation6 + $0x1] ss:$8 sps:$4 sm:$0xff]  }
 0x447   : > { %v5311_v59 = vld [vmem:[#allocation6] ss:$8 sps:$4 sm:$0xff]   ;;  %4313 = vrot.lane.b32.xlu1 %v5309_v58, %s5401_s26  ;;  %v5187_v58 = vpack.c.bf16 %v4468_v52, %v4467_v40 }
 0x448   : > { %4301 = vst.msk [vmem:[#allocation7] sm:$0xff] %vm4030_vm10, %v5311_v59  ;;  %v5310_v60 = vld [vmem:[#allocation6 + $0x2] ss:$8 sps:$4 sm:$0xff]  }
 0x449   : > { %v4451_v59 = vld [vmem:[%s7372_s5 + $0x10] sm:$0xff]  ;;  %5188 = vmatprep.subr.bf16.mxu0 %v5187_v58 }
 0x44b   : > { %4332 = vrot.lane.b32.xlu1 %v5310_v60, %s7394_s16  ;;  %v4452_v60 = vld [vmem:[%s7372_s5 + $0x18] sm:$0xff] }
 0x48e   : > { %v3993_v62 = vpop.f32.mrb[20].mxu1 }
 0x48f   : > { %v3995_v10 = vpop.f32.mrb[21].mxu1  ;;  %v3994_v2 = vadd.f32 %v7041_v35, %v3993_v62  ;;  %v4469_v62 = vld [vmem:[%s7372_s5 + $0xa0] sm:$0xff] }
 0x490   : > { %v4470_v10 = vld [vmem:[%s7372_s5 + $0xa8] sm:$0xff] }
 0x491   : > { %v4024_v5 = vmax.f32 %v3994_v2, 0.0  ;;  %v5189_v2 = vpack.c.bf16 %v4452_v60, %v4451_v59 }
 0x493   : > { %v4034_v12 = vsel %vm4030_vm10, %v4024_v5, -inf  ;;  %v4453_v5 = vld [vmem:[%s7372_s5 + $0x20] sm:$0xff]  ;;  %5190 = vmatpush3.bf16.msra.mxu0 %v5189_v2 }
 0x49b   : > { %v3998_v33 = vpop.f32.mrb[22].mxu1 }
 0x49c   : > { %v3999_v34 = vadd.f32 %v7041_v35, %v3998_v33  ;;  %v4000_v42 = vpop.f32.mrb[23].mxu1  ;;  %v5191_v33 = vpack.c.bf16 %v4470_v10, %v4469_v62 }
 0x49e   : > { %v4025_v9 = vmax.f32 %v3999_v34, 0.0  ;;  %v4454_v34 = vld [vmem:[%s7372_s5 + $0x28] sm:$0xff]  ;;  %5192 = vmatprep.subr.bf16.mxu0 %v5191_v33 }
 0x4a0   : > { %v4035_v50 = vsel %vm4030_vm10, %v4025_v9, -inf  ;;  %v4471_v9 = vld [vmem:[%s7372_s5 + $0xb0] sm:$0xff] }
 0x4a1   : > { %v4036_v20 = vmax.f32 %v4034_v12, %v4035_v50  ;;  %v4472_v12 = vld [vmem:[%s7372_s5 + $0xb8] sm:$0xff]  ;;  %v5193_v50 = vpack.c.bf16 %v4454_v34, %v4453_v5 }
 0x4a3   : > { %v4064_v46 = vcombine.high %v4036_v20, %v4036_v20  ;;  %v4071_v53 = vrot.slane %v4036_v20, %v6288_v55  ;;  %v4455_v20 = vld [vmem:[%s7372_s5 + $0x30] sm:$0xff]  ;;  %5194 = vmatpush3.bf16.msra.mxu0 %v5193_v50 }
 0x4a4   : > { %v4459_v50 = vld [vmem:[%s7372_s5 + $0x50] sm:$0xff] }
 0x4a5   : > { %v4078_v36 = vrot.slane %v4064_v46, %v6288_v55  ;;  %v4079_v16 = vcombine.high %v4071_v53, %v4071_v53  ;;  %v4160_v17 = vsel %vm4131_vm9, %v4071_v53, -inf  ;;  %v5195_v46 = vpack.c.bf16 %v4472_v12, %v4471_v9  ;;  %v4456_v53 = vld [vmem:[%s7372_s5 + $0x38] sm:$0xff]  ;;  %v4475_v9 = vld [vmem:[%s7372_s5 + $0xd0] sm:$0xff] }
 0x4a6   : > { %v4161_v63 = vrot.slane %v4160_v17, 4  ;;  %v4476_v12 = vld [vmem:[%s7372_s5 + $0xd8] sm:$0xff] }
 0x4a7   : > { %v4080_v18 = vcombine.high %v4078_v36, %v4078_v36  ;;  %v4167_v4 = vsel %vm4131_vm9, %v4079_v16, -inf  ;;  %v4174_v24 = vsel %vm4131_vm9, %v4078_v36, -inf  ;;  %v4473_v36 = vld [vmem:[%s7372_s5 + $0xc0] sm:$0xff]  ;;  %v4474_v16 = vld [vmem:[%s7372_s5 + $0xc8] sm:$0xff]  ;;  %5196 = vmatprep.subr.bf16.mxu0 %v5195_v46  ;;  %v5203_v46 = vpack.c.bf16 %v4476_v12, %v4475_v9 }
 0x4a8   : > { %v4162_v47 = vmax.f32 %v4160_v17, %v4161_v63  ;;  %v4168_v1 = vrot.slane %v4167_v4, 4  ;;  %v4175_v25 = vrot.slane %v4174_v24, 4 }
 0x4a9   : > { %v4181_v22 = vsel %vm4131_vm9, %v4080_v18, -inf }
 0x4aa   : > { %v4163_v11 = vrot.slane %v4162_v47, 2  ;;  %v4169_v19 = vmax.f32 %v4167_v4, %v4168_v1  ;;  %v4176_v26 = vmax.f32 %v4174_v24, %v4175_v25  ;;  %v4182_v56 = vrot.slane %v4181_v22, 4  ;;  %v7073_v27 = vpop.f32.mrb[24].mxu1  ;;  %v4457_v4 = vld [vmem:[%s7372_s5 + $0x40] sm:$0xff]  ;;  %v4458_v24 = vld [vmem:[%s7372_s5 + $0x48] sm:$0xff] }
 0x4ab   : > { %v4005_v30 = vpop.f32.mrb[25].mxu1  ;;  %v5199_v25 = vpack.c.bf16 %v4474_v16, %v4473_v36 }
 0x4ac   : > { %v4164_v29 = vmax.f32 %v4162_v47, %v4163_v11  ;;  %v4170_v31 = vrot.slane %v4169_v19, 2  ;;  %v4177_v32 = vrot.slane %v4176_v26, 2  ;;  %v4183_v28 = vmax.f32 %v4181_v22, %v4182_v56 }
 0x4ad   : > { %v5197_v47 = vpack.c.bf16 %v4456_v53, %v4455_v20  ;;  %v4004_v22 = vadd.f32 %v7041_v35, %v7073_v27  ;;  %v5201_v11 = vpack.c.bf16 %v4458_v24, %v4457_v4  ;;  %v4460_v53 = vld [vmem:[%s7372_s5 + $0x58] sm:$0xff]  ;;  %v4462_v24 = vld [vmem:[%s7372_s5 + $0x68] sm:$0xff] }
 0x4ae   : > { %v4165_v13 = vrot.slane %v4164_v29, 1  ;;  %v4171_v3 = vmax.f32 %v4169_v19, %v4170_v31  ;;  %v4178_v43 = vmax.f32 %v4176_v26, %v4177_v32  ;;  %v4184_v6 = vrot.slane %v4183_v28, 2 }
 0x4af   : > { %5198 = vmatpush3.bf16.msra.mxu0 %v5197_v47  ;;  %v4026_v26 = vmax.f32 %v4004_v22, 0.0  ;;  %v5205_v16 = vpack.c.bf16 %v4460_v53, %v4459_v50  ;;  %v4479_v47 = vld [vmem:[%s7372_s5 + $0xf0] sm:$0xff] }
 0x4b0   : > { %v4172_v54 = vrot.slane %v4171_v3, 1  ;;  %v4179_v51 = vrot.slane %v4178_v43, 1  ;;  %v4185_v44 = vmax.f32 %v4183_v28, %v4184_v6  ;;  %v4166_v37 = vmax.f32 %v4164_v29, %v4165_v13  ;;  %5200 = vmatprep.subr.bf16.mxu0 %v5199_v25 }
 0x4b1   : > { %v4037_v32 = vsel %vm4030_vm10, %v4026_v26, -inf }
 0x4b2   : > { %v4173_v15 = vmax.f32 %v4171_v3, %v4172_v54  ;;  %v4180_v38 = vmax.f32 %v4178_v43, %v4179_v51  ;;  %v4186_v39 = vrot.slane %v4185_v44, 1 }
 0x4b3   : > { %5202 = vmatpush3.bf16.msra.mxu0 %v5201_v11  ;;  %v4463_v11 = vld [vmem:[%s7372_s5 + $0x70] sm:$0xff] }
 0x4b4   : > { %v4187_v41 = vmax.f32 %v4185_v44, %v4186_v39  ;;  %v4270_v45 = vsel %vm7551_vm6, %v4173_v15, %v4166_v37  ;;  %5204 = vmatprep.subr.bf16.mxu0 %v5203_v46 }
 0x4b5   : > { %v4271_v48 = vsel %vm3398_vm15, %v4180_v38, %v4270_v45 }
 0x4b6   : > { %v4272_v61 = vsel %vm3400_vm0, %v4187_v41, %v4271_v48 }
 0x4b7   : > { %4286 = vst.msk [vmem:[#allocation6 + $0x11] sm:$0xf] %vm4284_vm14, %v4272_v61  ;;  %5206 = vmatpush3.bf16.msra.mxu0 %v5205_v16 }
 0x4b9   : > { %v4314_v42 = vpop.permute.xlu1 %4313 }
 0x4ba   : > { %4320 = vst.msk [vmem:[#allocation7] sm:$0xff] %vm4319_vm3, %v4314_v42 }
 0x4bd   : > { %v4333_v17 = vpop.permute.xlu1 %4332 }
 0x4be   : > { %v5312_v63 = vld [vmem:[#allocation6 + $0xa] ss:$8 sps:$4 sm:$0xff]   ;;  %4339 = vst.msk [vmem:[#allocation7] sm:$0xff] %vm4338_vm2, %v4333_v17 }
 0x4bf   : > { %v5313_v18 = vld [vmem:[#allocation6 + $0x8] ss:$8 sps:$4 sm:$0xff]   ;;  %4384 = vrot.lane.b32.xlu0 %v5312_v63, %s5401_s26  ;;  %v4478_v63 = vld [vmem:[%s7372_s5 + $0xe8] sm:$0xff] }
 0x4c0   : > { %4351 = vrot.lane.b32.xlu1 %v5313_v18, %s7396_s17  ;;  %v5322_v1 = vld [vmem:[#allocation6 + $0x9] ss:$8 sps:$4 sm:$0xff]   ;;  %s7554_s17 = smov 96  }
 0x4c1   : > { %4372 = vst.msk [vmem:[#allocation7 + $0x8] sm:$0xff] %vm4030_vm10, %v5322_v1  ;;  %v4477_v17 = vld [vmem:[%s7372_s5 + $0xe0] sm:$0xff]  ;;  %v4480_v1 = vld [vmem:[%s7372_s5 + $0xf8] sm:$0xff] }
 0x4c2   : > { %v4461_v18 = vld [vmem:[%s7372_s5 + $0x60] sm:$0xff]  ;;  %v5207_v4 = vpack.c.bf16 %v4478_v63, %v4477_v17  ;;  %v5211_v22 = vpack.c.bf16 %v4480_v1, %v4479_v47  ;;  %v4482_v47 = vld [vmem:[%s7372_s5 + $0x108] sm:$0xff] }
 0x4c3   : > { %v5209_v25 = vpack.c.bf16 %v4462_v24, %v4461_v18  ;;  %v4481_v24 = vld [vmem:[%s7372_s5 + $0x100] sm:$0xff] }
 0x4c4   : > { %5208 = vmatprep.subr.bf16.mxu0 %v5207_v4  ;;  %v5215_v1 = vpack.c.bf16 %v4482_v47, %v4481_v24 }
 0x4c5   : > { %v4008_v19 = vpop.f32.mrb[26].mxu1  ;;  %5210 = vmatpush3.bf16.msra.mxu0 %v5209_v25 }
 0x4c6   : > { %v4009_v56 = vadd.f32 %v7041_v35, %v4008_v19  ;;  %v4010_v29 = vpop.f32.mrb[27].mxu1  ;;  %v4464_v19 = vld [vmem:[%s7372_s5 + $0x78] sm:$0xff]  ;;  %5212 = vmatprep.subr.bf16.mxu0 %v5211_v22 }
 0x4c7   : > { %v5213_v26 = vpack.c.bf16 %v4464_v19, %v4463_v11 }
 0x4c8   : > { %v4027_v31 = vmax.f32 %v4009_v56, 0.0 }
 0x4c9   : > { %5214 = vmatpush3.bf16.msra.mxu0 %v5213_v26 }
 0x4ca   : > { %v4038_v28 = vsel %vm4030_vm10, %v4027_v31, -inf  ;;  %5216 = vmatprep.subr.bf16.mxu0 %v5215_v1 }
 0x4cb   : > { %v4039_v30 = vmax.f32 %v4037_v32, %v4038_v28 }
 0x4cd   : > { %v4081_v13 = vcombine.high %v4039_v30, %v4039_v30  ;;  %v4088_v27 = vrot.slane %v4039_v30, %v6288_v55 }
 0x4cf   : > { %v4095_v3 = vrot.slane %v4081_v13, %v6288_v55  ;;  %v4096_v43 = vcombine.high %v4088_v27, %v4088_v27  ;;  %v4188_v6 = vsel %vm4131_vm9, %v4088_v27, -inf }
 0x4d0   : > { %v4189_v54 = vrot.slane %v4188_v6, 4 }
 0x4d1   : > { %v4097_v51 = vcombine.high %v4095_v3, %v4095_v3  ;;  %v4195_v44 = vsel %vm4131_vm9, %v4096_v43, -inf  ;;  %v4202_v37 = vsel %vm4131_vm9, %v4095_v3, -inf }
 0x4d2   : > { %v4190_v15 = vmax.f32 %v4188_v6, %v4189_v54  ;;  %v4196_v38 = vrot.slane %v4195_v44, 4  ;;  %v4203_v39 = vrot.slane %v4202_v37, 4 }
 0x4d3   : > { %v4209_v41 = vsel %vm4131_vm9, %v4097_v51, -inf }
 0x4d4   : > { %v4191_v45 = vrot.slane %v4190_v15, 2  ;;  %v4197_v8 = vmax.f32 %v4195_v44, %v4196_v38  ;;  %v4204_v7 = vmax.f32 %v4202_v37, %v4203_v39  ;;  %v4210_v14 = vrot.slane %v4209_v41, 4 }
 0x4d6   : > { %v4192_v48 = vmax.f32 %v4190_v15, %v4191_v45  ;;  %v4198_v21 = vrot.slane %v4197_v8, 2  ;;  %v4205_v49 = vrot.slane %v4204_v7, 2  ;;  %v4211_v40 = vmax.f32 %v4209_v41, %v4210_v14 }
 0x4d8   : > { %v4193_v52 = vrot.slane %v4192_v48, 1  ;;  %v4199_v61 = vmax.f32 %v4197_v8, %v4198_v21  ;;  %v4206_v57 = vmax.f32 %v4204_v7, %v4205_v49  ;;  %v4212_v58 = vrot.slane %v4211_v40, 2 }
 0x4da   : > { %v4200_v59 = vrot.slane %v4199_v61, 1  ;;  %v4207_v60 = vrot.slane %v4206_v57, 1  ;;  %v4213_v62 = vmax.f32 %v4211_v40, %v4212_v58  ;;  %v4194_v10 = vmax.f32 %v4192_v48, %v4193_v52 }
 0x4dc   : > { %v4201_v2 = vmax.f32 %v4199_v61, %v4200_v59  ;;  %v4208_v33 = vmax.f32 %v4206_v57, %v4207_v60  ;;  %v4214_v5 = vrot.slane %v4213_v62, 1 }
 0x4de   : > { %v4215_v34 = vmax.f32 %v4213_v62, %v4214_v5  ;;  %v4273_v42 = vsel %vm7552_vm4, %v4201_v2, %v4194_v10 }
 0x4df   : > { %v4274_v20 = vsel %vm3398_vm15, %v4208_v33, %v4273_v42 }
 0x4e0   : > { %v4275_v36 = vsel %vm3400_vm0, %v4215_v34, %v4274_v20 }
 0x4e1   : > { %4287 = vst.msk [vmem:[#allocation6 + $0x19] sm:$0xf] %vm4284_vm14, %v4275_v36 }
 0x4e8   : > { %v5314_v56 = vld [vmem:[#allocation6 + $0x10] ss:$8 sps:$4 sm:$0xff]  }
 0x4e9   : > { %v5315_v29 = vld [vmem:[#allocation6 + $0x11] ss:$8 sps:$4 sm:$0xff]   ;;  %4403 = vrot.lane.b32.xlu0 %v5314_v56, %s7553_s25 }
 0x4ea   : > { %v5316_v31 = vld [vmem:[#allocation6 + $0x11] ss:$8 sps:$4 sm:$0xff]   ;;  %4315 = vrot.lane.b32.xlu1 %v5315_v29, %s5401_s26 }
 0x4eb   : > { %v5323_v32 = vld [vmem:[#allocation6 + $0x10] ss:$8 sps:$4 sm:$0xff]  }
 0x4ec   : > { %v5325_v28 = vld [vmem:[#allocation6 + $0x12] ss:$8 sps:$4 sm:$0xff]   ;;  %4302 = vst.msk [vmem:[#allocation7 + $0x18] sm:$0xff] %vm4030_vm10, %v5323_v32 }
 0x4ed   : > { %v5317_v30 = vld [vmem:[#allocation6 + $0x12] ss:$8 sps:$4 sm:$0xff]   ;;  %4421 = vrot.lane.b32.xlu0 %v5316_v31, %s7554_s17  ;;  %4441 = vst.msk [vmem:[#allocation7 + $0x10] sm:$0xff] %vm4030_vm10, %v5325_v28 }
 0x4ee   : > { %4334 = vrot.lane.b32.xlu1 %v5317_v30, %s7553_s25 }
 0x4f0   : > { %v4013_v13 = vpop.f32.mrb[28].mxu1 }
 0x4f1   : > { %v4015_v27 = vpop.f32.mrb[29].mxu1  ;;  %v4014_v3 = vadd.f32 %v7041_v35, %v4013_v13 }
 0x4f2   : > { %v4483_v27 = vld [vmem:[%s7372_s5 + $0x110] sm:$0xff] }
 0x4f3   : > { %v4028_v6 = vmax.f32 %v4014_v3, 0.0  ;;  %v4484_v3 = vld [vmem:[%s7372_s5 + $0x118] sm:$0xff] }
 0x4f5   : > { %v4040_v37 = vsel %vm4030_vm10, %v4028_v6, -inf  ;;  %v5219_v6 = vpack.c.bf16 %v4484_v3, %v4483_v27  ;;  %v4743_v27 = vld [vmem:[%s7374_s7 + $0x50] sm:$0xff] }
 0x4f8   : > { %v4018_v43 = vpop.f32.mrb[30].mxu1 }
 0x4f9   : > { %v4019_v54 = vadd.f32 %v7041_v35, %v4018_v43  ;;  %v4020_v51 = vpop.f32.mrb[31].mxu1 }
 0x4fb   : > { %v4029_v44 = vmax.f32 %v4019_v54, 0.0 }
 0x4fd   : > { %v4041_v15 = vsel %vm4030_vm10, %v4029_v44, -inf }
 0x4fe   : > { %v4042_v38 = vmax.f32 %v4040_v37, %v4041_v15 }
 0x500   : > { %v4098_v39 = vcombine.high %v4042_v38, %v4042_v38  ;;  %v4105_v41 = vrot.slane %v4042_v38, %v6288_v55 }
 0x502   : > { %v4112_v45 = vrot.slane %v4098_v39, %v6288_v55  ;;  %v4113_v8 = vcombine.high %v4105_v41, %v4105_v41  ;;  %v4216_v7 = vsel %vm4131_vm9, %v4105_v41, -inf  ;;  %v4445_v41 = vld [vmem:[#allocation7 + $0x10] sm:$0xff] }
 0x503   : > { %v4217_v14 = vrot.slane %v4216_v7, 4 }
 0x504   : > { %v4114_v48 = vcombine.high %v4112_v45, %v4112_v45  ;;  %v4223_v21 = vsel %vm4131_vm9, %v4113_v8, -inf  ;;  %v4230_v35 = vsel %vm4131_vm9, %v4112_v45, -inf  ;;  %v4733_v8 = vld [vmem:[%s7374_s7] sm:$0xff] }
 0x505   : > { %v4218_v49 = vmax.f32 %v4216_v7, %v4217_v14  ;;  %v4224_v40 = vrot.slane %v4223_v21, 4  ;;  %v4231_v52 = vrot.slane %v4230_v35, 4  ;;  %v4734_v7 = vld [vmem:[%s7374_s7 + $0x8] sm:$0xff]  ;;  %v4735_v14 = vld [vmem:[%s7374_s7 + $0x10] sm:$0xff] }
 0x506   : > { %v4237_v61 = vsel %vm4131_vm9, %v4114_v48, -inf  ;;  %v5224_v48 = vpack.c.bf16 %v4734_v7, %v4733_v8 }
 0x507   : > { %v4219_v57 = vrot.slane %v4218_v49, 2  ;;  %v4225_v58 = vmax.f32 %v4223_v21, %v4224_v40  ;;  %v4232_v59 = vmax.f32 %v4230_v35, %v4231_v52  ;;  %v4238_v60 = vrot.slane %v4237_v61, 4  ;;  %v4736_v21 = vld [vmem:[%s7374_s7 + $0x18] sm:$0xff]  ;;  %v4738_v40 = vld [vmem:[%s7374_s7 + $0x28] sm:$0xff] }
 0x508   : > { %5225 = vmatpush3.bf16.msra.mxu1 %v5224_v48  ;;  %v5227_v35 = vpack.c.bf16 %v4736_v21, %v4735_v14  ;;  %v4747_v48 = vld [vmem:[%s7374_s7 + $0x70] sm:$0xff]  ;;  %v4748_v21 = vld [vmem:[%s7374_s7 + $0x78] sm:$0xff] }
 0x509   : > { %v4220_v62 = vmax.f32 %v4218_v49, %v4219_v57  ;;  %v4226_v10 = vrot.slane %v4225_v58, 2  ;;  %v4233_v2 = vrot.slane %v4232_v59, 2  ;;  %v4239_v33 = vmax.f32 %v4237_v61, %v4238_v60  ;;  %5226 = vmatprep.subr.bf16.mxu1 %v5406_v23  ;;  %v4737_v49 = vld [vmem:[%s7374_s7 + $0x20] sm:$0xff]  ;;  %v4739_v61 = vld [vmem:[%s7374_s7 + $0x30] sm:$0xff]  ;;  %v4740_v57 = vld [vmem:[%s7374_s7 + $0x38] sm:$0xff] }
 0x50a   : > { %v5230_v52 = vpack.c.bf16 %v4738_v40, %v4737_v49  ;;  %v4742_v60 = vld [vmem:[%s7374_s7 + $0x48] sm:$0xff] }
 0x50b   : > { %v4221_v5 = vrot.slane %v4220_v62, 1  ;;  %v4227_v34 = vmax.f32 %v4225_v58, %v4226_v10  ;;  %v4234_v42 = vmax.f32 %v4232_v59, %v4233_v2  ;;  %v4240_v9 = vrot.slane %v4239_v33, 2  ;;  %v4741_v59 = vld [vmem:[%s7374_s7 + $0x40] sm:$0xff] }
 0x50c   : > { %5228 = vmatpush3.bf16.msra.mxu1 %v5227_v35  ;;  %v5233_v58 = vpack.c.bf16 %v4740_v57, %v4739_v61  ;;  %v5245_v57 = vpack.c.bf16 %v4748_v21, %v4747_v48 }
 0x50d   : > { %v4228_v12 = vrot.slane %v4227_v34, 1  ;;  %v4235_v50 = vrot.slane %v4234_v42, 1  ;;  %v4241_v20 = vmax.f32 %v4239_v33, %v4240_v9  ;;  %v4222_v46 = vmax.f32 %v4220_v62, %v4221_v5  ;;  %5229 = vmatprep.subr.bf16.mxu1 %v5406_v23 }
 0x50e   : > { %v5236_v62 = vpack.c.bf16 %v4742_v60, %v4741_v59 }
 0x50f   : > { %v4229_v53 = vmax.f32 %v4227_v34, %v4228_v12  ;;  %v4236_v36 = vmax.f32 %v4234_v42, %v4235_v50  ;;  %v4242_v16 = vrot.slane %v4241_v20, 1  ;;  %v4939_v42 = vld [vmem:[%s7373_s6] ss:$0 sm:$0xff] }
 0x510   : > { %5231 = vmatpush3.bf16.msra.mxu1 %v5230_v52 }
 0x511   : > { %v4243_v17 = vmax.f32 %v4241_v20, %v4242_v16  ;;  %v4276_v63 = vsel %vm7555_vm1, %v4229_v53, %v4222_v46  ;;  %5232 = vmatprep.subr.bf16.mxu1 %v5406_v23 }
 0x512   : > { %v4277_v18 = vsel %vm3398_vm15, %v4236_v36, %v4276_v63  ;;  %vm4357_vm15 = vcmask 1048320  }
 0x513   : > { %v4278_v4 = vsel %vm3400_vm0, %v4243_v17, %v4277_v18  ;;  %vm5409_vm0 = vmmov 0  }
 0x514   : > { %4288 = vst.msk [vmem:[#allocation6 + $0x21] sm:$0xf] %vm4284_vm14, %v4278_v4  ;;  %5234 = vmatpush3.bf16.msra.mxu1 %v5233_v58  ;;  %5145 = vmatprep.mubr.msk.f32.mxu1 %vm5409_vm0, %v5393_v0 }
 0x515   : > { %5235 = vmatprep.subr.bf16.mxu1 %v5406_v23 }
 0x518   : > { %5237 = vmatpush3.bf16.msra.mxu1 %v5236_v62 }
 0x519   : > { %5238 = vmatprep.subr.bf16.mxu1 %v5406_v23 }
 0x51b   : > { %v5318_v25 = vld [vmem:[#allocation6 + $0x1a] ss:$8 sps:$4 sm:$0xff]  }
 0x51c   : > { %v5319_v22 = vld [vmem:[#allocation6 + $0x18] ss:$8 sps:$4 sm:$0xff]   ;;  %4386 = vrot.lane.b32.xlu0 %v5318_v25, %s5401_s26 }
 0x51d   : > { %4353 = vrot.lane.b32.xlu1 %v5319_v22, %s7554_s17  ;;  %v5324_v11 = vld [vmem:[#allocation6 + $0x19] ss:$8 sps:$4 sm:$0xff]  }
 0x51e   : > { %v5326_v19 = vld [vmem:[#allocation6 + $0x22] ss:$8 sps:$4 sm:$0xff]   ;;  %4373 = vst.msk [vmem:[#allocation7 + $0x20] sm:$0xff] %vm4030_vm10, %v5324_v11 }
 0x51f   : > { %v5320_v26 = vld [vmem:[#allocation6 + $0x20] ss:$8 sps:$4 sm:$0xff]   ;;  %4442 = vst.msk [vmem:[#allocation7 + $0x28] sm:$0xff] %vm4030_vm10, %v5326_v19 }
 0x520   : > { %4405 = vrot.lane.b32.xlu0 %v5320_v26, %s7553_s25  ;;  %v5321_v56 = vld [vmem:[#allocation6 + $0x21] ss:$8 sps:$4 sm:$0xff]  }
 0x524   : > { %4423 = vrot.lane.b32.xlu0 %v5321_v56, %s7554_s17 }
 0x526   : > { %v4448_v45 = vld [vmem:[#allocation7 + $0x28] sm:$0xff] }
 0x531   : > { %v4385_v29 = vpop.permute.xlu0 %4384 }
 0x532   : > { %4390 = vst.msk [vmem:[#allocation7 + $0x8] sm:$0xff] %vm4319_vm3, %v4385_v29  ;;  %v4352_v31 = vpop.permute.xlu1 %4351 }
 0x533   : > { %4358 = vst.msk [vmem:[#allocation7] sm:$0xff] %vm4357_vm15, %v4352_v31 }
 0x53a   : > { %v4443_v54 = vld [vmem:[#allocation7] sm:$0xff] }
 0x55b   : > { %v4404_v32 = vpop.permute.xlu0 %4403 }
 0x55c   : > { %4409 = vst.msk [vmem:[#allocation7 + $0x8] sm:$0xff] %vm4338_vm2, %v4404_v32  ;;  %v4316_v28 = vpop.permute.xlu1 %4315 }
 0x55d   : > { %4321 = vst.msk [vmem:[#allocation7 + $0x18] sm:$0xff] %vm4319_vm3, %v4316_v28 }
 0x55f   : > { %v4422_v30 = vpop.permute.xlu0 %4421 }
 0x560   : > { %4427 = vst.msk [vmem:[#allocation7 + $0x8] sm:$0xff] %vm4357_vm15, %v4422_v30  ;;  %v4335_v13 = vpop.permute.xlu1 %4334 }
 0x561   : > { %4340 = vst.msk [vmem:[#allocation7 + $0x18] sm:$0xff] %vm4338_vm2, %v4335_v13 }
 0x567   : > { %v4444_v43 = vld [vmem:[#allocation7 + $0x8] sm:$0xff] }
 0x568   : > { %4562 = vmatprep.mubr.f32.mxu0 %v4444_v43 }
 0x569   : > { %4563 = vmatmul.mubr.f32.vlgmr.msra.gmra.mrb[16].mxu0 %v4443_v54 }
 0x56a   : > { %5218 = vmatpush3.bf16.msra.mxu0 %v5215_v1 }
 0x56b   : > { %5220 = vmatprep.subr.bf16.mxu0 %v5219_v6 }
 0x56e   : > { %5222 = vmatpush3.bf16.msra.mxu0 %v5219_v6 }
 0x58e   : > { %v4387_v51 = vpop.permute.xlu0 %4386 }
 0x58f   : > { %4391 = vst.msk [vmem:[#allocation7 + $0x20] sm:$0xff] %vm4319_vm3, %v4387_v51  ;;  %v4354_v44 = vpop.permute.xlu1 %4353 }
 0x590   : > { %4359 = vst.msk [vmem:[#allocation7 + $0x18] sm:$0xff] %vm4357_vm15, %v4354_v44 }
 0x592   : > { %v4406_v37 = vpop.permute.xlu0 %4405 }
 0x593   : > { %4410 = vst.msk [vmem:[#allocation7 + $0x20] sm:$0xff] %vm4338_vm2, %v4406_v37 }
 0x596   : > { %v4424_v15 = vpop.permute.xlu0 %4423 }
 0x597   : > { %4428 = vst.msk [vmem:[#allocation7 + $0x20] sm:$0xff] %vm4357_vm15, %v4424_v15  ;;  %v4446_v39 = vld [vmem:[#allocation7 + $0x18] sm:$0xff] }
 0x59e   : > { %v4447_v38 = vld [vmem:[#allocation7 + $0x20] sm:$0xff] }
 0x59f   : > { %4567 = vmatprep.mubr.f32.mxu0 %v4447_v38 }
 0x5a0   : > { %4568 = vmatmul.mubr.f32.gmra.mrb[18].mxu0 %v4446_v39  ;;  %v4745_v39 = vld [vmem:[%s7374_s7 + $0x60] sm:$0xff] }
 0x5a1   : > { %5110 = vmatprep.mubr.msk.f32.mxu0 %vm4030_vm10, %v4445_v41  ;;  %v4746_v41 = vld [vmem:[%s7374_s7 + $0x68] sm:$0xff] }
 0x5a2   : > { %v5242_v35 = vpack.c.bf16 %v4746_v41, %v4745_v39 }
 0x5a4   : > { %5111 = vmatmul.mubr.msk.f32.vlgmr.msra.gmra.mrb[20].mxu0 %vm4030_vm10, %v4448_v45 }
 0x63c   : > { %v5015_v10 = vpop.f32.mrb[16].mxu0 }
 0x63d   : > { %v5016_v2 = vpop.f32.mrb[17].mxu0 }
 0x63e   : > { %v5017_v33 = vadd.f32 %v5016_v2, %v5015_v10 }
 0x640   : > { %v4565_v20 = vadd.f32 %v5017_v33, %v4939_v42 }
 0x673   : > { %v5018_v5 = vpop.f32.mrb[18].mxu0 }
 0x674   : > { %v5019_v34 = vpop.f32.mrb[19].mxu0 }
 0x675   : > { %v5020_v9 = vadd.f32 %v5019_v34, %v5018_v5  ;;  %v4749_v34 = vld [vmem:[%s7375_s8] sm:$0x1] }
 0x677   : > { %v4570_v12 = vadd.f32 %v5020_v9, %v4939_v42  ;;  %v5112_v50 = vpop.f32.mrb[20].mxu0 }
 0x678   : > { %v4639_v46 = vpop.f32.mrb[21].mxu0 }
 0x679   : > { %v4645_v53 = vadd.f32 %v5112_v50, %v4570_v12  ;;  %v4640_v36 = vadd.f32 %v4639_v46, %v4565_v20 }
 0x67b   : > { %v4649_v16 = vmax.f32 %v4645_v53, 0.0  ;;  %v4648_v17 = vmax.f32 %v4640_v36, 0.0 }
 0x67d   : > { %v4653_v63 = vcombine.high %v4649_v16, %v4649_v16  ;;  %v4652_v18 = vcombine.high %v4648_v17, %v4648_v17  ;;  %v4659_v4 = vsel %vm4284_vm14, %v4649_v16, -inf  ;;  %v4656_v47 = vsel %vm4284_vm14, %v4648_v17, -inf }
 0x67f   : > { %v4660_v24 = vsel %vm4284_vm14, %v4653_v63, -inf  ;;  %v4657_v1 = vsel %vm4284_vm14, %v4652_v18, -inf }
 0x680   : > { %v4661_v25 = vmax.f32 %v4659_v4, %v4660_v24  ;;  %v4658_v22 = vmax.f32 %v4656_v47, %v4657_v1 }
 0x682   : > { %v4678_v11 = vrot.slane %v4661_v25, %v6288_v55  ;;  %v4670_v19 = vrot.slane %v4658_v22, %v6288_v55  ;;  %v4744_v55 = vld [vmem:[%s7374_s7 + $0x58] sm:$0xff] }
 0x683   : > { %v5239_v51 = vpack.c.bf16 %v4744_v55, %v4743_v27 }
 0x684   : > { %v4679_v26 = vcombine.high %v4678_v11, %v4678_v11  ;;  %v4698_v56 = vsel %vm4131_vm9, %v4678_v11, -inf  ;;  %v4671_v29 = vcombine.high %v4670_v19, %v4670_v19  ;;  %v4684_v31 = vsel %vm4131_vm9, %v4670_v19, -inf }
 0x685   : > { %v4699_v32 = vrot.slane %v4698_v56, 4  ;;  %v4685_v28 = vrot.slane %v4684_v31, 4  ;;  %5240 = vmatpush3.bf16.msra.mxu1 %v5239_v51 }
 0x686   : > { %v4705_v30 = vsel %vm4131_vm9, %v4679_v26, -inf  ;;  %v4691_v13 = vsel %vm4131_vm9, %v4671_v29, -inf  ;;  %5241 = vmatprep.subr.bf16.mxu1 %v5406_v23 }
 0x687   : > { %v4700_v3 = vmax.f32 %v4698_v56, %v4699_v32  ;;  %v4706_v43 = vrot.slane %v4705_v30, 4  ;;  %v4686_v6 = vmax.f32 %v4684_v31, %v4685_v28  ;;  %v4692_v54 = vrot.slane %v4691_v13, 4 }
 0x689   : > { %v4701_v44 = vrot.slane %v4700_v3, 2  ;;  %v4707_v37 = vmax.f32 %v4705_v30, %v4706_v43  ;;  %v4693_v15 = vmax.f32 %v4691_v13, %v4692_v54  ;;  %v4687_v38 = vrot.slane %v4686_v6, 2  ;;  %5243 = vmatpush3.bf16.msra.mxu1 %v5242_v35 }
 0x68a   : > { %5244 = vmatprep.subr.bf16.mxu1 %v5406_v23 }
 0x68b   : > { %v4702_v45 = vmax.f32 %v4700_v3, %v4701_v44  ;;  %v4694_v8 = vrot.slane %v4693_v15, 2  ;;  %v4708_v7 = vrot.slane %v4707_v37, 2  ;;  %v4688_v14 = vmax.f32 %v4686_v6, %v4687_v38 }
 0x68d   : > { %v4703_v49 = vrot.slane %v4702_v45, 1  ;;  %v4695_v40 = vmax.f32 %v4693_v15, %v4694_v8  ;;  %v4709_v52 = vmax.f32 %v4707_v37, %v4708_v7  ;;  %v4689_v61 = vrot.slane %v4688_v14, 1  ;;  %5246 = vmatpush3.bf16.msra.mxu1 %v5245_v57 }
 0x68f   : > { %v4704_v58 = vmax.f32 %v4702_v45, %v4703_v49  ;;  %v4696_v59 = vrot.slane %v4695_v40, 1  ;;  %v4690_v60 = vmax.f32 %v4688_v14, %v4689_v61  ;;  %v4710_v10 = vrot.slane %v4709_v52, 1 }
 0x691   : > { %4721 = vrot.lane.b32.xlu1 %v4704_v58, %s7553_s25  ;;  %v4697_v62 = vmax.f32 %v4695_v40, %v4696_v59  ;;  %4713 = vst.msk [vmem:[#allocation8] sm:$0x1] %vm4712_vm5, %v4690_v60  ;;  %v4711_v0 = vmax.f32 %v4709_v52, %v4710_v10  ;;  %s323_s25 = sand.u32 1, %s5383_s10  }
 0x692   : > { %s324_s14 = scalar_lea.vmem [#allocation9], %s323_s25  ;;  %s4823_s29 = scalar_lea.sflag [#allocation10], %s323_s25 }
 0x693   : > { %4715 = vrot.lane.b32.xlu0 %v4697_v62, %s5401_s26  ;;  %s4942_s26 = sshll.u32 %s5482_s13, 4  ;;  %s5410_s13 = smov [#allocation9]  }
 0x694   : > { %s7325_s21 = scalar_lea.hbm %s7376_s9, %s4942_s26  ;;  %s5333_s28 = sshll.u32 %s5410_s13, 4  ;;  %s5334_s28 = int_to_ptr.vmem [resolvable:$false] %s5333_s28 }
 0x695   : > { %s5335_s22 = scalar_lea.vmem %s5334_s28, 32 }
 0x697   : > { %4727 = vrot.lane.b32.xlu0 %v4711_v0, %s7554_s17  ;;  %s4835_s17 = sshll.u32 %s324_s14, 4  ;;  %s7327_s17 = int_to_ptr.vmem [resolvable:$true] %s4835_s17 }
 0x698   : > { %s5329_s16 = scalar_lea.vmem %s7327_s17, 16  ;;  %p5336_p0 = scmp.lt.s32.totalorder %s7327_s17, %s5334_s28 }
 0x699   : > { %p5330_p11 = scmp.ne.s32.totalorder %s7327_s17, %s5329_s16  ;;  %p5337_p1 = scmp.lt.s32.totalorder %s5335_s22, %s5329_s16 }
 0x69b   : > { %p5331_p12 = pnand %p5330_p11, %p5499_p5  ;;  %p5338_p2 = por %p5337_p1, %p5336_p0 }
 0x69d   : > { %p5332_p13 = pneg %p5331_p12 }
 0x69f   : > { %p5339_p3 = pnand %p5338_p2, %p5332_p13 }
 0x703   : > { %v4722_v33 = vpop.permute.xlu1 %4721 }
 0x705   : > { %v4716_v2 = vpop.permute.xlu0 %4715 }
 0x706   : > { %4719 = vst.msk [vmem:[#allocation8] sm:$0x1] %vm4718_vm12, %v4716_v2 }
 0x707   : > { %4725 = vst.msk [vmem:[#allocation8] sm:$0x1] %vm4724_vm13, %v4722_v33 }
 0x709   : > { %v4728_v23 = vpop.permute.xlu0 %4727 }
 0x70a   : > { %4731 = vst.msk [vmem:[#allocation8] sm:$0x1] %vm4730_vm7, %v4728_v23 }
 0x711   : > { %v4732_v5 = vld [vmem:[#allocation8] sm:$0x1] }
 0x712   : > { %5146 = vmatmul.mubr.f32.vlgmr.msra.gmra.mrb[32].mxu1 %v4732_v5 }
 0x7e5   : > { %v4816_v42 = vpop.f32.mrb[32].mxu1 }
 0x7e6   : > { %v4817_v9 = vadd.f32 %v4816_v42, %v4749_v34  ;;  %v5147_v12 = vpop.f32.mrb[33].mxu1 }
 0x7e8   : > { %4821 = vst.msk [vmem:[%s324_s14] sm:$0x1] %vm4820_vm8, %v4817_v9 }
 0x7e9   : > { %5342 = shalt.err (!%p5339_p3)
}
 0x7ea   : > { %s5343_s25 = scalar_lea.hbm %s7325_s21, 16  ;;  %s5347_s14 = scalar_lea.hbm %s7376_s9, 32 }
 0x7eb   : > { %p5344_p4 = scmp.ne.s32.totalorder %s7325_s21, %s5343_s25  ;;  %p5348_p9 = scmp.lt.u32.totalorder %s7325_s21, %s7376_s9 }
 0x7ec   : > { %p5349_p10 = scmp.lt.u32.totalorder %s5347_s14, %s5343_s25  ;;  %p5351_p12 = scmp.lt.u32.totalorder %s5343_s25, %s7325_s21 }
 0x7ed   : > { %p5345_p7 = pnand %p5344_p4, %p5499_p5 }
 0x7ee   : > { %p5350_p11 = por %p5349_p10, %p5348_p9 }
 0x7ef   : > { %p5346_p8 = pneg %p5345_p7 }
 0x7f0   : > { %p5352_p13 = por %p5351_p12, %p5350_p11 }
 0x7f2   : > { %p5353_p0 = pnand %p5352_p13, %p5346_p8 }
 0x7f4   : > { %5356 = shalt.err (!%p5353_p0)
}
 0x7f5   : > { %5253 = dma.vmem_to_hbm [thread:$0]  (%p5499_p5), %s7327_s17, 16, %s7325_s21, %s4823_s29  }
 0x7f6 PF: > { %p5259_p1 = scmp.ge.s32.totalorder %s5391_s12, 2  ;;  %s4847_s16 = sand.u32 1, %s5379_s30  }
 0x7f7   : > { %s4848_s13 = scalar_lea.sflag [#allocation10], %s4847_s16 }
 0x7f8   : > { %p5256_p2 = pnand %p5259_p1, %p5503_p6 }
 0x7fa   : > { %5374 = dma.done.wait (!%p5256_p2), %s4848_s13, 16  }
 0x7fb   : > { %5376 = vsyncadd (!%p5256_p2), %s4848_s13, 4294967280  ;;  %p19_p3 = scmp.ge.s32.totalorder %s5486_s15, 4   ;;  %s7556_s30 = smov %s5383_s10 }
 0x7fc   : > { %s7557_s10 = smov %s5387_s11  ;;  %s7558_s11 = smov %s5497_s18 }
 0x7fd   : > { %s7559_s12 = smov %s5486_s15  ;;  %21 = sbr.rel (!%p19_p3) target bundleno = 3 (0x3), region = 97 }
 0x804   :  { %4852 = vsyncpa [#allocation10], 1 }
 0x805   :  { %4854 = vsyncpa [#allocation10 + $0x1], 1 }

</bundles_post_ra>
